<compile_context>
chip_gen: v7x
topology: tpu7x:2x2x1
jax: 0.10.0
libtpu: 0.0.40
codegen_flags: <defaults>
</compile_context>

<pallas_src>
import functools
import math

import jax
import jax.numpy as jnp
import numpy as np
from jax import lax
from jax.experimental import pallas as pl
from jax.experimental.pallas import tpu as pltpu


# ----------------------------------------------------------------------------
# Model hyper-parameters (toy sizes consistent with the PyTorch module)
# ----------------------------------------------------------------------------
EMBED = 32
N_HEADS = 4
HEAD_DIM = EMBED // N_HEADS
FF_HIDDEN = 4 * EMBED
N_BLOCKS = 2
MAX_SEQ_LEN = 16
INPUT_VOCAB = 16
TARGET_VOCAB = 16
LANE = 128          # lane width: slabs and final logits padded to this
LN_EPS = 1e-5


# ----------------------------------------------------------------------------
# Weight-slab layouts (shared between prepare_params and the kernel)
# ----------------------------------------------------------------------------
def _round16(n):
    return ((n + 15) // 16) * 16


def _make_bf_layout(entries):
    """entries: (name, rows, cols). Returns name -> (row_off, rows, cols)."""
    layout, off = {}, 0
    for name, rows, cols in entries:
        layout[name] = (off, rows, cols)
        off += _round16(rows)           # keep bf16 row offsets 16-aligned
    return layout, off


ENC_BF_LAYOUT, ENC_BF_ROWS = _make_bf_layout([
    ("wqkv", EMBED, 3 * EMBED),             # fused QKV (Q pre-scaled)
    ("wo",   HEAD_DIM, N_HEADS * EMBED),    # per-head out-proj, lane-stacked
    ("w1",   EMBED, FF_HIDDEN),
    ("w2",   FF_HIDDEN, EMBED),
])
DEC_BF_LAYOUT, DEC_BF_ROWS = _make_bf_layout([
    ("s_wqkv", EMBED, 3 * EMBED),
    ("s_wo",   HEAD_DIM, N_HEADS * EMBED),
    ("c_wq",   EMBED, EMBED),
    ("c_wkv",  EMBED, 2 * EMBED),
    ("c_wo",   HEAD_DIM, N_HEADS * EMBED),
    ("w1",     EMBED, FF_HIDDEN),
    ("w2",     FF_HIDDEN, EMBED),
])

# f32 slab: one 128-lane row per small vector (biases, LN gamma/beta)
ENC_F32_LAYOUT = {
    "bqkv": (0, 3 * EMBED), "bo": (1, EMBED), "b1": (2, FF_HIDDEN),
    "b2": (3, EMBED),
    "ln0_g": (4, EMBED), "ln0_b": (5, EMBED),
    "ln1_g": (6, EMBED), "ln1_b": (7, EMBED),
}
ENC_F32_ROWS = 8
DEC_F32_LAYOUT = {
    "s_bqkv": (0, 3 * EMBED), "s_bo": (1, EMBED),
    "c_bq": (2, EMBED), "c_bkv": (3, 2 * EMBED), "c_bo": (4, EMBED),
    "b1": (5, FF_HIDDEN), "b2": (6, EMBED),
    "ln0_g": (7, EMBED), "ln0_b": (8, EMBED),
    "ln1_g": (9, EMBED), "ln1_b": (10, EMBED),
    "ln2_g": (11, EMBED), "ln2_b": (12, EMBED),
}
DEC_F32_ROWS = 16


# ----------------------------------------------------------------------------
# In-kernel helpers (traced inside the single fused Pallas kernel)
# ----------------------------------------------------------------------------
def _layernorm(x, g, b):
    # f32 statistics on all generations (v5e has no bf16 VPU).
    mu = jnp.mean(x, axis=-1, keepdims=True)
    var = jnp.mean((x - mu) ** 2, axis=-1, keepdims=True)
    return (x - mu) * lax.rsqrt(var + LN_EPS) * g + b


def _wslice(ref, blk, layout, name):
    """Static slice of one matrix out of a packed bf16 slab (free)."""
    off, rows, cols = layout[name]
    return ref[blk, off:off + rows, 0:cols]


def _rowslice(ref, blk, layout, name):
    """Static [1, width] f32 row (bias / LN param)."""
    r, w = layout[name]
    return ref[blk, r:r + 1, 0:w]


def _mha(q_bf, k_bf, v_bf, wo_bf, bo, *, n_heads, head_dim, d_model, keep):
    """All-head attention, VMEM resident.

    q_bf: [Sq, D] bf16 (heads along lanes, softmax scale already folded into
    the Q projection), k_bf/v_bf: [Sk, D] bf16.
    wo_bf: [head_dim, H*D] bf16 where cols [h*D:(h+1)*D] = wo[h*Dh:(h+1)*Dh,:]
    so the per-head output projection slice is a lane slice.  bo: [1, D] f32.
    concat_h(o_h) @ wo == sum_h o_h @ wo[h]  (exact).
    """
    acc = None
    for h in range(n_heads):
        hs = slice(h * head_dim, (h + 1) * head_dim)
        # Q @ K^T via dot_general contracting last dims (no explicit .T)
        s = lax.dot_general(q_bf[:, hs], k_bf[:, hs],
                            dimension_numbers=(((1,), (1,)), ((), ())),
                            preferred_element_type=jnp.float32)
        if keep is not None:
            s = jnp.where(keep, s, -1e9)
        s = s - jnp.max(s, axis=-1, keepdims=True)
        p = jnp.exp(s)
        p = p * pl.reciprocal(jnp.sum(p, axis=-1, keepdims=True), approx=True)
        oh = jnp.dot(p.astype(jnp.bfloat16), v_bf[:, hs],
                     preferred_element_type=jnp.float32)
        woh = wo_bf[:, h * d_model:(h + 1) * d_model]      # lane slice, bf16
        part = jnp.dot(oh.astype(jnp.bfloat16), woh,
                       preferred_element_type=jnp.float32)
        acc = part if acc is None else acc + part
    return acc + bo


# ----------------------------------------------------------------------------
# The single fused Pallas kernel: full encoder stack + decoder stack + logits
# ----------------------------------------------------------------------------
def _transformer_kernel(x_ref, y_ref,
                        enc_bf_ref, enc_f32_ref,
                        dec_bf_ref, dec_f32_ref,
                        l1w_ref, l1b_ref,
                        out_ref, *, n_blocks, n_heads, head_dim, ff):
    d = n_heads * head_dim
    bf16 = jnp.bfloat16

    # ----------------------------- encoder stack -----------------------------
    x = x_ref[0]                                            # [S_in, D] f32
    for blk in range(n_blocks):                             # static loop
        wqkv = _wslice(enc_bf_ref, blk, ENC_BF_LAYOUT, "wqkv")
        wo   = _wslice(enc_bf_ref, blk, ENC_BF_LAYOUT, "wo")
        w1   = _wslice(enc_bf_ref, blk, ENC_BF_LAYOUT, "w1")
        w2   = _wslice(enc_bf_ref, blk, ENC_BF_LAYOUT, "w2")
        bqkv = _rowslice(enc_f32_ref, blk, ENC_F32_LAYOUT, "bqkv")
        bo   = _rowslice(enc_f32_ref, blk, ENC_F32_LAYOUT, "bo")
        b1   = _rowslice(enc_f32_ref, blk, ENC_F32_LAYOUT, "b1")
        b2   = _rowslice(enc_f32_ref, blk, ENC_F32_LAYOUT, "b2")
        ln0g = _rowslice(enc_f32_ref, blk, ENC_F32_LAYOUT, "ln0_g")
        ln0b = _rowslice(enc_f32_ref, blk, ENC_F32_LAYOUT, "ln0_b")
        ln1g = _rowslice(enc_f32_ref, blk, ENC_F32_LAYOUT, "ln1_g")
        ln1b = _rowslice(enc_f32_ref, blk, ENC_F32_LAYOUT, "ln1_b")

        # fused QKV projection (softmax scale folded into Q cols at prep time)
        qkv = jnp.dot(x.astype(bf16), wqkv,
                      preferred_element_type=jnp.float32) + bqkv
        qkv_bf = qkv.astype(bf16)                           # cast ONCE
        attn = _mha(qkv_bf[:, 0:d], qkv_bf[:, d:2 * d], qkv_bf[:, 2 * d:3 * d],
                    wo, bo, n_heads=n_heads, head_dim=head_dim,
                    d_model=d, keep=None)
        x = _layernorm(attn + x, ln0g, ln0b)                # post-norm
        # fused FFN; hidden never leaves VMEM
        hid = jnp.maximum(
            jnp.dot(x.astype(bf16), w1, preferred_element_type=jnp.float32) + b1,
            0.0)
        ffo = jnp.dot(hid.astype(bf16), w2,
                      preferred_element_type=jnp.float32) + b2
        x = _layernorm(ffo + x, ln1g, ln1b)
    enc_bf = x.astype(bf16)          # encoder output, reused by all dec blocks

    # ----------------------------- decoder stack -----------------------------
    y = y_ref[0]                                            # [S_tgt, D] f32
    s_tgt = y.shape[0]
    row_i = lax.broadcasted_iota(jnp.int32, (s_tgt, s_tgt), 0)
    col_i = lax.broadcasted_iota(jnp.int32, (s_tgt, s_tgt), 1)
    keep = row_i >= col_i            # torch.tril(ones) semantics, built once

    for blk in range(n_blocks):
        s_wqkv = _wslice(dec_bf_ref, blk, DEC_BF_LAYOUT, "s_wqkv")
        s_wo   = _wslice(dec_bf_ref, blk, DEC_BF_LAYOUT, "s_wo")
        c_wq   = _wslice(dec_bf_ref, blk, DEC_BF_LAYOUT, "c_wq")
        c_wkv  = _wslice(dec_bf_ref, blk, DEC_BF_LAYOUT, "c_wkv")
        c_wo   = _wslice(dec_bf_ref, blk, DEC_BF_LAYOUT, "c_wo")
        w1     = _wslice(dec_bf_ref, blk, DEC_BF_LAYOUT, "w1")
        w2     = _wslice(dec_bf_ref, blk, DEC_BF_LAYOUT, "w2")
        s_bqkv = _rowslice(dec_f32_ref, blk, DEC_F32_LAYOUT, "s_bqkv")
        s_bo   = _rowslice(dec_f32_ref, blk, DEC_F32_LAYOUT, "s_bo")
        c_bq   = _rowslice(dec_f32_ref, blk, DEC_F32_LAYOUT, "c_bq")
        c_bkv  = _rowslice(dec_f32_ref, blk, DEC_F32_LAYOUT, "c_bkv")
        c_bo   = _rowslice(dec_f32_ref, blk, DEC_F32_LAYOUT, "c_bo")
        b1     = _rowslice(dec_f32_ref, blk, DEC_F32_LAYOUT, "b1")
        b2     = _rowslice(dec_f32_ref, blk, DEC_F32_LAYOUT, "b2")
        ln0g = _rowslice(dec_f32_ref, blk, DEC_F32_LAYOUT, "ln0_g")
        ln0b = _rowslice(dec_f32_ref, blk, DEC_F32_LAYOUT, "ln0_b")
        ln1g = _rowslice(dec_f32_ref, blk, DEC_F32_LAYOUT, "ln1_g")
        ln1b = _rowslice(dec_f32_ref, blk, DEC_F32_LAYOUT, "ln1_b")
        ln2g = _rowslice(dec_f32_ref, blk, DEC_F32_LAYOUT, "ln2_g")
        ln2b = _rowslice(dec_f32_ref, blk, DEC_F32_LAYOUT, "ln2_b")

        # masked self-attention (causal mask built once above)
        qkv = jnp.dot(y.astype(bf16), s_wqkv,
                      preferred_element_type=jnp.float32) + s_bqkv
        qkv_bf = qkv.astype(bf16)
        attn = _mha(qkv_bf[:, 0:d], qkv_bf[:, d:2 * d], qkv_bf[:, 2 * d:3 * d],
                    s_wo, s_bo, n_heads=n_heads, head_dim=head_dim,
                    d_model=d, keep=keep)
        y = _layernorm(attn + y, ln0g, ln0b)

        # cross-attention: Q from decoder state, fused K/V from encoder output
        qc = jnp.dot(y.astype(bf16), c_wq,
                     preferred_element_type=jnp.float32) + c_bq
        kv = jnp.dot(enc_bf, c_wkv,
                     preferred_element_type=jnp.float32) + c_bkv
        qc_bf = qc.astype(bf16)
        kv_bf = kv.astype(bf16)
        attn = _mha(qc_bf, kv_bf[:, 0:d], kv_bf[:, d:2 * d],
                    c_wo, c_bo, n_heads=n_heads, head_dim=head_dim,
                    d_model=d, keep=None)
        y = _layernorm(attn + y, ln1g, ln1b)

        # fused FFN
        hid = jnp.maximum(
            jnp.dot(y.astype(bf16), w1, preferred_element_type=jnp.float32) + b1,
            0.0)
        ffo = jnp.dot(hid.astype(bf16), w2,
                      preferred_element_type=jnp.float32) + b2
        y = _layernorm(ffo + y, ln2g, ln2b)

    # --------------------- final linear (lane-dense 128-wide) ---------------
    out_ref[0] = (jnp.dot(y.astype(bf16), l1w_ref[...],
                          preferred_element_type=jnp.float32)
                  + l1b_ref[...]).astype(out_ref.dtype)


# ----------------------------------------------------------------------------
# pallas_call wrapper: the whole forward in one launch
# ----------------------------------------------------------------------------
def _rep_spec(arr):
    """Whole-array block, same block for every grid step (DMA'd once)."""
    zeros = (0,) * arr.ndim
    return pl.BlockSpec(arr.shape, lambda b, _z=zeros: _z)


def fused_transformer(x_emb, y_emb, prep):
    B, S_in, D = x_emb.shape
    S_tgt = y_emb.shape[1]
    Vp = prep["l1_w"].shape[1]                        # lane-dense padded vocab

    kernel = functools.partial(_transformer_kernel,
                               n_blocks=N_BLOCKS, n_heads=N_HEADS,
                               head_dim=HEAD_DIM, ff=FF_HIDDEN)
    return pl.pallas_call(
        kernel,
        out_shape=jax.ShapeDtypeStruct((B, S_tgt, Vp), jnp.float32),
        grid=(B,),
        in_specs=[
            pl.BlockSpec((1, S_in, D), lambda b: (b, 0, 0)),
            pl.BlockSpec((1, S_tgt, D), lambda b: (b, 0, 0)),
            _rep_spec(prep["enc_bf"]), _rep_spec(prep["enc_f32"]),
            _rep_spec(prep["dec_bf"]), _rep_spec(prep["dec_f32"]),
            _rep_spec(prep["l1_w"]), _rep_spec(prep["l1_b"]),
        ],
        out_specs=pl.BlockSpec((1, S_tgt, Vp), lambda b: (b, 0, 0)),
        compiler_params=pltpu.CompilerParams(dimension_semantics=("parallel",)),
    )(x_emb, y_emb, prep["enc_bf"], prep["enc_f32"],
      prep["dec_bf"], prep["dec_f32"], prep["l1_w"], prep["l1_b"])


# ----------------------------------------------------------------------------
# Parameter init (mirrors the PyTorch module structure)
# ----------------------------------------------------------------------------
def sinusoidal_pe(max_len, d):
    pos = np.arange(max_len)[:, None].astype(np.float32)
    i = np.arange(d)[None, :]
    angle = pos / np.power(10000.0, (2 * (i // 2)) / d)
    pe = np.where(i % 2 == 0, np.sin(angle), np.cos(angle)).astype(np.float32)
    return jnp.asarray(pe)


def init_linear_params(key, fan_in, fan_out):
    k1, k2 = jax.random.split(key)
    bound = 1.0 / math.sqrt(fan_in)
    w = jax.random.uniform(k1, (fan_in, fan_out), jnp.float32, -bound, bound)
    b = jax.random.uniform(k2, (fan_out,), jnp.float32, -bound, bound)
    return w, b


def init_mha_params(key, d):
    keys = jax.random.split(key, 4)
    p = {}
    for name, k in zip(("q", "k", "v", "o"), keys):
        w, b = init_linear_params(k, d, d)
        p[f"w{name}"], p[f"b{name}"] = w, b
    return p


def init_block_params(key, d, decoder=False):
    n_keys = 5 if decoder else 4
    keys = jax.random.split(key, n_keys)
    p = {"self_attn": init_mha_params(keys[0], d)}
    ff_key = keys[1]
    if decoder:
        p["cross_attn"] = init_mha_params(keys[1], d)
        ff_key = keys[2]
    w1, b1 = init_linear_params(ff_key, d, FF_HIDDEN)
    w2, b2 = init_linear_params(keys[-1], FF_HIDDEN, d)
    p["ff_w1"], p["ff_b1"], p["ff_w2"], p["ff_b2"] = w1, b1, w2, b2
    n_ln = 3 if decoder else 2
    for i in range(n_ln):
        p[f"ln{i}_g"] = jnp.ones((d,), jnp.float32)
        p[f"ln{i}_b"] = jnp.zeros((d,), jnp.float32)
    return p


def init_params(key):
    keys = jax.random.split(key, 5 + 2 * N_BLOCKS)
    params = {
        "enc_emb": jax.random.normal(keys[0], (INPUT_VOCAB, EMBED), jnp.float32),
        "dec_emb": jax.random.normal(keys[1], (TARGET_VOCAB, EMBED), jnp.float32),
        "pe": sinusoidal_pe(MAX_SEQ_LEN, EMBED),
    }
    params["encoder"] = [init_block_params(keys[2 + i], EMBED)
                         for i in range(N_BLOCKS)]
    params["decoder"] = [init_block_params(keys[2 + N_BLOCKS + i], EMBED, decoder=True)
                         for i in range(N_BLOCKS)]
    w, b = init_linear_params(keys[-1], EMBED, TARGET_VOCAB)
    params["l1_w"], params["l1_b"] = w, b
    return params


# ----------------------------------------------------------------------------
# One-time packing of all weights into per-stack slabs
# ----------------------------------------------------------------------------
def _rearrange_wo(wo):
    """[D, D] -> [head_dim, H*D]; cols [h*D:(h+1)*D] = wo[h*Dh:(h+1)*Dh, :]."""
    parts = [wo[h * HEAD_DIM:(h + 1) * HEAD_DIM, :] for h in range(N_HEADS)]
    return jnp.concatenate(parts, axis=1)


def _pack_bf_slab(layout, total_rows, tensors):
    slab = jnp.zeros((total_rows, LANE), jnp.float32)
    for name, arr in tensors.items():
        off, rows, cols = layout[name]
        slab = slab.at[off:off + rows, 0:cols].set(arr)
    return slab.astype(jnp.bfloat16)


def _pack_f32_slab(layout, total_rows, vectors):
    slab = jnp.zeros((total_rows, LANE), jnp.float32)
    for name, vec in vectors.items():
        r, w = layout[name]
        slab = slab.at[r, 0:w].set(vec)
    return slab


def prepare_params(params):
    """Fuse QKV / KV weights, fold the softmax scale into Q, rearrange wo for
    lane slicing, cast matmul weights to bf16 and pack everything into one
    bf16 slab + one f32 slab per stack (stacked over N_BLOCKS)."""
    inv_scale = 1.0 / math.sqrt(HEAD_DIM)
    prep = {"enc_emb": params["enc_emb"], "dec_emb": params["dec_emb"],
            "pe": params["pe"]}

    enc_bf, enc_f32 = [], []
    for blk in params["encoder"]:
        sa = blk["self_attn"]
        wqkv = jnp.concatenate([sa["wq"] * inv_scale, sa["wk"], sa["wv"]], axis=1)
        bqkv = jnp.concatenate([sa["bq"] * inv_scale, sa["bk"], sa["bv"]])
        enc_bf.append(_pack_bf_slab(ENC_BF_LAYOUT, ENC_BF_ROWS, {
            "wqkv": wqkv, "wo": _rearrange_wo(sa["wo"]),
            "w1": blk["ff_w1"], "w2": blk["ff_w2"]}))
        enc_f32.append(_pack_f32_slab(ENC_F32_LAYOUT, ENC_F32_ROWS, {
            "bqkv": bqkv, "bo": sa["bo"],
            "b1": blk["ff_b1"], "b2": blk["ff_b2"],
            "ln0_g": blk["ln0_g"], "ln0_b": blk["ln0_b"],
            "ln1_g": blk["ln1_g"], "ln1_b": blk["ln1_b"]}))
    prep["enc_bf"] = jnp.stack(enc_bf)       # [N_BLOCKS, 208, 128] bf16
    prep["enc_f32"] = jnp.stack(enc_f32)     # [N_BLOCKS, 8, 128] f32

    dec_bf, dec_f32 = [], []
    for blk in params["decoder"]:
        sa, ca = blk["self_attn"], blk["cross_attn"]
        s_wqkv = jnp.concatenate([sa["wq"] * inv_scale, sa["wk"], sa["wv"]], axis=1)
        s_bqkv = jnp.concatenate([sa["bq"] * inv_scale, sa["bk"], sa["bv"]])
        c_wkv = jnp.concatenate([ca["wk"], ca["wv"]], axis=1)
        c_bkv = jnp.concatenate([ca["bk"], ca["bv"]])
        dec_bf.append(_pack_bf_slab(DEC_BF_LAYOUT, DEC_BF_ROWS, {
            "s_wqkv": s_wqkv, "s_wo": _rearrange_wo(sa["wo"]),
            "c_wq": ca["wq"] * inv_scale, "c_wkv": c_wkv,
            "c_wo": _rearrange_wo(ca["wo"]),
            "w1": blk["ff_w1"], "w2": blk["ff_w2"]}))
        dec_f32.append(_pack_f32_slab(DEC_F32_LAYOUT, DEC_F32_ROWS, {
            "s_bqkv": s_bqkv, "s_bo": sa["bo"],
            "c_bq": ca["bq"] * inv_scale, "c_bkv": c_bkv, "c_bo": ca["bo"],
            "b1": blk["ff_b1"], "b2": blk["ff_b2"],
            "ln0_g": blk["ln0_g"], "ln0_b": blk["ln0_b"],
            "ln1_g": blk["ln1_g"], "ln1_b": blk["ln1_b"],
            "ln2_g": blk["ln2_g"], "ln2_b": blk["ln2_b"]}))
    prep["dec_bf"] = jnp.stack(dec_bf)       # [N_BLOCKS, 288, 128] bf16
    prep["dec_f32"] = jnp.stack(dec_f32)     # [N_BLOCKS, 16, 128] f32

    vp = max(LANE, TARGET_VOCAB)
    l1_w = jnp.zeros((EMBED, vp), jnp.float32).at[:, :TARGET_VOCAB].set(params["l1_w"])
    l1_b = jnp.zeros((vp,), jnp.float32).at[:TARGET_VOCAB].set(params["l1_b"])
    prep["l1_w"] = l1_w.astype(jnp.bfloat16)
    prep["l1_b"] = l1_b.reshape(1, -1)
    return prep


# ----------------------------------------------------------------------------
# Forward pass (glue around the single fused Pallas kernel)
# ----------------------------------------------------------------------------
def transformer_forward(prep, input_seq, target_seq):
    S_in = input_seq.shape[1]
    S_tgt = target_seq.shape[1]
    scale = math.sqrt(EMBED)
    # token embedding gather (glue) + sinusoidal positional embedding
    x = prep["enc_emb"][input_seq] * scale + prep["pe"][:S_in][None, :, :]
    y = prep["dec_emb"][target_seq] * scale + prep["pe"][:S_tgt][None, :, :]
    logits_padded = fused_transformer(x, y, prep)
    return logits_padded[..., :TARGET_VOCAB]


# TODO(synk): Adam optimizer / CrossEntropyLoss (`update`) and the
# auto-regressive `inference` loop are training/decoding utilities, not part
# of the forward pass, and are not implemented here.

if __name__ == "__main__":
    key = jax.random.PRNGKey(0)
    pkey, ikey, tkey = jax.random.split(key, 3)

    params = init_params(pkey)
    prep = prepare_params(params)

    batch, seq = 2, 8
    input_seq = jax.random.randint(ikey, (batch, seq), 0, INPUT_VOCAB, jnp.int32)
    target_seq = jax.random.randint(tkey, (batch, seq), 0, TARGET_VOCAB, jnp.int32)

    logits = jax.jit(transformer_forward)(prep, input_seq, target_seq)
    jax.block_until_ready(logits)

    assert logits.shape == (batch, seq, TARGET_VOCAB)
    assert logits.dtype == jnp.float32
    assert bool(jnp.all(jnp.isfinite(logits)))
    print("KERNEL_OK")
</pallas_src>

<mosaic_0001>
module attributes {stable_mosaic.version = 11 : i64} {
  func.func @_transformer_kernel(%arg0: i32, %arg1: memref<1x8x32xf32, #tpu.memory_space<vmem>>, %arg2: memref<1x8x32xf32, #tpu.memory_space<vmem>>, %arg3: memref<2x208x128xbf16, #tpu.memory_space<vmem>>, %arg4: memref<2x8x128xf32, #tpu.memory_space<vmem>>, %arg5: memref<2x288x128xbf16, #tpu.memory_space<vmem>>, %arg6: memref<2x16x128xf32, #tpu.memory_space<vmem>>, %arg7: memref<32x128xbf16, #tpu.memory_space<vmem>>, %arg8: memref<1x128xf32, #tpu.memory_space<vmem>>, %arg9: memref<1x8x128xf32, #tpu.memory_space<vmem>>) attributes {dimension_semantics = [#tpu.dimension_semantics<parallel>], iteration_bounds = array<i64: 2>, scalar_prefetch = 0 : i64, scratch_operands = 0 : i64, tpu.core_type = #tpu.core_type<tc>, window_params = [{transform_indices = @transform_0, window_bounds = array<i64: 1, 8, 32>}, {transform_indices = @transform_1, window_bounds = array<i64: 1, 8, 32>}, {pipeline_mode = #tpu.pipeline_mode<synchronous>, transform_indices = @transform_2, window_bounds = array<i64: 2, 208, 128>}, {pipeline_mode = #tpu.pipeline_mode<synchronous>, transform_indices = @transform_3, window_bounds = array<i64: 2, 8, 128>}, {pipeline_mode = #tpu.pipeline_mode<synchronous>, transform_indices = @transform_4, window_bounds = array<i64: 2, 288, 128>}, {pipeline_mode = #tpu.pipeline_mode<synchronous>, transform_indices = @transform_5, window_bounds = array<i64: 2, 16, 128>}, {pipeline_mode = #tpu.pipeline_mode<synchronous>, transform_indices = @transform_6, window_bounds = array<i64: 32, 128>}, {pipeline_mode = #tpu.pipeline_mode<synchronous>, transform_indices = @transform_7, window_bounds = array<i64: 1, 128>}, {transform_indices = @transform_8, window_bounds = array<i64: 1, 8, 128>}]} {
    %c0 = arith.constant 0 : index
    %c0_0 = arith.constant 0 : index
    %c0_1 = arith.constant 0 : index
    %0 = vector.load %arg1[%c0, %c0_0, %c0_1] : memref<1x8x32xf32, #tpu.memory_space<vmem>>, vector<1x8x32xf32>
    %1 = vector.shape_cast %0 : vector<1x8x32xf32> to vector<8x32xf32>
    %c0_2 = arith.constant 0 : index
    %c0_3 = arith.constant 0 : index
    %c0_4 = arith.constant 0 : index
    %2 = vector.load %arg3[%c0_2, %c0_3, %c0_4] : memref<2x208x128xbf16, #tpu.memory_space<vmem>>, vector<1x32x96xbf16>
    %3 = vector.shape_cast %2 : vector<1x32x96xbf16> to vector<32x96xbf16>
    %c0_5 = arith.constant 0 : index
    %c32 = arith.constant 32 : index
    %c0_6 = arith.constant 0 : index
    %4 = vector.load %arg3[%c0_5, %c32, %c0_6] : memref<2x208x128xbf16, #tpu.memory_space<vmem>>, vector<1x8x128xbf16>
    %5 = vector.shape_cast %4 : vector<1x8x128xbf16> to vector<8x128xbf16>
    %c0_7 = arith.constant 0 : index
    %c48 = arith.constant 48 : index
    %c0_8 = arith.constant 0 : index
    %6 = vector.load %arg3[%c0_7, %c48, %c0_8] : memref<2x208x128xbf16, #tpu.memory_space<vmem>>, vector<1x32x128xbf16>
    %7 = vector.shape_cast %6 : vector<1x32x128xbf16> to vector<32x128xbf16>
    %c0_9 = arith.constant 0 : index
    %c80 = arith.constant 80 : index
    %c0_10 = arith.constant 0 : index
    %8 = vector.load %arg3[%c0_9, %c80, %c0_10] : memref<2x208x128xbf16, #tpu.memory_space<vmem>>, vector<1x128x32xbf16>
    %9 = vector.shape_cast %8 : vector<1x128x32xbf16> to vector<128x32xbf16>
    %c0_11 = arith.constant 0 : index
    %c0_12 = arith.constant 0 : index
    %c0_13 = arith.constant 0 : index
    %10 = vector.load %arg4[%c0_11, %c0_12, %c0_13] : memref<2x8x128xf32, #tpu.memory_space<vmem>>, vector<1x1x96xf32>
    %11 = vector.shape_cast %10 : vector<1x1x96xf32> to vector<1x96xf32>
    %c0_14 = arith.constant 0 : index
    %c1 = arith.constant 1 : index
    %c0_15 = arith.constant 0 : index
    %12 = vector.load %arg4[%c0_14, %c1, %c0_15] : memref<2x8x128xf32, #tpu.memory_space<vmem>>, vector<1x1x32xf32>
    %13 = vector.shape_cast %12 : vector<1x1x32xf32> to vector<1x32xf32>
    %c0_16 = arith.constant 0 : index
    %c2 = arith.constant 2 : index
    %c0_17 = arith.constant 0 : index
    %14 = vector.load %arg4[%c0_16, %c2, %c0_17] : memref<2x8x128xf32, #tpu.memory_space<vmem>>, vector<1x1x128xf32>
    %15 = vector.shape_cast %14 : vector<1x1x128xf32> to vector<1x128xf32>
    %c0_18 = arith.constant 0 : index
    %c3 = arith.constant 3 : index
    %c0_19 = arith.constant 0 : index
    %16 = vector.load %arg4[%c0_18, %c3, %c0_19] : memref<2x8x128xf32, #tpu.memory_space<vmem>>, vector<1x1x32xf32>
    %17 = vector.shape_cast %16 : vector<1x1x32xf32> to vector<1x32xf32>
    %c0_20 = arith.constant 0 : index
    %c4 = arith.constant 4 : index
    %c0_21 = arith.constant 0 : index
    %18 = vector.load %arg4[%c0_20, %c4, %c0_21] : memref<2x8x128xf32, #tpu.memory_space<vmem>>, vector<1x1x32xf32>
    %19 = vector.shape_cast %18 : vector<1x1x32xf32> to vector<1x32xf32>
    %c0_22 = arith.constant 0 : index
    %c5 = arith.constant 5 : index
    %c0_23 = arith.constant 0 : index
    %20 = vector.load %arg4[%c0_22, %c5, %c0_23] : memref<2x8x128xf32, #tpu.memory_space<vmem>>, vector<1x1x32xf32>
    %21 = vector.shape_cast %20 : vector<1x1x32xf32> to vector<1x32xf32>
    %c0_24 = arith.constant 0 : index
    %c6 = arith.constant 6 : index
    %c0_25 = arith.constant 0 : index
    %22 = vector.load %arg4[%c0_24, %c6, %c0_25] : memref<2x8x128xf32, #tpu.memory_space<vmem>>, vector<1x1x32xf32>
    %23 = vector.shape_cast %22 : vector<1x1x32xf32> to vector<1x32xf32>
    %c0_26 = arith.constant 0 : index
    %c7 = arith.constant 7 : index
    %c0_27 = arith.constant 0 : index
    %24 = vector.load %arg4[%c0_26, %c7, %c0_27] : memref<2x8x128xf32, #tpu.memory_space<vmem>>, vector<1x1x32xf32>
    %25 = vector.shape_cast %24 : vector<1x1x32xf32> to vector<1x32xf32>
    %26 = arith.truncf %1 : vector<8x32xf32> to vector<8x32xbf16>
    %cst = arith.constant dense<0.000000e+00> : vector<8x96xf32>
    %27 = tpu.matmul %26, %3, %cst {dimension_numbers = #tpu.dot_dimension_numbers<[1], [0], [0], [1], [0, 0, 1, 1], [], []>} : vector<8x32xbf16>, vector<32x96xbf16>, vector<8x96xf32> -> vector<8x96xf32>
    %28 = vector.broadcast %11 : vector<1x96xf32> to vector<8x96xf32>
    %29 = arith.addf %27, %28 : vector<8x96xf32>
    %30 = arith.truncf %29 : vector<8x96xf32> to vector<8x96xbf16>
    %31 = vector.extract_strided_slice %30 {offsets = [0, 0], sizes = [8, 32], strides = [1, 1]} : vector<8x96xbf16> to vector<8x32xbf16>
    %32 = vector.extract_strided_slice %30 {offsets = [0, 32], sizes = [8, 32], strides = [1, 1]} : vector<8x96xbf16> to vector<8x32xbf16>
    %33 = vector.extract_strided_slice %30 {offsets = [0, 64], sizes = [8, 32], strides = [1, 1]} : vector<8x96xbf16> to vector<8x32xbf16>
    %34 = vector.extract_strided_slice %31 {offsets = [0, 0], sizes = [8, 8], strides = [1, 1]} : vector<8x32xbf16> to vector<8x8xbf16>
    %35 = vector.extract_strided_slice %32 {offsets = [0, 0], sizes = [8, 8], strides = [1, 1]} : vector<8x32xbf16> to vector<8x8xbf16>
    %cst_28 = arith.constant dense<0.000000e+00> : vector<8x8xf32>
    %36 = tpu.matmul %34, %35, %cst_28 {dimension_numbers = #tpu.dot_dimension_numbers<[1], [1], [0], [0], [0, 0, 1, 0], [], []>} : vector<8x8xbf16>, vector<8x8xbf16>, vector<8x8xf32> -> vector<8x8xf32>
    %cst_29 = arith.constant dense<0xFF800000> : vector<8xf32>
    %37 = vector.multi_reduction <maximumf>, %36, %cst_29 [1] : vector<8x8xf32> to vector<8xf32>
    %38 = vector.shape_cast %37 : vector<8xf32> to vector<8x1xf32>
    %39 = vector.broadcast %38 : vector<8x1xf32> to vector<8x8xf32>
    %40 = arith.subf %36, %39 : vector<8x8xf32>
    %41 = math.exp %40 : vector<8x8xf32>
    %cst_30 = arith.constant dense<0.000000e+00> : vector<8xf32>
    %42 = vector.multi_reduction <add>, %41, %cst_30 [1] : vector<8x8xf32> to vector<8xf32>
    %43 = vector.shape_cast %42 : vector<8xf32> to vector<8x1xf32>
    %44 = tpu.reciprocal %43 {approx = true} : vector<8x1xf32> -> vector<8x1xf32>
    %45 = vector.broadcast %44 : vector<8x1xf32> to vector<8x8xf32>
    %46 = arith.mulf %41, %45 : vector<8x8xf32>
    %47 = arith.truncf %46 : vector<8x8xf32> to vector<8x8xbf16>
    %48 = vector.extract_strided_slice %33 {offsets = [0, 0], sizes = [8, 8], strides = [1, 1]} : vector<8x32xbf16> to vector<8x8xbf16>
    %cst_31 = arith.constant dense<0.000000e+00> : vector<8x8xf32>
    %49 = tpu.matmul %47, %48, %cst_31 {dimension_numbers = #tpu.dot_dimension_numbers<[1], [0], [0], [1], [0, 0, 1, 1], [], []>} : vector<8x8xbf16>, vector<8x8xbf16>, vector<8x8xf32> -> vector<8x8xf32>
    %50 = vector.extract_strided_slice %5 {offsets = [0, 0], sizes = [8, 32], strides = [1, 1]} : vector<8x128xbf16> to vector<8x32xbf16>
    %51 = arith.truncf %49 : vector<8x8xf32> to vector<8x8xbf16>
    %cst_32 = arith.constant dense<0.000000e+00> : vector<8x32xf32>
    %52 = tpu.matmul %51, %50, %cst_32 {dimension_numbers = #tpu.dot_dimension_numbers<[1], [0], [0], [1], [0, 0, 1, 1], [], []>} : vector<8x8xbf16>, vector<8x32xbf16>, vector<8x32xf32> -> vector<8x32xf32>
    %53 = vector.extract_strided_slice %31 {offsets = [0, 8], sizes = [8, 8], strides = [1, 1]} : vector<8x32xbf16> to vector<8x8xbf16>
    %54 = vector.extract_strided_slice %32 {offsets = [0, 8], sizes = [8, 8], strides = [1, 1]} : vector<8x32xbf16> to vector<8x8xbf16>
    %cst_33 = arith.constant dense<0.000000e+00> : vector<8x8xf32>
    %55 = tpu.matmul %53, %54, %cst_33 {dimension_numbers = #tpu.dot_dimension_numbers<[1], [1], [0], [0], [0, 0, 1, 0], [], []>} : vector<8x8xbf16>, vector<8x8xbf16>, vector<8x8xf32> -> vector<8x8xf32>
    %cst_34 = arith.constant dense<0xFF800000> : vector<8xf32>
    %56 = vector.multi_reduction <maximumf>, %55, %cst_34 [1] : vector<8x8xf32> to vector<8xf32>
    %57 = vector.shape_cast %56 : vector<8xf32> to vector<8x1xf32>
    %58 = vector.broadcast %57 : vector<8x1xf32> to vector<8x8xf32>
    %59 = arith.subf %55, %58 : vector<8x8xf32>
    %60 = math.exp %59 : vector<8x8xf32>
    %cst_35 = arith.constant dense<0.000000e+00> : vector<8xf32>
    %61 = vector.multi_reduction <add>, %60, %cst_35 [1] : vector<8x8xf32> to vector<8xf32>
    %62 = vector.shape_cast %61 : vector<8xf32> to vector<8x1xf32>
    %63 = tpu.reciprocal %62 {approx = true} : vector<8x1xf32> -> vector<8x1xf32>
    %64 = vector.broadcast %63 : vector<8x1xf32> to vector<8x8xf32>
    %65 = arith.mulf %60, %64 : vector<8x8xf32>
    %66 = arith.truncf %65 : vector<8x8xf32> to vector<8x8xbf16>
    %67 = vector.extract_strided_slice %33 {offsets = [0, 8], sizes = [8, 8], strides = [1, 1]} : vector<8x32xbf16> to vector<8x8xbf16>
    %cst_36 = arith.constant dense<0.000000e+00> : vector<8x8xf32>
    %68 = tpu.matmul %66, %67, %cst_36 {dimension_numbers = #tpu.dot_dimension_numbers<[1], [0], [0], [1], [0, 0, 1, 1], [], []>} : vector<8x8xbf16>, vector<8x8xbf16>, vector<8x8xf32> -> vector<8x8xf32>
    %69 = vector.extract_strided_slice %5 {offsets = [0, 32], sizes = [8, 32], strides = [1, 1]} : vector<8x128xbf16> to vector<8x32xbf16>
    %70 = arith.truncf %68 : vector<8x8xf32> to vector<8x8xbf16>
    %cst_37 = arith.constant dense<0.000000e+00> : vector<8x32xf32>
    %71 = tpu.matmul %70, %69, %cst_37 {dimension_numbers = #tpu.dot_dimension_numbers<[1], [0], [0], [1], [0, 0, 1, 1], [], []>} : vector<8x8xbf16>, vector<8x32xbf16>, vector<8x32xf32> -> vector<8x32xf32>
    %72 = arith.addf %52, %71 : vector<8x32xf32>
    %73 = vector.extract_strided_slice %31 {offsets = [0, 16], sizes = [8, 8], strides = [1, 1]} : vector<8x32xbf16> to vector<8x8xbf16>
    %74 = vector.extract_strided_slice %32 {offsets = [0, 16], sizes = [8, 8], strides = [1, 1]} : vector<8x32xbf16> to vector<8x8xbf16>
    %cst_38 = arith.constant dense<0.000000e+00> : vector<8x8xf32>
    %75 = tpu.matmul %73, %74, %cst_38 {dimension_numbers = #tpu.dot_dimension_numbers<[1], [1], [0], [0], [0, 0, 1, 0], [], []>} : vector<8x8xbf16>, vector<8x8xbf16>, vector<8x8xf32> -> vector<8x8xf32>
    %cst_39 = arith.constant dense<0xFF800000> : vector<8xf32>
    %76 = vector.multi_reduction <maximumf>, %75, %cst_39 [1] : vector<8x8xf32> to vector<8xf32>
    %77 = vector.shape_cast %76 : vector<8xf32> to vector<8x1xf32>
    %78 = vector.broadcast %77 : vector<8x1xf32> to vector<8x8xf32>
    %79 = arith.subf %75, %78 : vector<8x8xf32>
    %80 = math.exp %79 : vector<8x8xf32>
    %cst_40 = arith.constant dense<0.000000e+00> : vector<8xf32>
    %81 = vector.multi_reduction <add>, %80, %cst_40 [1] : vector<8x8xf32> to vector<8xf32>
    %82 = vector.shape_cast %81 : vector<8xf32> to vector<8x1xf32>
    %83 = tpu.reciprocal %82 {approx = true} : vector<8x1xf32> -> vector<8x1xf32>
    %84 = vector.broadcast %83 : vector<8x1xf32> to vector<8x8xf32>
    %85 = arith.mulf %80, %84 : vector<8x8xf32>
    %86 = arith.truncf %85 : vector<8x8xf32> to vector<8x8xbf16>
    %87 = vector.extract_strided_slice %33 {offsets = [0, 16], sizes = [8, 8], strides = [1, 1]} : vector<8x32xbf16> to vector<8x8xbf16>
    %cst_41 = arith.constant dense<0.000000e+00> : vector<8x8xf32>
    %88 = tpu.matmul %86, %87, %cst_41 {dimension_numbers = #tpu.dot_dimension_numbers<[1], [0], [0], [1], [0, 0, 1, 1], [], []>} : vector<8x8xbf16>, vector<8x8xbf16>, vector<8x8xf32> -> vector<8x8xf32>
    %89 = vector.extract_strided_slice %5 {offsets = [0, 64], sizes = [8, 32], strides = [1, 1]} : vector<8x128xbf16> to vector<8x32xbf16>
    %90 = arith.truncf %88 : vector<8x8xf32> to vector<8x8xbf16>
    %cst_42 = arith.constant dense<0.000000e+00> : vector<8x32xf32>
    %91 = tpu.matmul %90, %89, %cst_42 {dimension_numbers = #tpu.dot_dimension_numbers<[1], [0], [0], [1], [0, 0, 1, 1], [], []>} : vector<8x8xbf16>, vector<8x32xbf16>, vector<8x32xf32> -> vector<8x32xf32>
    %92 = arith.addf %72, %91 : vector<8x32xf32>
    %93 = vector.extract_strided_slice %31 {offsets = [0, 24], sizes = [8, 8], strides = [1, 1]} : vector<8x32xbf16> to vector<8x8xbf16>
    %94 = vector.extract_strided_slice %32 {offsets = [0, 24], sizes = [8, 8], strides = [1, 1]} : vector<8x32xbf16> to vector<8x8xbf16>
    %cst_43 = arith.constant dense<0.000000e+00> : vector<8x8xf32>
    %95 = tpu.matmul %93, %94, %cst_43 {dimension_numbers = #tpu.dot_dimension_numbers<[1], [1], [0], [0], [0, 0, 1, 0], [], []>} : vector<8x8xbf16>, vector<8x8xbf16>, vector<8x8xf32> -> vector<8x8xf32>
    %cst_44 = arith.constant dense<0xFF800000> : vector<8xf32>
    %96 = vector.multi_reduction <maximumf>, %95, %cst_44 [1] : vector<8x8xf32> to vector<8xf32>
    %97 = vector.shape_cast %96 : vector<8xf32> to vector<8x1xf32>
    %98 = vector.broadcast %97 : vector<8x1xf32> to vector<8x8xf32>
    %99 = arith.subf %95, %98 : vector<8x8xf32>
    %100 = math.exp %99 : vector<8x8xf32>
    %cst_45 = arith.constant dense<0.000000e+00> : vector<8xf32>
    %101 = vector.multi_reduction <add>, %100, %cst_45 [1] : vector<8x8xf32> to vector<8xf32>
    %102 = vector.shape_cast %101 : vector<8xf32> to vector<8x1xf32>
    %103 = tpu.reciprocal %102 {approx = true} : vector<8x1xf32> -> vector<8x1xf32>
    %104 = vector.broadcast %103 : vector<8x1xf32> to vector<8x8xf32>
    %105 = arith.mulf %100, %104 : vector<8x8xf32>
    %106 = arith.truncf %105 : vector<8x8xf32> to vector<8x8xbf16>
    %107 = vector.extract_strided_slice %33 {offsets = [0, 24], sizes = [8, 8], strides = [1, 1]} : vector<8x32xbf16> to vector<8x8xbf16>
    %cst_46 = arith.constant dense<0.000000e+00> : vector<8x8xf32>
    %108 = tpu.matmul %106, %107, %cst_46 {dimension_numbers = #tpu.dot_dimension_numbers<[1], [0], [0], [1], [0, 0, 1, 1], [], []>} : vector<8x8xbf16>, vector<8x8xbf16>, vector<8x8xf32> -> vector<8x8xf32>
    %109 = vector.extract_strided_slice %5 {offsets = [0, 96], sizes = [8, 32], strides = [1, 1]} : vector<8x128xbf16> to vector<8x32xbf16>
    %110 = arith.truncf %108 : vector<8x8xf32> to vector<8x8xbf16>
    %cst_47 = arith.constant dense<0.000000e+00> : vector<8x32xf32>
    %111 = tpu.matmul %110, %109, %cst_47 {dimension_numbers = #tpu.dot_dimension_numbers<[1], [0], [0], [1], [0, 0, 1, 1], [], []>} : vector<8x8xbf16>, vector<8x32xbf16>, vector<8x32xf32> -> vector<8x32xf32>
    %112 = arith.addf %92, %111 : vector<8x32xf32>
    %113 = vector.broadcast %13 : vector<1x32xf32> to vector<8x32xf32>
    %114 = arith.addf %112, %113 : vector<8x32xf32>
    %115 = arith.addf %114, %1 : vector<8x32xf32>
    %cst_48 = arith.constant dense<0.000000e+00> : vector<8xf32>
    %116 = vector.multi_reduction <add>, %115, %cst_48 [1] : vector<8x32xf32> to vector<8xf32>
    %117 = vector.shape_cast %116 : vector<8xf32> to vector<8x1xf32>
    %cst_49 = arith.constant 3.200000e+01 : f32
    %118 = vector.broadcast %cst_49 : f32 to vector<8x1xf32>
    %119 = arith.divf %117, %118 : vector<8x1xf32>
    %120 = vector.broadcast %119 : vector<8x1xf32> to vector<8x32xf32>
    %121 = arith.subf %115, %120 : vector<8x32xf32>
    %122 = arith.mulf %121, %121 : vector<8x32xf32>
    %cst_50 = arith.constant dense<0.000000e+00> : vector<8xf32>
    %123 = vector.multi_reduction <add>, %122, %cst_50 [1] : vector<8x32xf32> to vector<8xf32>
    %124 = vector.shape_cast %123 : vector<8xf32> to vector<8x1xf32>
    %cst_51 = arith.constant 3.200000e+01 : f32
    %125 = vector.broadcast %cst_51 : f32 to vector<8x1xf32>
    %126 = arith.divf %124, %125 : vector<8x1xf32>
    %127 = vector.broadcast %119 : vector<8x1xf32> to vector<8x32xf32>
    %128 = arith.subf %115, %127 : vector<8x32xf32>
    %cst_52 = arith.constant 9.99999974E-6 : f32
    %129 = vector.broadcast %cst_52 : f32 to vector<8x1xf32>
    %130 = arith.addf %126, %129 : vector<8x1xf32>
    %131 = math.rsqrt %130 : vector<8x1xf32>
    %132 = vector.broadcast %131 : vector<8x1xf32> to vector<8x32xf32>
    %133 = arith.mulf %128, %132 : vector<8x32xf32>
    %134 = vector.broadcast %19 : vector<1x32xf32> to vector<8x32xf32>
    %135 = arith.mulf %133, %134 : vector<8x32xf32>
    %136 = vector.broadcast %21 : vector<1x32xf32> to vector<8x32xf32>
    %137 = arith.addf %135, %136 : vector<8x32xf32>
    %138 = arith.truncf %137 : vector<8x32xf32> to vector<8x32xbf16>
    %cst_53 = arith.constant dense<0.000000e+00> : vector<8x128xf32>
    %139 = tpu.matmul %138, %7, %cst_53 {dimension_numbers = #tpu.dot_dimension_numbers<[1], [0], [0], [1], [0, 0, 1, 1], [], []>} : vector<8x32xbf16>, vector<32x128xbf16>, vector<8x128xf32> -> vector<8x128xf32>
    %140 = vector.broadcast %15 : vector<1x128xf32> to vector<8x128xf32>
    %141 = arith.addf %139, %140 : vector<8x128xf32>
    %cst_54 = arith.constant 0.000000e+00 : f32
    %142 = vector.broadcast %cst_54 : f32 to vector<8x128xf32>
    %143 = arith.maximumf %141, %142 : vector<8x128xf32>
    %144 = arith.truncf %143 : vector<8x128xf32> to vector<8x128xbf16>
    %cst_55 = arith.constant dense<0.000000e+00> : vector<8x32xf32>
    %145 = tpu.matmul %144, %9, %cst_55 {dimension_numbers = #tpu.dot_dimension_numbers<[1], [0], [0], [1], [0, 0, 1, 1], [], []>} : vector<8x128xbf16>, vector<128x32xbf16>, vector<8x32xf32> -> vector<8x32xf32>
    %146 = vector.broadcast %17 : vector<1x32xf32> to vector<8x32xf32>
    %147 = arith.addf %145, %146 : vector<8x32xf32>
    %148 = arith.addf %147, %137 : vector<8x32xf32>
    %cst_56 = arith.constant dense<0.000000e+00> : vector<8xf32>
    %149 = vector.multi_reduction <add>, %148, %cst_56 [1] : vector<8x32xf32> to vector<8xf32>
    %150 = vector.shape_cast %149 : vector<8xf32> to vector<8x1xf32>
    %cst_57 = arith.constant 3.200000e+01 : f32
    %151 = vector.broadcast %cst_57 : f32 to vector<8x1xf32>
    %152 = arith.divf %150, %151 : vector<8x1xf32>
    %153 = vector.broadcast %152 : vector<8x1xf32> to vector<8x32xf32>
    %154 = arith.subf %148, %153 : vector<8x32xf32>
    %155 = arith.mulf %154, %154 : vector<8x32xf32>
    %cst_58 = arith.constant dense<0.000000e+00> : vector<8xf32>
    %156 = vector.multi_reduction <add>, %155, %cst_58 [1] : vector<8x32xf32> to vector<8xf32>
    %157 = vector.shape_cast %156 : vector<8xf32> to vector<8x1xf32>
    %cst_59 = arith.constant 3.200000e+01 : f32
    %158 = vector.broadcast %cst_59 : f32 to vector<8x1xf32>
    %159 = arith.divf %157, %158 : vector<8x1xf32>
    %160 = vector.broadcast %152 : vector<8x1xf32> to vector<8x32xf32>
    %161 = arith.subf %148, %160 : vector<8x32xf32>
    %cst_60 = arith.constant 9.99999974E-6 : f32
    %162 = vector.broadcast %cst_60 : f32 to vector<8x1xf32>
    %163 = arith.addf %159, %162 : vector<8x1xf32>
    %164 = math.rsqrt %163 : vector<8x1xf32>
    %165 = vector.broadcast %164 : vector<8x1xf32> to vector<8x32xf32>
    %166 = arith.mulf %161, %165 : vector<8x32xf32>
    %167 = vector.broadcast %23 : vector<1x32xf32> to vector<8x32xf32>
    %168 = arith.mulf %166, %167 : vector<8x32xf32>
    %169 = vector.broadcast %25 : vector<1x32xf32> to vector<8x32xf32>
    %170 = arith.addf %168, %169 : vector<8x32xf32>
    %c1_61 = arith.constant 1 : index
    %c0_62 = arith.constant 0 : index
    %c0_63 = arith.constant 0 : index
    %171 = vector.load %arg3[%c1_61, %c0_62, %c0_63] : memref<2x208x128xbf16, #tpu.memory_space<vmem>>, vector<1x32x96xbf16>
    %172 = vector.shape_cast %171 : vector<1x32x96xbf16> to vector<32x96xbf16>
    %c1_64 = arith.constant 1 : index
    %c32_65 = arith.constant 32 : index
    %c0_66 = arith.constant 0 : index
    %173 = vector.load %arg3[%c1_64, %c32_65, %c0_66] : memref<2x208x128xbf16, #tpu.memory_space<vmem>>, vector<1x8x128xbf16>
    %174 = vector.shape_cast %173 : vector<1x8x128xbf16> to vector<8x128xbf16>
    %c1_67 = arith.constant 1 : index
    %c48_68 = arith.constant 48 : index
    %c0_69 = arith.constant 0 : index
    %175 = vector.load %arg3[%c1_67, %c48_68, %c0_69] : memref<2x208x128xbf16, #tpu.memory_space<vmem>>, vector<1x32x128xbf16>
    %176 = vector.shape_cast %175 : vector<1x32x128xbf16> to vector<32x128xbf16>
    %c1_70 = arith.constant 1 : index
    %c80_71 = arith.constant 80 : index
    %c0_72 = arith.constant 0 : index
    %177 = vector.load %arg3[%c1_70, %c80_71, %c0_72] : memref<2x208x128xbf16, #tpu.memory_space<vmem>>, vector<1x128x32xbf16>
    %178 = vector.shape_cast %177 : vector<1x128x32xbf16> to vector<128x32xbf16>
    %c1_73 = arith.constant 1 : index
    %c0_74 = arith.constant 0 : index
    %c0_75 = arith.constant 0 : index
    %179 = vector.load %arg4[%c1_73, %c0_74, %c0_75] : memref<2x8x128xf32, #tpu.memory_space<vmem>>, vector<1x1x96xf32>
    %180 = vector.shape_cast %179 : vector<1x1x96xf32> to vector<1x96xf32>
    %c1_76 = arith.constant 1 : index
    %c1_77 = arith.constant 1 : index
    %c0_78 = arith.constant 0 : index
    %181 = vector.load %arg4[%c1_76, %c1_77, %c0_78] : memref<2x8x128xf32, #tpu.memory_space<vmem>>, vector<1x1x32xf32>
    %182 = vector.shape_cast %181 : vector<1x1x32xf32> to vector<1x32xf32>
    %c1_79 = arith.constant 1 : index
    %c2_80 = arith.constant 2 : index
    %c0_81 = arith.constant 0 : index
    %183 = vector.load %arg4[%c1_79, %c2_80, %c0_81] : memref<2x8x128xf32, #tpu.memory_space<vmem>>, vector<1x1x128xf32>
    %184 = vector.shape_cast %183 : vector<1x1x128xf32> to vector<1x128xf32>
    %c1_82 = arith.constant 1 : index
    %c3_83 = arith.constant 3 : index
    %c0_84 = arith.constant 0 : index
    %185 = vector.load %arg4[%c1_82, %c3_83, %c0_84] : memref<2x8x128xf32, #tpu.memory_space<vmem>>, vector<1x1x32xf32>
    %186 = vector.shape_cast %185 : vector<1x1x32xf32> to vector<1x32xf32>
    %c1_85 = arith.constant 1 : index
    %c4_86 = arith.constant 4 : index
    %c0_87 = arith.constant 0 : index
    %187 = vector.load %arg4[%c1_85, %c4_86, %c0_87] : memref<2x8x128xf32, #tpu.memory_space<vmem>>, vector<1x1x32xf32>
    %188 = vector.shape_cast %187 : vector<1x1x32xf32> to vector<1x32xf32>
    %c1_88 = arith.constant 1 : index
    %c5_89 = arith.constant 5 : index
    %c0_90 = arith.constant 0 : index
    %189 = vector.load %arg4[%c1_88, %c5_89, %c0_90] : memref<2x8x128xf32, #tpu.memory_space<vmem>>, vector<1x1x32xf32>
    %190 = vector.shape_cast %189 : vector<1x1x32xf32> to vector<1x32xf32>
    %c1_91 = arith.constant 1 : index
    %c6_92 = arith.constant 6 : index
    %c0_93 = arith.constant 0 : index
    %191 = vector.load %arg4[%c1_91, %c6_92, %c0_93] : memref<2x8x128xf32, #tpu.memory_space<vmem>>, vector<1x1x32xf32>
    %192 = vector.shape_cast %191 : vector<1x1x32xf32> to vector<1x32xf32>
    %c1_94 = arith.constant 1 : index
    %c7_95 = arith.constant 7 : index
    %c0_96 = arith.constant 0 : index
    %193 = vector.load %arg4[%c1_94, %c7_95, %c0_96] : memref<2x8x128xf32, #tpu.memory_space<vmem>>, vector<1x1x32xf32>
    %194 = vector.shape_cast %193 : vector<1x1x32xf32> to vector<1x32xf32>
    %195 = arith.truncf %170 : vector<8x32xf32> to vector<8x32xbf16>
    %cst_97 = arith.constant dense<0.000000e+00> : vector<8x96xf32>
    %196 = tpu.matmul %195, %172, %cst_97 {dimension_numbers = #tpu.dot_dimension_numbers<[1], [0], [0], [1], [0, 0, 1, 1], [], []>} : vector<8x32xbf16>, vector<32x96xbf16>, vector<8x96xf32> -> vector<8x96xf32>
    %197 = vector.broadcast %180 : vector<1x96xf32> to vector<8x96xf32>
    %198 = arith.addf %196, %197 : vector<8x96xf32>
    %199 = arith.truncf %198 : vector<8x96xf32> to vector<8x96xbf16>
    %200 = vector.extract_strided_slice %199 {offsets = [0, 0], sizes = [8, 32], strides = [1, 1]} : vector<8x96xbf16> to vector<8x32xbf16>
    %201 = vector.extract_strided_slice %199 {offsets = [0, 32], sizes = [8, 32], strides = [1, 1]} : vector<8x96xbf16> to vector<8x32xbf16>
    %202 = vector.extract_strided_slice %199 {offsets = [0, 64], sizes = [8, 32], strides = [1, 1]} : vector<8x96xbf16> to vector<8x32xbf16>
    %203 = vector.extract_strided_slice %200 {offsets = [0, 0], sizes = [8, 8], strides = [1, 1]} : vector<8x32xbf16> to vector<8x8xbf16>
    %204 = vector.extract_strided_slice %201 {offsets = [0, 0], sizes = [8, 8], strides = [1, 1]} : vector<8x32xbf16> to vector<8x8xbf16>
    %cst_98 = arith.constant dense<0.000000e+00> : vector<8x8xf32>
    %205 = tpu.matmul %203, %204, %cst_98 {dimension_numbers = #tpu.dot_dimension_numbers<[1], [1], [0], [0], [0, 0, 1, 0], [], []>} : vector<8x8xbf16>, vector<8x8xbf16>, vector<8x8xf32> -> vector<8x8xf32>
    %cst_99 = arith.constant dense<0xFF800000> : vector<8xf32>
    %206 = vector.multi_reduction <maximumf>, %205, %cst_99 [1] : vector<8x8xf32> to vector<8xf32>
    %207 = vector.shape_cast %206 : vector<8xf32> to vector<8x1xf32>
    %208 = vector.broadcast %207 : vector<8x1xf32> to vector<8x8xf32>
    %209 = arith.subf %205, %208 : vector<8x8xf32>
    %210 = math.exp %209 : vector<8x8xf32>
    %cst_100 = arith.constant dense<0.000000e+00> : vector<8xf32>
    %211 = vector.multi_reduction <add>, %210, %cst_100 [1] : vector<8x8xf32> to vector<8xf32>
    %212 = vector.shape_cast %211 : vector<8xf32> to vector<8x1xf32>
    %213 = tpu.reciprocal %212 {approx = true} : vector<8x1xf32> -> vector<8x1xf32>
    %214 = vector.broadcast %213 : vector<8x1xf32> to vector<8x8xf32>
    %215 = arith.mulf %210, %214 : vector<8x8xf32>
    %216 = arith.truncf %215 : vector<8x8xf32> to vector<8x8xbf16>
    %217 = vector.extract_strided_slice %202 {offsets = [0, 0], sizes = [8, 8], strides = [1, 1]} : vector<8x32xbf16> to vector<8x8xbf16>
    %cst_101 = arith.constant dense<0.000000e+00> : vector<8x8xf32>
    %218 = tpu.matmul %216, %217, %cst_101 {dimension_numbers = #tpu.dot_dimension_numbers<[1], [0], [0], [1], [0, 0, 1, 1], [], []>} : vector<8x8xbf16>, vector<8x8xbf16>, vector<8x8xf32> -> vector<8x8xf32>
    %219 = vector.extract_strided_slice %174 {offsets = [0, 0], sizes = [8, 32], strides = [1, 1]} : vector<8x128xbf16> to vector<8x32xbf16>
    %220 = arith.truncf %218 : vector<8x8xf32> to vector<8x8xbf16>
    %cst_102 = arith.constant dense<0.000000e+00> : vector<8x32xf32>
    %221 = tpu.matmul %220, %219, %cst_102 {dimension_numbers = #tpu.dot_dimension_numbers<[1], [0], [0], [1], [0, 0, 1, 1], [], []>} : vector<8x8xbf16>, vector<8x32xbf16>, vector<8x32xf32> -> vector<8x32xf32>
    %222 = vector.extract_strided_slice %200 {offsets = [0, 8], sizes = [8, 8], strides = [1, 1]} : vector<8x32xbf16> to vector<8x8xbf16>
    %223 = vector.extract_strided_slice %201 {offsets = [0, 8], sizes = [8, 8], strides = [1, 1]} : vector<8x32xbf16> to vector<8x8xbf16>
    %cst_103 = arith.constant dense<0.000000e+00> : vector<8x8xf32>
    %224 = tpu.matmul %222, %223, %cst_103 {dimension_numbers = #tpu.dot_dimension_numbers<[1], [1], [0], [0], [0, 0, 1, 0], [], []>} : vector<8x8xbf16>, vector<8x8xbf16>, vector<8x8xf32> -> vector<8x8xf32>
    %cst_104 = arith.constant dense<0xFF800000> : vector<8xf32>
    %225 = vector.multi_reduction <maximumf>, %224, %cst_104 [1] : vector<8x8xf32> to vector<8xf32>
    %226 = vector.shape_cast %225 : vector<8xf32> to vector<8x1xf32>
    %227 = vector.broadcast %226 : vector<8x1xf32> to vector<8x8xf32>
    %228 = arith.subf %224, %227 : vector<8x8xf32>
    %229 = math.exp %228 : vector<8x8xf32>
    %cst_105 = arith.constant dense<0.000000e+00> : vector<8xf32>
    %230 = vector.multi_reduction <add>, %229, %cst_105 [1] : vector<8x8xf32> to vector<8xf32>
    %231 = vector.shape_cast %230 : vector<8xf32> to vector<8x1xf32>
    %232 = tpu.reciprocal %231 {approx = true} : vector<8x1xf32> -> vector<8x1xf32>
    %233 = vector.broadcast %232 : vector<8x1xf32> to vector<8x8xf32>
    %234 = arith.mulf %229, %233 : vector<8x8xf32>
    %235 = arith.truncf %234 : vector<8x8xf32> to vector<8x8xbf16>
    %236 = vector.extract_strided_slice %202 {offsets = [0, 8], sizes = [8, 8], strides = [1, 1]} : vector<8x32xbf16> to vector<8x8xbf16>
    %cst_106 = arith.constant dense<0.000000e+00> : vector<8x8xf32>
    %237 = tpu.matmul %235, %236, %cst_106 {dimension_numbers = #tpu.dot_dimension_numbers<[1], [0], [0], [1], [0, 0, 1, 1], [], []>} : vector<8x8xbf16>, vector<8x8xbf16>, vector<8x8xf32> -> vector<8x8xf32>
    %238 = vector.extract_strided_slice %174 {offsets = [0, 32], sizes = [8, 32], strides = [1, 1]} : vector<8x128xbf16> to vector<8x32xbf16>
    %239 = arith.truncf %237 : vector<8x8xf32> to vector<8x8xbf16>
    %cst_107 = arith.constant dense<0.000000e+00> : vector<8x32xf32>
    %240 = tpu.matmul %239, %238, %cst_107 {dimension_numbers = #tpu.dot_dimension_numbers<[1], [0], [0], [1], [0, 0, 1, 1], [], []>} : vector<8x8xbf16>, vector<8x32xbf16>, vector<8x32xf32> -> vector<8x32xf32>
    %241 = arith.addf %221, %240 : vector<8x32xf32>
    %242 = vector.extract_strided_slice %200 {offsets = [0, 16], sizes = [8, 8], strides = [1, 1]} : vector<8x32xbf16> to vector<8x8xbf16>
    %243 = vector.extract_strided_slice %201 {offsets = [0, 16], sizes = [8, 8], strides = [1, 1]} : vector<8x32xbf16> to vector<8x8xbf16>
    %cst_108 = arith.constant dense<0.000000e+00> : vector<8x8xf32>
    %244 = tpu.matmul %242, %243, %cst_108 {dimension_numbers = #tpu.dot_dimension_numbers<[1], [1], [0], [0], [0, 0, 1, 0], [], []>} : vector<8x8xbf16>, vector<8x8xbf16>, vector<8x8xf32> -> vector<8x8xf32>
    %cst_109 = arith.constant dense<0xFF800000> : vector<8xf32>
    %245 = vector.multi_reduction <maximumf>, %244, %cst_109 [1] : vector<8x8xf32> to vector<8xf32>
    %246 = vector.shape_cast %245 : vector<8xf32> to vector<8x1xf32>
    %247 = vector.broadcast %246 : vector<8x1xf32> to vector<8x8xf32>
    %248 = arith.subf %244, %247 : vector<8x8xf32>
    %249 = math.exp %248 : vector<8x8xf32>
    %cst_110 = arith.constant dense<0.000000e+00> : vector<8xf32>
    %250 = vector.multi_reduction <add>, %249, %cst_110 [1] : vector<8x8xf32> to vector<8xf32>
    %251 = vector.shape_cast %250 : vector<8xf32> to vector<8x1xf32>
    %252 = tpu.reciprocal %251 {approx = true} : vector<8x1xf32> -> vector<8x1xf32>
    %253 = vector.broadcast %252 : vector<8x1xf32> to vector<8x8xf32>
    %254 = arith.mulf %249, %253 : vector<8x8xf32>
    %255 = arith.truncf %254 : vector<8x8xf32> to vector<8x8xbf16>
    %256 = vector.extract_strided_slice %202 {offsets = [0, 16], sizes = [8, 8], strides = [1, 1]} : vector<8x32xbf16> to vector<8x8xbf16>
    %cst_111 = arith.constant dense<0.000000e+00> : vector<8x8xf32>
    %257 = tpu.matmul %255, %256, %cst_111 {dimension_numbers = #tpu.dot_dimension_numbers<[1], [0], [0], [1], [0, 0, 1, 1], [], []>} : vector<8x8xbf16>, vector<8x8xbf16>, vector<8x8xf32> -> vector<8x8xf32>
    %258 = vector.extract_strided_slice %174 {offsets = [0, 64], sizes = [8, 32], strides = [1, 1]} : vector<8x128xbf16> to vector<8x32xbf16>
    %259 = arith.truncf %257 : vector<8x8xf32> to vector<8x8xbf16>
    %cst_112 = arith.constant dense<0.000000e+00> : vector<8x32xf32>
    %260 = tpu.matmul %259, %258, %cst_112 {dimension_numbers = #tpu.dot_dimension_numbers<[1], [0], [0], [1], [0, 0, 1, 1], [], []>} : vector<8x8xbf16>, vector<8x32xbf16>, vector<8x32xf32> -> vector<8x32xf32>
    %261 = arith.addf %241, %260 : vector<8x32xf32>
    %262 = vector.extract_strided_slice %200 {offsets = [0, 24], sizes = [8, 8], strides = [1, 1]} : vector<8x32xbf16> to vector<8x8xbf16>
    %263 = vector.extract_strided_slice %201 {offsets = [0, 24], sizes = [8, 8], strides = [1, 1]} : vector<8x32xbf16> to vector<8x8xbf16>
    %cst_113 = arith.constant dense<0.000000e+00> : vector<8x8xf32>
    %264 = tpu.matmul %262, %263, %cst_113 {dimension_numbers = #tpu.dot_dimension_numbers<[1], [1], [0], [0], [0, 0, 1, 0], [], []>} : vector<8x8xbf16>, vector<8x8xbf16>, vector<8x8xf32> -> vector<8x8xf32>
    %cst_114 = arith.constant dense<0xFF800000> : vector<8xf32>
    %265 = vector.multi_reduction <maximumf>, %264, %cst_114 [1] : vector<8x8xf32> to vector<8xf32>
    %266 = vector.shape_cast %265 : vector<8xf32> to vector<8x1xf32>
    %267 = vector.broadcast %266 : vector<8x1xf32> to vector<8x8xf32>
    %268 = arith.subf %264, %267 : vector<8x8xf32>
    %269 = math.exp %268 : vector<8x8xf32>
    %cst_115 = arith.constant dense<0.000000e+00> : vector<8xf32>
    %270 = vector.multi_reduction <add>, %269, %cst_115 [1] : vector<8x8xf32> to vector<8xf32>
    %271 = vector.shape_cast %270 : vector<8xf32> to vector<8x1xf32>
    %272 = tpu.reciprocal %271 {approx = true} : vector<8x1xf32> -> vector<8x1xf32>
    %273 = vector.broadcast %272 : vector<8x1xf32> to vector<8x8xf32>
    %274 = arith.mulf %269, %273 : vector<8x8xf32>
    %275 = arith.truncf %274 : vector<8x8xf32> to vector<8x8xbf16>
    %276 = vector.extract_strided_slice %202 {offsets = [0, 24], sizes = [8, 8], strides = [1, 1]} : vector<8x32xbf16> to vector<8x8xbf16>
    %cst_116 = arith.constant dense<0.000000e+00> : vector<8x8xf32>
    %277 = tpu.matmul %275, %276, %cst_116 {dimension_numbers = #tpu.dot_dimension_numbers<[1], [0], [0], [1], [0, 0, 1, 1], [], []>} : vector<8x8xbf16>, vector<8x8xbf16>, vector<8x8xf32> -> vector<8x8xf32>
    %278 = vector.extract_strided_slice %174 {offsets = [0, 96], sizes = [8, 32], strides = [1, 1]} : vector<8x128xbf16> to vector<8x32xbf16>
    %279 = arith.truncf %277 : vector<8x8xf32> to vector<8x8xbf16>
    %cst_117 = arith.constant dense<0.000000e+00> : vector<8x32xf32>
    %280 = tpu.matmul %279, %278, %cst_117 {dimension_numbers = #tpu.dot_dimension_numbers<[1], [0], [0], [1], [0, 0, 1, 1], [], []>} : vector<8x8xbf16>, vector<8x32xbf16>, vector<8x32xf32> -> vector<8x32xf32>
    %281 = arith.addf %261, %280 : vector<8x32xf32>
    %282 = vector.broadcast %182 : vector<1x32xf32> to vector<8x32xf32>
    %283 = arith.addf %281, %282 : vector<8x32xf32>
    %284 = arith.addf %283, %170 : vector<8x32xf32>
    %cst_118 = arith.constant dense<0.000000e+00> : vector<8xf32>
    %285 = vector.multi_reduction <add>, %284, %cst_118 [1] : vector<8x32xf32> to vector<8xf32>
    %286 = vector.shape_cast %285 : vector<8xf32> to vector<8x1xf32>
    %cst_119 = arith.constant 3.200000e+01 : f32
    %287 = vector.broadcast %cst_119 : f32 to vector<8x1xf32>
    %288 = arith.divf %286, %287 : vector<8x1xf32>
    %289 = vector.broadcast %288 : vector<8x1xf32> to vector<8x32xf32>
    %290 = arith.subf %284, %289 : vector<8x32xf32>
    %291 = arith.mulf %290, %290 : vector<8x32xf32>
    %cst_120 = arith.constant dense<0.000000e+00> : vector<8xf32>
    %292 = vector.multi_reduction <add>, %291, %cst_120 [1] : vector<8x32xf32> to vector<8xf32>
    %293 = vector.shape_cast %292 : vector<8xf32> to vector<8x1xf32>
    %cst_121 = arith.constant 3.200000e+01 : f32
    %294 = vector.broadcast %cst_121 : f32 to vector<8x1xf32>
    %295 = arith.divf %293, %294 : vector<8x1xf32>
    %296 = vector.broadcast %288 : vector<8x1xf32> to vector<8x32xf32>
    %297 = arith.subf %284, %296 : vector<8x32xf32>
    %cst_122 = arith.constant 9.99999974E-6 : f32
    %298 = vector.broadcast %cst_122 : f32 to vector<8x1xf32>
    %299 = arith.addf %295, %298 : vector<8x1xf32>
    %300 = math.rsqrt %299 : vector<8x1xf32>
    %301 = vector.broadcast %300 : vector<8x1xf32> to vector<8x32xf32>
    %302 = arith.mulf %297, %301 : vector<8x32xf32>
    %303 = vector.broadcast %188 : vector<1x32xf32> to vector<8x32xf32>
    %304 = arith.mulf %302, %303 : vector<8x32xf32>
    %305 = vector.broadcast %190 : vector<1x32xf32> to vector<8x32xf32>
    %306 = arith.addf %304, %305 : vector<8x32xf32>
    %307 = arith.truncf %306 : vector<8x32xf32> to vector<8x32xbf16>
    %cst_123 = arith.constant dense<0.000000e+00> : vector<8x128xf32>
    %308 = tpu.matmul %307, %176, %cst_123 {dimension_numbers = #tpu.dot_dimension_numbers<[1], [0], [0], [1], [0, 0, 1, 1], [], []>} : vector<8x32xbf16>, vector<32x128xbf16>, vector<8x128xf32> -> vector<8x128xf32>
    %309 = vector.broadcast %184 : vector<1x128xf32> to vector<8x128xf32>
    %310 = arith.addf %308, %309 : vector<8x128xf32>
    %cst_124 = arith.constant 0.000000e+00 : f32
    %311 = vector.broadcast %cst_124 : f32 to vector<8x128xf32>
    %312 = arith.maximumf %310, %311 : vector<8x128xf32>
    %313 = arith.truncf %312 : vector<8x128xf32> to vector<8x128xbf16>
    %cst_125 = arith.constant dense<0.000000e+00> : vector<8x32xf32>
    %314 = tpu.matmul %313, %178, %cst_125 {dimension_numbers = #tpu.dot_dimension_numbers<[1], [0], [0], [1], [0, 0, 1, 1], [], []>} : vector<8x128xbf16>, vector<128x32xbf16>, vector<8x32xf32> -> vector<8x32xf32>
    %315 = vector.broadcast %186 : vector<1x32xf32> to vector<8x32xf32>
    %316 = arith.addf %314, %315 : vector<8x32xf32>
    %317 = arith.addf %316, %306 : vector<8x32xf32>
    %cst_126 = arith.constant dense<0.000000e+00> : vector<8xf32>
    %318 = vector.multi_reduction <add>, %317, %cst_126 [1] : vector<8x32xf32> to vector<8xf32>
    %319 = vector.shape_cast %318 : vector<8xf32> to vector<8x1xf32>
    %cst_127 = arith.constant 3.200000e+01 : f32
    %320 = vector.broadcast %cst_127 : f32 to vector<8x1xf32>
    %321 = arith.divf %319, %320 : vector<8x1xf32>
    %322 = vector.broadcast %321 : vector<8x1xf32> to vector<8x32xf32>
    %323 = arith.subf %317, %322 : vector<8x32xf32>
    %324 = arith.mulf %323, %323 : vector<8x32xf32>
    %cst_128 = arith.constant dense<0.000000e+00> : vector<8xf32>
    %325 = vector.multi_reduction <add>, %324, %cst_128 [1] : vector<8x32xf32> to vector<8xf32>
    %326 = vector.shape_cast %325 : vector<8xf32> to vector<8x1xf32>
    %cst_129 = arith.constant 3.200000e+01 : f32
    %327 = vector.broadcast %cst_129 : f32 to vector<8x1xf32>
    %328 = arith.divf %326, %327 : vector<8x1xf32>
    %329 = vector.broadcast %321 : vector<8x1xf32> to vector<8x32xf32>
    %330 = arith.subf %317, %329 : vector<8x32xf32>
    %cst_130 = arith.constant 9.99999974E-6 : f32
    %331 = vector.broadcast %cst_130 : f32 to vector<8x1xf32>
    %332 = arith.addf %328, %331 : vector<8x1xf32>
    %333 = math.rsqrt %332 : vector<8x1xf32>
    %334 = vector.broadcast %333 : vector<8x1xf32> to vector<8x32xf32>
    %335 = arith.mulf %330, %334 : vector<8x32xf32>
    %336 = vector.broadcast %192 : vector<1x32xf32> to vector<8x32xf32>
    %337 = arith.mulf %335, %336 : vector<8x32xf32>
    %338 = vector.broadcast %194 : vector<1x32xf32> to vector<8x32xf32>
    %339 = arith.addf %337, %338 : vector<8x32xf32>
    %340 = arith.truncf %339 : vector<8x32xf32> to vector<8x32xbf16>
    %c0_131 = arith.constant 0 : index
    %c0_132 = arith.constant 0 : index
    %c0_133 = arith.constant 0 : index
    %341 = vector.load %arg2[%c0_131, %c0_132, %c0_133] : memref<1x8x32xf32, #tpu.memory_space<vmem>>, vector<1x8x32xf32>
    %342 = vector.shape_cast %341 : vector<1x8x32xf32> to vector<8x32xf32>
    %343 = tpu.iota {dimensions = array<i32: 0>} : vector<8x8xi32>
    %344 = tpu.iota {dimensions = array<i32: 1>} : vector<8x8xi32>
    %345 = arith.cmpi sge, %343, %344 : vector<8x8xi32>
    %c0_134 = arith.constant 0 : index
    %c0_135 = arith.constant 0 : index
    %c0_136 = arith.constant 0 : index
    %346 = vector.load %arg5[%c0_134, %c0_135, %c0_136] : memref<2x288x128xbf16, #tpu.memory_space<vmem>>, vector<1x32x96xbf16>
    %347 = vector.shape_cast %346 : vector<1x32x96xbf16> to vector<32x96xbf16>
    %c0_137 = arith.constant 0 : index
    %c32_138 = arith.constant 32 : index
    %c0_139 = arith.constant 0 : index
    %348 = vector.load %arg5[%c0_137, %c32_138, %c0_139] : memref<2x288x128xbf16, #tpu.memory_space<vmem>>, vector<1x8x128xbf16>
    %349 = vector.shape_cast %348 : vector<1x8x128xbf16> to vector<8x128xbf16>
    %c0_140 = arith.constant 0 : index
    %c48_141 = arith.constant 48 : index
    %c0_142 = arith.constant 0 : index
    %350 = vector.load %arg5[%c0_140, %c48_141, %c0_142] : memref<2x288x128xbf16, #tpu.memory_space<vmem>>, vector<1x32x32xbf16>
    %351 = vector.shape_cast %350 : vector<1x32x32xbf16> to vector<32x32xbf16>
    %c0_143 = arith.constant 0 : index
    %c80_144 = arith.constant 80 : index
    %c0_145 = arith.constant 0 : index
    %352 = vector.load %arg5[%c0_143, %c80_144, %c0_145] : memref<2x288x128xbf16, #tpu.memory_space<vmem>>, vector<1x32x64xbf16>
    %353 = vector.shape_cast %352 : vector<1x32x64xbf16> to vector<32x64xbf16>
    %c0_146 = arith.constant 0 : index
    %c112 = arith.constant 112 : index
    %c0_147 = arith.constant 0 : index
    %354 = vector.load %arg5[%c0_146, %c112, %c0_147] : memref<2x288x128xbf16, #tpu.memory_space<vmem>>, vector<1x8x128xbf16>
    %355 = vector.shape_cast %354 : vector<1x8x128xbf16> to vector<8x128xbf16>
    %c0_148 = arith.constant 0 : index
    %c128 = arith.constant 128 : index
    %c0_149 = arith.constant 0 : index
    %356 = vector.load %arg5[%c0_148, %c128, %c0_149] : memref<2x288x128xbf16, #tpu.memory_space<vmem>>, vector<1x32x128xbf16>
    %357 = vector.shape_cast %356 : vector<1x32x128xbf16> to vector<32x128xbf16>
    %c0_150 = arith.constant 0 : index
    %c160 = arith.constant 160 : index
    %c0_151 = arith.constant 0 : index
    %358 = vector.load %arg5[%c0_150, %c160, %c0_151] : memref<2x288x128xbf16, #tpu.memory_space<vmem>>, vector<1x128x32xbf16>
    %359 = vector.shape_cast %358 : vector<1x128x32xbf16> to vector<128x32xbf16>
    %c0_152 = arith.constant 0 : index
    %c0_153 = arith.constant 0 : index
    %c0_154 = arith.constant 0 : index
    %360 = vector.load %arg6[%c0_152, %c0_153, %c0_154] : memref<2x16x128xf32, #tpu.memory_space<vmem>>, vector<1x1x96xf32>
    %361 = vector.shape_cast %360 : vector<1x1x96xf32> to vector<1x96xf32>
    %c0_155 = arith.constant 0 : index
    %c1_156 = arith.constant 1 : index
    %c0_157 = arith.constant 0 : index
    %362 = vector.load %arg6[%c0_155, %c1_156, %c0_157] : memref<2x16x128xf32, #tpu.memory_space<vmem>>, vector<1x1x32xf32>
    %363 = vector.shape_cast %362 : vector<1x1x32xf32> to vector<1x32xf32>
    %c0_158 = arith.constant 0 : index
    %c2_159 = arith.constant 2 : index
    %c0_160 = arith.constant 0 : index
    %364 = vector.load %arg6[%c0_158, %c2_159, %c0_160] : memref<2x16x128xf32, #tpu.memory_space<vmem>>, vector<1x1x32xf32>
    %365 = vector.shape_cast %364 : vector<1x1x32xf32> to vector<1x32xf32>
    %c0_161 = arith.constant 0 : index
    %c3_162 = arith.constant 3 : index
    %c0_163 = arith.constant 0 : index
    %366 = vector.load %arg6[%c0_161, %c3_162, %c0_163] : memref<2x16x128xf32, #tpu.memory_space<vmem>>, vector<1x1x64xf32>
    %367 = vector.shape_cast %366 : vector<1x1x64xf32> to vector<1x64xf32>
    %c0_164 = arith.constant 0 : index
    %c4_165 = arith.constant 4 : index
    %c0_166 = arith.constant 0 : index
    %368 = vector.load %arg6[%c0_164, %c4_165, %c0_166] : memref<2x16x128xf32, #tpu.memory_space<vmem>>, vector<1x1x32xf32>
    %369 = vector.shape_cast %368 : vector<1x1x32xf32> to vector<1x32xf32>
    %c0_167 = arith.constant 0 : index
    %c5_168 = arith.constant 5 : index
    %c0_169 = arith.constant 0 : index
    %370 = vector.load %arg6[%c0_167, %c5_168, %c0_169] : memref<2x16x128xf32, #tpu.memory_space<vmem>>, vector<1x1x128xf32>
    %371 = vector.shape_cast %370 : vector<1x1x128xf32> to vector<1x128xf32>
    %c0_170 = arith.constant 0 : index
    %c6_171 = arith.constant 6 : index
    %c0_172 = arith.constant 0 : index
    %372 = vector.load %arg6[%c0_170, %c6_171, %c0_172] : memref<2x16x128xf32, #tpu.memory_space<vmem>>, vector<1x1x32xf32>
    %373 = vector.shape_cast %372 : vector<1x1x32xf32> to vector<1x32xf32>
    %c0_173 = arith.constant 0 : index
    %c7_174 = arith.constant 7 : index
    %c0_175 = arith.constant 0 : index
    %374 = vector.load %arg6[%c0_173, %c7_174, %c0_175] : memref<2x16x128xf32, #tpu.memory_space<vmem>>, vector<1x1x32xf32>
    %375 = vector.shape_cast %374 : vector<1x1x32xf32> to vector<1x32xf32>
    %c0_176 = arith.constant 0 : index
    %c8 = arith.constant 8 : index
    %c0_177 = arith.constant 0 : index
    %376 = vector.load %arg6[%c0_176, %c8, %c0_177] : memref<2x16x128xf32, #tpu.memory_space<vmem>>, vector<1x1x32xf32>
    %377 = vector.shape_cast %376 : vector<1x1x32xf32> to vector<1x32xf32>
    %c0_178 = arith.constant 0 : index
    %c9 = arith.constant 9 : index
    %c0_179 = arith.constant 0 : index
    %378 = vector.load %arg6[%c0_178, %c9, %c0_179] : memref<2x16x128xf32, #tpu.memory_space<vmem>>, vector<1x1x32xf32>
    %379 = vector.shape_cast %378 : vector<1x1x32xf32> to vector<1x32xf32>
    %c0_180 = arith.constant 0 : index
    %c10 = arith.constant 10 : index
    %c0_181 = arith.constant 0 : index
    %380 = vector.load %arg6[%c0_180, %c10, %c0_181] : memref<2x16x128xf32, #tpu.memory_space<vmem>>, vector<1x1x32xf32>
    %381 = vector.shape_cast %380 : vector<1x1x32xf32> to vector<1x32xf32>
    %c0_182 = arith.constant 0 : index
    %c11 = arith.constant 11 : index
    %c0_183 = arith.constant 0 : index
    %382 = vector.load %arg6[%c0_182, %c11, %c0_183] : memref<2x16x128xf32, #tpu.memory_space<vmem>>, vector<1x1x32xf32>
    %383 = vector.shape_cast %382 : vector<1x1x32xf32> to vector<1x32xf32>
    %c0_184 = arith.constant 0 : index
    %c12 = arith.constant 12 : index
    %c0_185 = arith.constant 0 : index
    %384 = vector.load %arg6[%c0_184, %c12, %c0_185] : memref<2x16x128xf32, #tpu.memory_space<vmem>>, vector<1x1x32xf32>
    %385 = vector.shape_cast %384 : vector<1x1x32xf32> to vector<1x32xf32>
    %386 = arith.truncf %342 : vector<8x32xf32> to vector<8x32xbf16>
    %cst_186 = arith.constant dense<0.000000e+00> : vector<8x96xf32>
    %387 = tpu.matmul %386, %347, %cst_186 {dimension_numbers = #tpu.dot_dimension_numbers<[1], [0], [0], [1], [0, 0, 1, 1], [], []>} : vector<8x32xbf16>, vector<32x96xbf16>, vector<8x96xf32> -> vector<8x96xf32>
    %388 = vector.broadcast %361 : vector<1x96xf32> to vector<8x96xf32>
    %389 = arith.addf %387, %388 : vector<8x96xf32>
    %390 = arith.truncf %389 : vector<8x96xf32> to vector<8x96xbf16>
    %391 = vector.extract_strided_slice %390 {offsets = [0, 0], sizes = [8, 32], strides = [1, 1]} : vector<8x96xbf16> to vector<8x32xbf16>
    %392 = vector.extract_strided_slice %390 {offsets = [0, 32], sizes = [8, 32], strides = [1, 1]} : vector<8x96xbf16> to vector<8x32xbf16>
    %393 = vector.extract_strided_slice %390 {offsets = [0, 64], sizes = [8, 32], strides = [1, 1]} : vector<8x96xbf16> to vector<8x32xbf16>
    %394 = vector.extract_strided_slice %391 {offsets = [0, 0], sizes = [8, 8], strides = [1, 1]} : vector<8x32xbf16> to vector<8x8xbf16>
    %395 = vector.extract_strided_slice %392 {offsets = [0, 0], sizes = [8, 8], strides = [1, 1]} : vector<8x32xbf16> to vector<8x8xbf16>
    %cst_187 = arith.constant dense<0.000000e+00> : vector<8x8xf32>
    %396 = tpu.matmul %394, %395, %cst_187 {dimension_numbers = #tpu.dot_dimension_numbers<[1], [1], [0], [0], [0, 0, 1, 0], [], []>} : vector<8x8xbf16>, vector<8x8xbf16>, vector<8x8xf32> -> vector<8x8xf32>
    %cst_188 = arith.constant -1.000000e+09 : f32
    %397 = vector.broadcast %cst_188 : f32 to vector<8x8xf32>
    %398 = arith.select %345, %396, %397 : vector<8x8xi1>, vector<8x8xf32>
    %cst_189 = arith.constant dense<0xFF800000> : vector<8xf32>
    %399 = vector.multi_reduction <maximumf>, %398, %cst_189 [1] : vector<8x8xf32> to vector<8xf32>
    %400 = vector.shape_cast %399 : vector<8xf32> to vector<8x1xf32>
    %401 = vector.broadcast %400 : vector<8x1xf32> to vector<8x8xf32>
    %402 = arith.subf %398, %401 : vector<8x8xf32>
    %403 = math.exp %402 : vector<8x8xf32>
    %cst_190 = arith.constant dense<0.000000e+00> : vector<8xf32>
    %404 = vector.multi_reduction <add>, %403, %cst_190 [1] : vector<8x8xf32> to vector<8xf32>
    %405 = vector.shape_cast %404 : vector<8xf32> to vector<8x1xf32>
    %406 = tpu.reciprocal %405 {approx = true} : vector<8x1xf32> -> vector<8x1xf32>
    %407 = vector.broadcast %406 : vector<8x1xf32> to vector<8x8xf32>
    %408 = arith.mulf %403, %407 : vector<8x8xf32>
    %409 = arith.truncf %408 : vector<8x8xf32> to vector<8x8xbf16>
    %410 = vector.extract_strided_slice %393 {offsets = [0, 0], sizes = [8, 8], strides = [1, 1]} : vector<8x32xbf16> to vector<8x8xbf16>
    %cst_191 = arith.constant dense<0.000000e+00> : vector<8x8xf32>
    %411 = tpu.matmul %409, %410, %cst_191 {dimension_numbers = #tpu.dot_dimension_numbers<[1], [0], [0], [1], [0, 0, 1, 1], [], []>} : vector<8x8xbf16>, vector<8x8xbf16>, vector<8x8xf32> -> vector<8x8xf32>
    %412 = vector.extract_strided_slice %349 {offsets = [0, 0], sizes = [8, 32], strides = [1, 1]} : vector<8x128xbf16> to vector<8x32xbf16>
    %413 = arith.truncf %411 : vector<8x8xf32> to vector<8x8xbf16>
    %cst_192 = arith.constant dense<0.000000e+00> : vector<8x32xf32>
    %414 = tpu.matmul %413, %412, %cst_192 {dimension_numbers = #tpu.dot_dimension_numbers<[1], [0], [0], [1], [0, 0, 1, 1], [], []>} : vector<8x8xbf16>, vector<8x32xbf16>, vector<8x32xf32> -> vector<8x32xf32>
    %415 = vector.extract_strided_slice %391 {offsets = [0, 8], sizes = [8, 8], strides = [1, 1]} : vector<8x32xbf16> to vector<8x8xbf16>
    %416 = vector.extract_strided_slice %392 {offsets = [0, 8], sizes = [8, 8], strides = [1, 1]} : vector<8x32xbf16> to vector<8x8xbf16>
    %cst_193 = arith.constant dense<0.000000e+00> : vector<8x8xf32>
    %417 = tpu.matmul %415, %416, %cst_193 {dimension_numbers = #tpu.dot_dimension_numbers<[1], [1], [0], [0], [0, 0, 1, 0], [], []>} : vector<8x8xbf16>, vector<8x8xbf16>, vector<8x8xf32> -> vector<8x8xf32>
    %cst_194 = arith.constant -1.000000e+09 : f32
    %418 = vector.broadcast %cst_194 : f32 to vector<8x8xf32>
    %419 = arith.select %345, %417, %418 : vector<8x8xi1>, vector<8x8xf32>
    %cst_195 = arith.constant dense<0xFF800000> : vector<8xf32>
    %420 = vector.multi_reduction <maximumf>, %419, %cst_195 [1] : vector<8x8xf32> to vector<8xf32>
    %421 = vector.shape_cast %420 : vector<8xf32> to vector<8x1xf32>
    %422 = vector.broadcast %421 : vector<8x1xf32> to vector<8x8xf32>
    %423 = arith.subf %419, %422 : vector<8x8xf32>
    %424 = math.exp %423 : vector<8x8xf32>
    %cst_196 = arith.constant dense<0.000000e+00> : vector<8xf32>
    %425 = vector.multi_reduction <add>, %424, %cst_196 [1] : vector<8x8xf32> to vector<8xf32>
    %426 = vector.shape_cast %425 : vector<8xf32> to vector<8x1xf32>
    %427 = tpu.reciprocal %426 {approx = true} : vector<8x1xf32> -> vector<8x1xf32>
    %428 = vector.broadcast %427 : vector<8x1xf32> to vector<8x8xf32>
    %429 = arith.mulf %424, %428 : vector<8x8xf32>
    %430 = arith.truncf %429 : vector<8x8xf32> to vector<8x8xbf16>
    %431 = vector.extract_strided_slice %393 {offsets = [0, 8], sizes = [8, 8], strides = [1, 1]} : vector<8x32xbf16> to vector<8x8xbf16>
    %cst_197 = arith.constant dense<0.000000e+00> : vector<8x8xf32>
    %432 = tpu.matmul %430, %431, %cst_197 {dimension_numbers = #tpu.dot_dimension_numbers<[1], [0], [0], [1], [0, 0, 1, 1], [], []>} : vector<8x8xbf16>, vector<8x8xbf16>, vector<8x8xf32> -> vector<8x8xf32>
    %433 = vector.extract_strided_slice %349 {offsets = [0, 32], sizes = [8, 32], strides = [1, 1]} : vector<8x128xbf16> to vector<8x32xbf16>
    %434 = arith.truncf %432 : vector<8x8xf32> to vector<8x8xbf16>
    %cst_198 = arith.constant dense<0.000000e+00> : vector<8x32xf32>
    %435 = tpu.matmul %434, %433, %cst_198 {dimension_numbers = #tpu.dot_dimension_numbers<[1], [0], [0], [1], [0, 0, 1, 1], [], []>} : vector<8x8xbf16>, vector<8x32xbf16>, vector<8x32xf32> -> vector<8x32xf32>
    %436 = arith.addf %414, %435 : vector<8x32xf32>
    %437 = vector.extract_strided_slice %391 {offsets = [0, 16], sizes = [8, 8], strides = [1, 1]} : vector<8x32xbf16> to vector<8x8xbf16>
    %438 = vector.extract_strided_slice %392 {offsets = [0, 16], sizes = [8, 8], strides = [1, 1]} : vector<8x32xbf16> to vector<8x8xbf16>
    %cst_199 = arith.constant dense<0.000000e+00> : vector<8x8xf32>
    %439 = tpu.matmul %437, %438, %cst_199 {dimension_numbers = #tpu.dot_dimension_numbers<[1], [1], [0], [0], [0, 0, 1, 0], [], []>} : vector<8x8xbf16>, vector<8x8xbf16>, vector<8x8xf32> -> vector<8x8xf32>
    %cst_200 = arith.constant -1.000000e+09 : f32
    %440 = vector.broadcast %cst_200 : f32 to vector<8x8xf32>
    %441 = arith.select %345, %439, %440 : vector<8x8xi1>, vector<8x8xf32>
    %cst_201 = arith.constant dense<0xFF800000> : vector<8xf32>
    %442 = vector.multi_reduction <maximumf>, %441, %cst_201 [1] : vector<8x8xf32> to vector<8xf32>
    %443 = vector.shape_cast %442 : vector<8xf32> to vector<8x1xf32>
    %444 = vector.broadcast %443 : vector<8x1xf32> to vector<8x8xf32>
    %445 = arith.subf %441, %444 : vector<8x8xf32>
    %446 = math.exp %445 : vector<8x8xf32>
    %cst_202 = arith.constant dense<0.000000e+00> : vector<8xf32>
    %447 = vector.multi_reduction <add>, %446, %cst_202 [1] : vector<8x8xf32> to vector<8xf32>
    %448 = vector.shape_cast %447 : vector<8xf32> to vector<8x1xf32>
    %449 = tpu.reciprocal %448 {approx = true} : vector<8x1xf32> -> vector<8x1xf32>
    %450 = vector.broadcast %449 : vector<8x1xf32> to vector<8x8xf32>
    %451 = arith.mulf %446, %450 : vector<8x8xf32>
    %452 = arith.truncf %451 : vector<8x8xf32> to vector<8x8xbf16>
    %453 = vector.extract_strided_slice %393 {offsets = [0, 16], sizes = [8, 8], strides = [1, 1]} : vector<8x32xbf16> to vector<8x8xbf16>
    %cst_203 = arith.constant dense<0.000000e+00> : vector<8x8xf32>
    %454 = tpu.matmul %452, %453, %cst_203 {dimension_numbers = #tpu.dot_dimension_numbers<[1], [0], [0], [1], [0, 0, 1, 1], [], []>} : vector<8x8xbf16>, vector<8x8xbf16>, vector<8x8xf32> -> vector<8x8xf32>
    %455 = vector.extract_strided_slice %349 {offsets = [0, 64], sizes = [8, 32], strides = [1, 1]} : vector<8x128xbf16> to vector<8x32xbf16>
    %456 = arith.truncf %454 : vector<8x8xf32> to vector<8x8xbf16>
    %cst_204 = arith.constant dense<0.000000e+00> : vector<8x32xf32>
    %457 = tpu.matmul %456, %455, %cst_204 {dimension_numbers = #tpu.dot_dimension_numbers<[1], [0], [0], [1], [0, 0, 1, 1], [], []>} : vector<8x8xbf16>, vector<8x32xbf16>, vector<8x32xf32> -> vector<8x32xf32>
    %458 = arith.addf %436, %457 : vector<8x32xf32>
    %459 = vector.extract_strided_slice %391 {offsets = [0, 24], sizes = [8, 8], strides = [1, 1]} : vector<8x32xbf16> to vector<8x8xbf16>
    %460 = vector.extract_strided_slice %392 {offsets = [0, 24], sizes = [8, 8], strides = [1, 1]} : vector<8x32xbf16> to vector<8x8xbf16>
    %cst_205 = arith.constant dense<0.000000e+00> : vector<8x8xf32>
    %461 = tpu.matmul %459, %460, %cst_205 {dimension_numbers = #tpu.dot_dimension_numbers<[1], [1], [0], [0], [0, 0, 1, 0], [], []>} : vector<8x8xbf16>, vector<8x8xbf16>, vector<8x8xf32> -> vector<8x8xf32>
    %cst_206 = arith.constant -1.000000e+09 : f32
    %462 = vector.broadcast %cst_206 : f32 to vector<8x8xf32>
    %463 = arith.select %345, %461, %462 : vector<8x8xi1>, vector<8x8xf32>
    %cst_207 = arith.constant dense<0xFF800000> : vector<8xf32>
    %464 = vector.multi_reduction <maximumf>, %463, %cst_207 [1] : vector<8x8xf32> to vector<8xf32>
    %465 = vector.shape_cast %464 : vector<8xf32> to vector<8x1xf32>
    %466 = vector.broadcast %465 : vector<8x1xf32> to vector<8x8xf32>
    %467 = arith.subf %463, %466 : vector<8x8xf32>
    %468 = math.exp %467 : vector<8x8xf32>
    %cst_208 = arith.constant dense<0.000000e+00> : vector<8xf32>
    %469 = vector.multi_reduction <add>, %468, %cst_208 [1] : vector<8x8xf32> to vector<8xf32>
    %470 = vector.shape_cast %469 : vector<8xf32> to vector<8x1xf32>
    %471 = tpu.reciprocal %470 {approx = true} : vector<8x1xf32> -> vector<8x1xf32>
    %472 = vector.broadcast %471 : vector<8x1xf32> to vector<8x8xf32>
    %473 = arith.mulf %468, %472 : vector<8x8xf32>
    %474 = arith.truncf %473 : vector<8x8xf32> to vector<8x8xbf16>
    %475 = vector.extract_strided_slice %393 {offsets = [0, 24], sizes = [8, 8], strides = [1, 1]} : vector<8x32xbf16> to vector<8x8xbf16>
    %cst_209 = arith.constant dense<0.000000e+00> : vector<8x8xf32>
    %476 = tpu.matmul %474, %475, %cst_209 {dimension_numbers = #tpu.dot_dimension_numbers<[1], [0], [0], [1], [0, 0, 1, 1], [], []>} : vector<8x8xbf16>, vector<8x8xbf16>, vector<8x8xf32> -> vector<8x8xf32>
    %477 = vector.extract_strided_slice %349 {offsets = [0, 96], sizes = [8, 32], strides = [1, 1]} : vector<8x128xbf16> to vector<8x32xbf16>
    %478 = arith.truncf %476 : vector<8x8xf32> to vector<8x8xbf16>
    %cst_210 = arith.constant dense<0.000000e+00> : vector<8x32xf32>
    %479 = tpu.matmul %478, %477, %cst_210 {dimension_numbers = #tpu.dot_dimension_numbers<[1], [0], [0], [1], [0, 0, 1, 1], [], []>} : vector<8x8xbf16>, vector<8x32xbf16>, vector<8x32xf32> -> vector<8x32xf32>
    %480 = arith.addf %458, %479 : vector<8x32xf32>
    %481 = vector.broadcast %363 : vector<1x32xf32> to vector<8x32xf32>
    %482 = arith.addf %480, %481 : vector<8x32xf32>
    %483 = arith.addf %482, %342 : vector<8x32xf32>
    %cst_211 = arith.constant dense<0.000000e+00> : vector<8xf32>
    %484 = vector.multi_reduction <add>, %483, %cst_211 [1] : vector<8x32xf32> to vector<8xf32>
    %485 = vector.shape_cast %484 : vector<8xf32> to vector<8x1xf32>
    %cst_212 = arith.constant 3.200000e+01 : f32
    %486 = vector.broadcast %cst_212 : f32 to vector<8x1xf32>
    %487 = arith.divf %485, %486 : vector<8x1xf32>
    %488 = vector.broadcast %487 : vector<8x1xf32> to vector<8x32xf32>
    %489 = arith.subf %483, %488 : vector<8x32xf32>
    %490 = arith.mulf %489, %489 : vector<8x32xf32>
    %cst_213 = arith.constant dense<0.000000e+00> : vector<8xf32>
    %491 = vector.multi_reduction <add>, %490, %cst_213 [1] : vector<8x32xf32> to vector<8xf32>
    %492 = vector.shape_cast %491 : vector<8xf32> to vector<8x1xf32>
    %cst_214 = arith.constant 3.200000e+01 : f32
    %493 = vector.broadcast %cst_214 : f32 to vector<8x1xf32>
    %494 = arith.divf %492, %493 : vector<8x1xf32>
    %495 = vector.broadcast %487 : vector<8x1xf32> to vector<8x32xf32>
    %496 = arith.subf %483, %495 : vector<8x32xf32>
    %cst_215 = arith.constant 9.99999974E-6 : f32
    %497 = vector.broadcast %cst_215 : f32 to vector<8x1xf32>
    %498 = arith.addf %494, %497 : vector<8x1xf32>
    %499 = math.rsqrt %498 : vector<8x1xf32>
    %500 = vector.broadcast %499 : vector<8x1xf32> to vector<8x32xf32>
    %501 = arith.mulf %496, %500 : vector<8x32xf32>
    %502 = vector.broadcast %375 : vector<1x32xf32> to vector<8x32xf32>
    %503 = arith.mulf %501, %502 : vector<8x32xf32>
    %504 = vector.broadcast %377 : vector<1x32xf32> to vector<8x32xf32>
    %505 = arith.addf %503, %504 : vector<8x32xf32>
    %506 = arith.truncf %505 : vector<8x32xf32> to vector<8x32xbf16>
    %cst_216 = arith.constant dense<0.000000e+00> : vector<8x32xf32>
    %507 = tpu.matmul %506, %351, %cst_216 {dimension_numbers = #tpu.dot_dimension_numbers<[1], [0], [0], [1], [0, 0, 1, 1], [], []>} : vector<8x32xbf16>, vector<32x32xbf16>, vector<8x32xf32> -> vector<8x32xf32>
    %508 = vector.broadcast %365 : vector<1x32xf32> to vector<8x32xf32>
    %509 = arith.addf %507, %508 : vector<8x32xf32>
    %cst_217 = arith.constant dense<0.000000e+00> : vector<8x64xf32>
    %510 = tpu.matmul %340, %353, %cst_217 {dimension_numbers = #tpu.dot_dimension_numbers<[1], [0], [0], [1], [0, 0, 1, 1], [], []>} : vector<8x32xbf16>, vector<32x64xbf16>, vector<8x64xf32> -> vector<8x64xf32>
    %511 = vector.broadcast %367 : vector<1x64xf32> to vector<8x64xf32>
    %512 = arith.addf %510, %511 : vector<8x64xf32>
    %513 = arith.truncf %509 : vector<8x32xf32> to vector<8x32xbf16>
    %514 = arith.truncf %512 : vector<8x64xf32> to vector<8x64xbf16>
    %515 = vector.extract_strided_slice %514 {offsets = [0, 0], sizes = [8, 32], strides = [1, 1]} : vector<8x64xbf16> to vector<8x32xbf16>
    %516 = vector.extract_strided_slice %514 {offsets = [0, 32], sizes = [8, 32], strides = [1, 1]} : vector<8x64xbf16> to vector<8x32xbf16>
    %517 = vector.extract_strided_slice %513 {offsets = [0, 0], sizes = [8, 8], strides = [1, 1]} : vector<8x32xbf16> to vector<8x8xbf16>
    %518 = vector.extract_strided_slice %515 {offsets = [0, 0], sizes = [8, 8], strides = [1, 1]} : vector<8x32xbf16> to vector<8x8xbf16>
    %cst_218 = arith.constant dense<0.000000e+00> : vector<8x8xf32>
    %519 = tpu.matmul %517, %518, %cst_218 {dimension_numbers = #tpu.dot_dimension_numbers<[1], [1], [0], [0], [0, 0, 1, 0], [], []>} : vector<8x8xbf16>, vector<8x8xbf16>, vector<8x8xf32> -> vector<8x8xf32>
    %cst_219 = arith.constant dense<0xFF800000> : vector<8xf32>
    %520 = vector.multi_reduction <maximumf>, %519, %cst_219 [1] : vector<8x8xf32> to vector<8xf32>
    %521 = vector.shape_cast %520 : vector<8xf32> to vector<8x1xf32>
    %522 = vector.broadcast %521 : vector<8x1xf32> to vector<8x8xf32>
    %523 = arith.subf %519, %522 : vector<8x8xf32>
    %524 = math.exp %523 : vector<8x8xf32>
    %cst_220 = arith.constant dense<0.000000e+00> : vector<8xf32>
    %525 = vector.multi_reduction <add>, %524, %cst_220 [1] : vector<8x8xf32> to vector<8xf32>
    %526 = vector.shape_cast %525 : vector<8xf32> to vector<8x1xf32>
    %527 = tpu.reciprocal %526 {approx = true} : vector<8x1xf32> -> vector<8x1xf32>
    %528 = vector.broadcast %527 : vector<8x1xf32> to vector<8x8xf32>
    %529 = arith.mulf %524, %528 : vector<8x8xf32>
    %530 = arith.truncf %529 : vector<8x8xf32> to vector<8x8xbf16>
    %531 = vector.extract_strided_slice %516 {offsets = [0, 0], sizes = [8, 8], strides = [1, 1]} : vector<8x32xbf16> to vector<8x8xbf16>
    %cst_221 = arith.constant dense<0.000000e+00> : vector<8x8xf32>
    %532 = tpu.matmul %530, %531, %cst_221 {dimension_numbers = #tpu.dot_dimension_numbers<[1], [0], [0], [1], [0, 0, 1, 1], [], []>} : vector<8x8xbf16>, vector<8x8xbf16>, vector<8x8xf32> -> vector<8x8xf32>
    %533 = vector.extract_strided_slice %355 {offsets = [0, 0], sizes = [8, 32], strides = [1, 1]} : vector<8x128xbf16> to vector<8x32xbf16>
    %534 = arith.truncf %532 : vector<8x8xf32> to vector<8x8xbf16>
    %cst_222 = arith.constant dense<0.000000e+00> : vector<8x32xf32>
    %535 = tpu.matmul %534, %533, %cst_222 {dimension_numbers = #tpu.dot_dimension_numbers<[1], [0], [0], [1], [0, 0, 1, 1], [], []>} : vector<8x8xbf16>, vector<8x32xbf16>, vector<8x32xf32> -> vector<8x32xf32>
    %536 = vector.extract_strided_slice %513 {offsets = [0, 8], sizes = [8, 8], strides = [1, 1]} : vector<8x32xbf16> to vector<8x8xbf16>
    %537 = vector.extract_strided_slice %515 {offsets = [0, 8], sizes = [8, 8], strides = [1, 1]} : vector<8x32xbf16> to vector<8x8xbf16>
    %cst_223 = arith.constant dense<0.000000e+00> : vector<8x8xf32>
    %538 = tpu.matmul %536, %537, %cst_223 {dimension_numbers = #tpu.dot_dimension_numbers<[1], [1], [0], [0], [0, 0, 1, 0], [], []>} : vector<8x8xbf16>, vector<8x8xbf16>, vector<8x8xf32> -> vector<8x8xf32>
    %cst_224 = arith.constant dense<0xFF800000> : vector<8xf32>
    %539 = vector.multi_reduction <maximumf>, %538, %cst_224 [1] : vector<8x8xf32> to vector<8xf32>
    %540 = vector.shape_cast %539 : vector<8xf32> to vector<8x1xf32>
    %541 = vector.broadcast %540 : vector<8x1xf32> to vector<8x8xf32>
    %542 = arith.subf %538, %541 : vector<8x8xf32>
    %543 = math.exp %542 : vector<8x8xf32>
    %cst_225 = arith.constant dense<0.000000e+00> : vector<8xf32>
    %544 = vector.multi_reduction <add>, %543, %cst_225 [1] : vector<8x8xf32> to vector<8xf32>
    %545 = vector.shape_cast %544 : vector<8xf32> to vector<8x1xf32>
    %546 = tpu.reciprocal %545 {approx = true} : vector<8x1xf32> -> vector<8x1xf32>
    %547 = vector.broadcast %546 : vector<8x1xf32> to vector<8x8xf32>
    %548 = arith.mulf %543, %547 : vector<8x8xf32>
    %549 = arith.truncf %548 : vector<8x8xf32> to vector<8x8xbf16>
    %550 = vector.extract_strided_slice %516 {offsets = [0, 8], sizes = [8, 8], strides = [1, 1]} : vector<8x32xbf16> to vector<8x8xbf16>
    %cst_226 = arith.constant dense<0.000000e+00> : vector<8x8xf32>
    %551 = tpu.matmul %549, %550, %cst_226 {dimension_numbers = #tpu.dot_dimension_numbers<[1], [0], [0], [1], [0, 0, 1, 1], [], []>} : vector<8x8xbf16>, vector<8x8xbf16>, vector<8x8xf32> -> vector<8x8xf32>
    %552 = vector.extract_strided_slice %355 {offsets = [0, 32], sizes = [8, 32], strides = [1, 1]} : vector<8x128xbf16> to vector<8x32xbf16>
    %553 = arith.truncf %551 : vector<8x8xf32> to vector<8x8xbf16>
    %cst_227 = arith.constant dense<0.000000e+00> : vector<8x32xf32>
    %554 = tpu.matmul %553, %552, %cst_227 {dimension_numbers = #tpu.dot_dimension_numbers<[1], [0], [0], [1], [0, 0, 1, 1], [], []>} : vector<8x8xbf16>, vector<8x32xbf16>, vector<8x32xf32> -> vector<8x32xf32>
    %555 = arith.addf %535, %554 : vector<8x32xf32>
    %556 = vector.extract_strided_slice %513 {offsets = [0, 16], sizes = [8, 8], strides = [1, 1]} : vector<8x32xbf16> to vector<8x8xbf16>
    %557 = vector.extract_strided_slice %515 {offsets = [0, 16], sizes = [8, 8], strides = [1, 1]} : vector<8x32xbf16> to vector<8x8xbf16>
    %cst_228 = arith.constant dense<0.000000e+00> : vector<8x8xf32>
    %558 = tpu.matmul %556, %557, %cst_228 {dimension_numbers = #tpu.dot_dimension_numbers<[1], [1], [0], [0], [0, 0, 1, 0], [], []>} : vector<8x8xbf16>, vector<8x8xbf16>, vector<8x8xf32> -> vector<8x8xf32>
    %cst_229 = arith.constant dense<0xFF800000> : vector<8xf32>
    %559 = vector.multi_reduction <maximumf>, %558, %cst_229 [1] : vector<8x8xf32> to vector<8xf32>
    %560 = vector.shape_cast %559 : vector<8xf32> to vector<8x1xf32>
    %561 = vector.broadcast %560 : vector<8x1xf32> to vector<8x8xf32>
    %562 = arith.subf %558, %561 : vector<8x8xf32>
    %563 = math.exp %562 : vector<8x8xf32>
    %cst_230 = arith.constant dense<0.000000e+00> : vector<8xf32>
    %564 = vector.multi_reduction <add>, %563, %cst_230 [1] : vector<8x8xf32> to vector<8xf32>
    %565 = vector.shape_cast %564 : vector<8xf32> to vector<8x1xf32>
    %566 = tpu.reciprocal %565 {approx = true} : vector<8x1xf32> -> vector<8x1xf32>
    %567 = vector.broadcast %566 : vector<8x1xf32> to vector<8x8xf32>
    %568 = arith.mulf %563, %567 : vector<8x8xf32>
    %569 = arith.truncf %568 : vector<8x8xf32> to vector<8x8xbf16>
    %570 = vector.extract_strided_slice %516 {offsets = [0, 16], sizes = [8, 8], strides = [1, 1]} : vector<8x32xbf16> to vector<8x8xbf16>
    %cst_231 = arith.constant dense<0.000000e+00> : vector<8x8xf32>
    %571 = tpu.matmul %569, %570, %cst_231 {dimension_numbers = #tpu.dot_dimension_numbers<[1], [0], [0], [1], [0, 0, 1, 1], [], []>} : vector<8x8xbf16>, vector<8x8xbf16>, vector<8x8xf32> -> vector<8x8xf32>
    %572 = vector.extract_strided_slice %355 {offsets = [0, 64], sizes = [8, 32], strides = [1, 1]} : vector<8x128xbf16> to vector<8x32xbf16>
    %573 = arith.truncf %571 : vector<8x8xf32> to vector<8x8xbf16>
    %cst_232 = arith.constant dense<0.000000e+00> : vector<8x32xf32>
    %574 = tpu.matmul %573, %572, %cst_232 {dimension_numbers = #tpu.dot_dimension_numbers<[1], [0], [0], [1], [0, 0, 1, 1], [], []>} : vector<8x8xbf16>, vector<8x32xbf16>, vector<8x32xf32> -> vector<8x32xf32>
    %575 = arith.addf %555, %574 : vector<8x32xf32>
    %576 = vector.extract_strided_slice %513 {offsets = [0, 24], sizes = [8, 8], strides = [1, 1]} : vector<8x32xbf16> to vector<8x8xbf16>
    %577 = vector.extract_strided_slice %515 {offsets = [0, 24], sizes = [8, 8], strides = [1, 1]} : vector<8x32xbf16> to vector<8x8xbf16>
    %cst_233 = arith.constant dense<0.000000e+00> : vector<8x8xf32>
    %578 = tpu.matmul %576, %577, %cst_233 {dimension_numbers = #tpu.dot_dimension_numbers<[1], [1], [0], [0], [0, 0, 1, 0], [], []>} : vector<8x8xbf16>, vector<8x8xbf16>, vector<8x8xf32> -> vector<8x8xf32>
    %cst_234 = arith.constant dense<0xFF800000> : vector<8xf32>
    %579 = vector.multi_reduction <maximumf>, %578, %cst_234 [1] : vector<8x8xf32> to vector<8xf32>
    %580 = vector.shape_cast %579 : vector<8xf32> to vector<8x1xf32>
    %581 = vector.broadcast %580 : vector<8x1xf32> to vector<8x8xf32>
    %582 = arith.subf %578, %581 : vector<8x8xf32>
    %583 = math.exp %582 : vector<8x8xf32>
    %cst_235 = arith.constant dense<0.000000e+00> : vector<8xf32>
    %584 = vector.multi_reduction <add>, %583, %cst_235 [1] : vector<8x8xf32> to vector<8xf32>
    %585 = vector.shape_cast %584 : vector<8xf32> to vector<8x1xf32>
    %586 = tpu.reciprocal %585 {approx = true} : vector<8x1xf32> -> vector<8x1xf32>
    %587 = vector.broadcast %586 : vector<8x1xf32> to vector<8x8xf32>
    %588 = arith.mulf %583, %587 : vector<8x8xf32>
    %589 = arith.truncf %588 : vector<8x8xf32> to vector<8x8xbf16>
    %590 = vector.extract_strided_slice %516 {offsets = [0, 24], sizes = [8, 8], strides = [1, 1]} : vector<8x32xbf16> to vector<8x8xbf16>
    %cst_236 = arith.constant dense<0.000000e+00> : vector<8x8xf32>
    %591 = tpu.matmul %589, %590, %cst_236 {dimension_numbers = #tpu.dot_dimension_numbers<[1], [0], [0], [1], [0, 0, 1, 1], [], []>} : vector<8x8xbf16>, vector<8x8xbf16>, vector<8x8xf32> -> vector<8x8xf32>
    %592 = vector.extract_strided_slice %355 {offsets = [0, 96], sizes = [8, 32], strides = [1, 1]} : vector<8x128xbf16> to vector<8x32xbf16>
    %593 = arith.truncf %591 : vector<8x8xf32> to vector<8x8xbf16>
    %cst_237 = arith.constant dense<0.000000e+00> : vector<8x32xf32>
    %594 = tpu.matmul %593, %592, %cst_237 {dimension_numbers = #tpu.dot_dimension_numbers<[1], [0], [0], [1], [0, 0, 1, 1], [], []>} : vector<8x8xbf16>, vector<8x32xbf16>, vector<8x32xf32> -> vector<8x32xf32>
    %595 = arith.addf %575, %594 : vector<8x32xf32>
    %596 = vector.broadcast %369 : vector<1x32xf32> to vector<8x32xf32>
    %597 = arith.addf %595, %596 : vector<8x32xf32>
    %598 = arith.addf %597, %505 : vector<8x32xf32>
    %cst_238 = arith.constant dense<0.000000e+00> : vector<8xf32>
    %599 = vector.multi_reduction <add>, %598, %cst_238 [1] : vector<8x32xf32> to vector<8xf32>
    %600 = vector.shape_cast %599 : vector<8xf32> to vector<8x1xf32>
    %cst_239 = arith.constant 3.200000e+01 : f32
    %601 = vector.broadcast %cst_239 : f32 to vector<8x1xf32>
    %602 = arith.divf %600, %601 : vector<8x1xf32>
    %603 = vector.broadcast %602 : vector<8x1xf32> to vector<8x32xf32>
    %604 = arith.subf %598, %603 : vector<8x32xf32>
    %605 = arith.mulf %604, %604 : vector<8x32xf32>
    %cst_240 = arith.constant dense<0.000000e+00> : vector<8xf32>
    %606 = vector.multi_reduction <add>, %605, %cst_240 [1] : vector<8x32xf32> to vector<8xf32>
    %607 = vector.shape_cast %606 : vector<8xf32> to vector<8x1xf32>
    %cst_241 = arith.constant 3.200000e+01 : f32
    %608 = vector.broadcast %cst_241 : f32 to vector<8x1xf32>
    %609 = arith.divf %607, %608 : vector<8x1xf32>
    %610 = vector.broadcast %602 : vector<8x1xf32> to vector<8x32xf32>
    %611 = arith.subf %598, %610 : vector<8x32xf32>
    %cst_242 = arith.constant 9.99999974E-6 : f32
    %612 = vector.broadcast %cst_242 : f32 to vector<8x1xf32>
    %613 = arith.addf %609, %612 : vector<8x1xf32>
    %614 = math.rsqrt %613 : vector<8x1xf32>
    %615 = vector.broadcast %614 : vector<8x1xf32> to vector<8x32xf32>
    %616 = arith.mulf %611, %615 : vector<8x32xf32>
    %617 = vector.broadcast %379 : vector<1x32xf32> to vector<8x32xf32>
    %618 = arith.mulf %616, %617 : vector<8x32xf32>
    %619 = vector.broadcast %381 : vector<1x32xf32> to vector<8x32xf32>
    %620 = arith.addf %618, %619 : vector<8x32xf32>
    %621 = arith.truncf %620 : vector<8x32xf32> to vector<8x32xbf16>
    %cst_243 = arith.constant dense<0.000000e+00> : vector<8x128xf32>
    %622 = tpu.matmul %621, %357, %cst_243 {dimension_numbers = #tpu.dot_dimension_numbers<[1], [0], [0], [1], [0, 0, 1, 1], [], []>} : vector<8x32xbf16>, vector<32x128xbf16>, vector<8x128xf32> -> vector<8x128xf32>
    %623 = vector.broadcast %371 : vector<1x128xf32> to vector<8x128xf32>
    %624 = arith.addf %622, %623 : vector<8x128xf32>
    %cst_244 = arith.constant 0.000000e+00 : f32
    %625 = vector.broadcast %cst_244 : f32 to vector<8x128xf32>
    %626 = arith.maximumf %624, %625 : vector<8x128xf32>
    %627 = arith.truncf %626 : vector<8x128xf32> to vector<8x128xbf16>
    %cst_245 = arith.constant dense<0.000000e+00> : vector<8x32xf32>
    %628 = tpu.matmul %627, %359, %cst_245 {dimension_numbers = #tpu.dot_dimension_numbers<[1], [0], [0], [1], [0, 0, 1, 1], [], []>} : vector<8x128xbf16>, vector<128x32xbf16>, vector<8x32xf32> -> vector<8x32xf32>
    %629 = vector.broadcast %373 : vector<1x32xf32> to vector<8x32xf32>
    %630 = arith.addf %628, %629 : vector<8x32xf32>
    %631 = arith.addf %630, %620 : vector<8x32xf32>
    %cst_246 = arith.constant dense<0.000000e+00> : vector<8xf32>
    %632 = vector.multi_reduction <add>, %631, %cst_246 [1] : vector<8x32xf32> to vector<8xf32>
    %633 = vector.shape_cast %632 : vector<8xf32> to vector<8x1xf32>
    %cst_247 = arith.constant 3.200000e+01 : f32
    %634 = vector.broadcast %cst_247 : f32 to vector<8x1xf32>
    %635 = arith.divf %633, %634 : vector<8x1xf32>
    %636 = vector.broadcast %635 : vector<8x1xf32> to vector<8x32xf32>
    %637 = arith.subf %631, %636 : vector<8x32xf32>
    %638 = arith.mulf %637, %637 : vector<8x32xf32>
    %cst_248 = arith.constant dense<0.000000e+00> : vector<8xf32>
    %639 = vector.multi_reduction <add>, %638, %cst_248 [1] : vector<8x32xf32> to vector<8xf32>
    %640 = vector.shape_cast %639 : vector<8xf32> to vector<8x1xf32>
    %cst_249 = arith.constant 3.200000e+01 : f32
    %641 = vector.broadcast %cst_249 : f32 to vector<8x1xf32>
    %642 = arith.divf %640, %641 : vector<8x1xf32>
    %643 = vector.broadcast %635 : vector<8x1xf32> to vector<8x32xf32>
    %644 = arith.subf %631, %643 : vector<8x32xf32>
    %cst_250 = arith.constant 9.99999974E-6 : f32
    %645 = vector.broadcast %cst_250 : f32 to vector<8x1xf32>
    %646 = arith.addf %642, %645 : vector<8x1xf32>
    %647 = math.rsqrt %646 : vector<8x1xf32>
    %648 = vector.broadcast %647 : vector<8x1xf32> to vector<8x32xf32>
    %649 = arith.mulf %644, %648 : vector<8x32xf32>
    %650 = vector.broadcast %383 : vector<1x32xf32> to vector<8x32xf32>
    %651 = arith.mulf %649, %650 : vector<8x32xf32>
    %652 = vector.broadcast %385 : vector<1x32xf32> to vector<8x32xf32>
    %653 = arith.addf %651, %652 : vector<8x32xf32>
    %c1_251 = arith.constant 1 : index
    %c0_252 = arith.constant 0 : index
    %c0_253 = arith.constant 0 : index
    %654 = vector.load %arg5[%c1_251, %c0_252, %c0_253] : memref<2x288x128xbf16, #tpu.memory_space<vmem>>, vector<1x32x96xbf16>
    %655 = vector.shape_cast %654 : vector<1x32x96xbf16> to vector<32x96xbf16>
    %c1_254 = arith.constant 1 : index
    %c32_255 = arith.constant 32 : index
    %c0_256 = arith.constant 0 : index
    %656 = vector.load %arg5[%c1_254, %c32_255, %c0_256] : memref<2x288x128xbf16, #tpu.memory_space<vmem>>, vector<1x8x128xbf16>
    %657 = vector.shape_cast %656 : vector<1x8x128xbf16> to vector<8x128xbf16>
    %c1_257 = arith.constant 1 : index
    %c48_258 = arith.constant 48 : index
    %c0_259 = arith.constant 0 : index
    %658 = vector.load %arg5[%c1_257, %c48_258, %c0_259] : memref<2x288x128xbf16, #tpu.memory_space<vmem>>, vector<1x32x32xbf16>
    %659 = vector.shape_cast %658 : vector<1x32x32xbf16> to vector<32x32xbf16>
    %c1_260 = arith.constant 1 : index
    %c80_261 = arith.constant 80 : index
    %c0_262 = arith.constant 0 : index
    %660 = vector.load %arg5[%c1_260, %c80_261, %c0_262] : memref<2x288x128xbf16, #tpu.memory_space<vmem>>, vector<1x32x64xbf16>
    %661 = vector.shape_cast %660 : vector<1x32x64xbf16> to vector<32x64xbf16>
    %c1_263 = arith.constant 1 : index
    %c112_264 = arith.constant 112 : index
    %c0_265 = arith.constant 0 : index
    %662 = vector.load %arg5[%c1_263, %c112_264, %c0_265] : memref<2x288x128xbf16, #tpu.memory_space<vmem>>, vector<1x8x128xbf16>
    %663 = vector.shape_cast %662 : vector<1x8x128xbf16> to vector<8x128xbf16>
    %c1_266 = arith.constant 1 : index
    %c128_267 = arith.constant 128 : index
    %c0_268 = arith.constant 0 : index
    %664 = vector.load %arg5[%c1_266, %c128_267, %c0_268] : memref<2x288x128xbf16, #tpu.memory_space<vmem>>, vector<1x32x128xbf16>
    %665 = vector.shape_cast %664 : vector<1x32x128xbf16> to vector<32x128xbf16>
    %c1_269 = arith.constant 1 : index
    %c160_270 = arith.constant 160 : index
    %c0_271 = arith.constant 0 : index
    %666 = vector.load %arg5[%c1_269, %c160_270, %c0_271] : memref<2x288x128xbf16, #tpu.memory_space<vmem>>, vector<1x128x32xbf16>
    %667 = vector.shape_cast %666 : vector<1x128x32xbf16> to vector<128x32xbf16>
    %c1_272 = arith.constant 1 : index
    %c0_273 = arith.constant 0 : index
    %c0_274 = arith.constant 0 : index
    %668 = vector.load %arg6[%c1_272, %c0_273, %c0_274] : memref<2x16x128xf32, #tpu.memory_space<vmem>>, vector<1x1x96xf32>
    %669 = vector.shape_cast %668 : vector<1x1x96xf32> to vector<1x96xf32>
    %c1_275 = arith.constant 1 : index
    %c1_276 = arith.constant 1 : index
    %c0_277 = arith.constant 0 : index
    %670 = vector.load %arg6[%c1_275, %c1_276, %c0_277] : memref<2x16x128xf32, #tpu.memory_space<vmem>>, vector<1x1x32xf32>
    %671 = vector.shape_cast %670 : vector<1x1x32xf32> to vector<1x32xf32>
    %c1_278 = arith.constant 1 : index
    %c2_279 = arith.constant 2 : index
    %c0_280 = arith.constant 0 : index
    %672 = vector.load %arg6[%c1_278, %c2_279, %c0_280] : memref<2x16x128xf32, #tpu.memory_space<vmem>>, vector<1x1x32xf32>
    %673 = vector.shape_cast %672 : vector<1x1x32xf32> to vector<1x32xf32>
    %c1_281 = arith.constant 1 : index
    %c3_282 = arith.constant 3 : index
    %c0_283 = arith.constant 0 : index
    %674 = vector.load %arg6[%c1_281, %c3_282, %c0_283] : memref<2x16x128xf32, #tpu.memory_space<vmem>>, vector<1x1x64xf32>
    %675 = vector.shape_cast %674 : vector<1x1x64xf32> to vector<1x64xf32>
    %c1_284 = arith.constant 1 : index
    %c4_285 = arith.constant 4 : index
    %c0_286 = arith.constant 0 : index
    %676 = vector.load %arg6[%c1_284, %c4_285, %c0_286] : memref<2x16x128xf32, #tpu.memory_space<vmem>>, vector<1x1x32xf32>
    %677 = vector.shape_cast %676 : vector<1x1x32xf32> to vector<1x32xf32>
    %c1_287 = arith.constant 1 : index
    %c5_288 = arith.constant 5 : index
    %c0_289 = arith.constant 0 : index
    %678 = vector.load %arg6[%c1_287, %c5_288, %c0_289] : memref<2x16x128xf32, #tpu.memory_space<vmem>>, vector<1x1x128xf32>
    %679 = vector.shape_cast %678 : vector<1x1x128xf32> to vector<1x128xf32>
    %c1_290 = arith.constant 1 : index
    %c6_291 = arith.constant 6 : index
    %c0_292 = arith.constant 0 : index
    %680 = vector.load %arg6[%c1_290, %c6_291, %c0_292] : memref<2x16x128xf32, #tpu.memory_space<vmem>>, vector<1x1x32xf32>
    %681 = vector.shape_cast %680 : vector<1x1x32xf32> to vector<1x32xf32>
    %c1_293 = arith.constant 1 : index
    %c7_294 = arith.constant 7 : index
    %c0_295 = arith.constant 0 : index
    %682 = vector.load %arg6[%c1_293, %c7_294, %c0_295] : memref<2x16x128xf32, #tpu.memory_space<vmem>>, vector<1x1x32xf32>
    %683 = vector.shape_cast %682 : vector<1x1x32xf32> to vector<1x32xf32>
    %c1_296 = arith.constant 1 : index
    %c8_297 = arith.constant 8 : index
    %c0_298 = arith.constant 0 : index
    %684 = vector.load %arg6[%c1_296, %c8_297, %c0_298] : memref<2x16x128xf32, #tpu.memory_space<vmem>>, vector<1x1x32xf32>
    %685 = vector.shape_cast %684 : vector<1x1x32xf32> to vector<1x32xf32>
    %c1_299 = arith.constant 1 : index
    %c9_300 = arith.constant 9 : index
    %c0_301 = arith.constant 0 : index
    %686 = vector.load %arg6[%c1_299, %c9_300, %c0_301] : memref<2x16x128xf32, #tpu.memory_space<vmem>>, vector<1x1x32xf32>
    %687 = vector.shape_cast %686 : vector<1x1x32xf32> to vector<1x32xf32>
    %c1_302 = arith.constant 1 : index
    %c10_303 = arith.constant 10 : index
    %c0_304 = arith.constant 0 : index
    %688 = vector.load %arg6[%c1_302, %c10_303, %c0_304] : memref<2x16x128xf32, #tpu.memory_space<vmem>>, vector<1x1x32xf32>
    %689 = vector.shape_cast %688 : vector<1x1x32xf32> to vector<1x32xf32>
    %c1_305 = arith.constant 1 : index
    %c11_306 = arith.constant 11 : index
    %c0_307 = arith.constant 0 : index
    %690 = vector.load %arg6[%c1_305, %c11_306, %c0_307] : memref<2x16x128xf32, #tpu.memory_space<vmem>>, vector<1x1x32xf32>
    %691 = vector.shape_cast %690 : vector<1x1x32xf32> to vector<1x32xf32>
    %c1_308 = arith.constant 1 : index
    %c12_309 = arith.constant 12 : index
    %c0_310 = arith.constant 0 : index
    %692 = vector.load %arg6[%c1_308, %c12_309, %c0_310] : memref<2x16x128xf32, #tpu.memory_space<vmem>>, vector<1x1x32xf32>
    %693 = vector.shape_cast %692 : vector<1x1x32xf32> to vector<1x32xf32>
    %694 = arith.truncf %653 : vector<8x32xf32> to vector<8x32xbf16>
    %cst_311 = arith.constant dense<0.000000e+00> : vector<8x96xf32>
    %695 = tpu.matmul %694, %655, %cst_311 {dimension_numbers = #tpu.dot_dimension_numbers<[1], [0], [0], [1], [0, 0, 1, 1], [], []>} : vector<8x32xbf16>, vector<32x96xbf16>, vector<8x96xf32> -> vector<8x96xf32>
    %696 = vector.broadcast %669 : vector<1x96xf32> to vector<8x96xf32>
    %697 = arith.addf %695, %696 : vector<8x96xf32>
    %698 = arith.truncf %697 : vector<8x96xf32> to vector<8x96xbf16>
    %699 = vector.extract_strided_slice %698 {offsets = [0, 0], sizes = [8, 32], strides = [1, 1]} : vector<8x96xbf16> to vector<8x32xbf16>
    %700 = vector.extract_strided_slice %698 {offsets = [0, 32], sizes = [8, 32], strides = [1, 1]} : vector<8x96xbf16> to vector<8x32xbf16>
    %701 = vector.extract_strided_slice %698 {offsets = [0, 64], sizes = [8, 32], strides = [1, 1]} : vector<8x96xbf16> to vector<8x32xbf16>
    %702 = vector.extract_strided_slice %699 {offsets = [0, 0], sizes = [8, 8], strides = [1, 1]} : vector<8x32xbf16> to vector<8x8xbf16>
    %703 = vector.extract_strided_slice %700 {offsets = [0, 0], sizes = [8, 8], strides = [1, 1]} : vector<8x32xbf16> to vector<8x8xbf16>
    %cst_312 = arith.constant dense<0.000000e+00> : vector<8x8xf32>
    %704 = tpu.matmul %702, %703, %cst_312 {dimension_numbers = #tpu.dot_dimension_numbers<[1], [1], [0], [0], [0, 0, 1, 0], [], []>} : vector<8x8xbf16>, vector<8x8xbf16>, vector<8x8xf32> -> vector<8x8xf32>
    %cst_313 = arith.constant -1.000000e+09 : f32
    %705 = vector.broadcast %cst_313 : f32 to vector<8x8xf32>
    %706 = arith.select %345, %704, %705 : vector<8x8xi1>, vector<8x8xf32>
    %cst_314 = arith.constant dense<0xFF800000> : vector<8xf32>
    %707 = vector.multi_reduction <maximumf>, %706, %cst_314 [1] : vector<8x8xf32> to vector<8xf32>
    %708 = vector.shape_cast %707 : vector<8xf32> to vector<8x1xf32>
    %709 = vector.broadcast %708 : vector<8x1xf32> to vector<8x8xf32>
    %710 = arith.subf %706, %709 : vector<8x8xf32>
    %711 = math.exp %710 : vector<8x8xf32>
    %cst_315 = arith.constant dense<0.000000e+00> : vector<8xf32>
    %712 = vector.multi_reduction <add>, %711, %cst_315 [1] : vector<8x8xf32> to vector<8xf32>
    %713 = vector.shape_cast %712 : vector<8xf32> to vector<8x1xf32>
    %714 = tpu.reciprocal %713 {approx = true} : vector<8x1xf32> -> vector<8x1xf32>
    %715 = vector.broadcast %714 : vector<8x1xf32> to vector<8x8xf32>
    %716 = arith.mulf %711, %715 : vector<8x8xf32>
    %717 = arith.truncf %716 : vector<8x8xf32> to vector<8x8xbf16>
    %718 = vector.extract_strided_slice %701 {offsets = [0, 0], sizes = [8, 8], strides = [1, 1]} : vector<8x32xbf16> to vector<8x8xbf16>
    %cst_316 = arith.constant dense<0.000000e+00> : vector<8x8xf32>
    %719 = tpu.matmul %717, %718, %cst_316 {dimension_numbers = #tpu.dot_dimension_numbers<[1], [0], [0], [1], [0, 0, 1, 1], [], []>} : vector<8x8xbf16>, vector<8x8xbf16>, vector<8x8xf32> -> vector<8x8xf32>
    %720 = vector.extract_strided_slice %657 {offsets = [0, 0], sizes = [8, 32], strides = [1, 1]} : vector<8x128xbf16> to vector<8x32xbf16>
    %721 = arith.truncf %719 : vector<8x8xf32> to vector<8x8xbf16>
    %cst_317 = arith.constant dense<0.000000e+00> : vector<8x32xf32>
    %722 = tpu.matmul %721, %720, %cst_317 {dimension_numbers = #tpu.dot_dimension_numbers<[1], [0], [0], [1], [0, 0, 1, 1], [], []>} : vector<8x8xbf16>, vector<8x32xbf16>, vector<8x32xf32> -> vector<8x32xf32>
    %723 = vector.extract_strided_slice %699 {offsets = [0, 8], sizes = [8, 8], strides = [1, 1]} : vector<8x32xbf16> to vector<8x8xbf16>
    %724 = vector.extract_strided_slice %700 {offsets = [0, 8], sizes = [8, 8], strides = [1, 1]} : vector<8x32xbf16> to vector<8x8xbf16>
    %cst_318 = arith.constant dense<0.000000e+00> : vector<8x8xf32>
    %725 = tpu.matmul %723, %724, %cst_318 {dimension_numbers = #tpu.dot_dimension_numbers<[1], [1], [0], [0], [0, 0, 1, 0], [], []>} : vector<8x8xbf16>, vector<8x8xbf16>, vector<8x8xf32> -> vector<8x8xf32>
    %cst_319 = arith.constant -1.000000e+09 : f32
    %726 = vector.broadcast %cst_319 : f32 to vector<8x8xf32>
    %727 = arith.select %345, %725, %726 : vector<8x8xi1>, vector<8x8xf32>
    %cst_320 = arith.constant dense<0xFF800000> : vector<8xf32>
    %728 = vector.multi_reduction <maximumf>, %727, %cst_320 [1] : vector<8x8xf32> to vector<8xf32>
    %729 = vector.shape_cast %728 : vector<8xf32> to vector<8x1xf32>
    %730 = vector.broadcast %729 : vector<8x1xf32> to vector<8x8xf32>
    %731 = arith.subf %727, %730 : vector<8x8xf32>
    %732 = math.exp %731 : vector<8x8xf32>
    %cst_321 = arith.constant dense<0.000000e+00> : vector<8xf32>
    %733 = vector.multi_reduction <add>, %732, %cst_321 [1] : vector<8x8xf32> to vector<8xf32>
    %734 = vector.shape_cast %733 : vector<8xf32> to vector<8x1xf32>
    %735 = tpu.reciprocal %734 {approx = true} : vector<8x1xf32> -> vector<8x1xf32>
    %736 = vector.broadcast %735 : vector<8x1xf32> to vector<8x8xf32>
    %737 = arith.mulf %732, %736 : vector<8x8xf32>
    %738 = arith.truncf %737 : vector<8x8xf32> to vector<8x8xbf16>
    %739 = vector.extract_strided_slice %701 {offsets = [0, 8], sizes = [8, 8], strides = [1, 1]} : vector<8x32xbf16> to vector<8x8xbf16>
    %cst_322 = arith.constant dense<0.000000e+00> : vector<8x8xf32>
    %740 = tpu.matmul %738, %739, %cst_322 {dimension_numbers = #tpu.dot_dimension_numbers<[1], [0], [0], [1], [0, 0, 1, 1], [], []>} : vector<8x8xbf16>, vector<8x8xbf16>, vector<8x8xf32> -> vector<8x8xf32>
    %741 = vector.extract_strided_slice %657 {offsets = [0, 32], sizes = [8, 32], strides = [1, 1]} : vector<8x128xbf16> to vector<8x32xbf16>
    %742 = arith.truncf %740 : vector<8x8xf32> to vector<8x8xbf16>
    %cst_323 = arith.constant dense<0.000000e+00> : vector<8x32xf32>
    %743 = tpu.matmul %742, %741, %cst_323 {dimension_numbers = #tpu.dot_dimension_numbers<[1], [0], [0], [1], [0, 0, 1, 1], [], []>} : vector<8x8xbf16>, vector<8x32xbf16>, vector<8x32xf32> -> vector<8x32xf32>
    %744 = arith.addf %722, %743 : vector<8x32xf32>
    %745 = vector.extract_strided_slice %699 {offsets = [0, 16], sizes = [8, 8], strides = [1, 1]} : vector<8x32xbf16> to vector<8x8xbf16>
    %746 = vector.extract_strided_slice %700 {offsets = [0, 16], sizes = [8, 8], strides = [1, 1]} : vector<8x32xbf16> to vector<8x8xbf16>
    %cst_324 = arith.constant dense<0.000000e+00> : vector<8x8xf32>
    %747 = tpu.matmul %745, %746, %cst_324 {dimension_numbers = #tpu.dot_dimension_numbers<[1], [1], [0], [0], [0, 0, 1, 0], [], []>} : vector<8x8xbf16>, vector<8x8xbf16>, vector<8x8xf32> -> vector<8x8xf32>
    %cst_325 = arith.constant -1.000000e+09 : f32
    %748 = vector.broadcast %cst_325 : f32 to vector<8x8xf32>
    %749 = arith.select %345, %747, %748 : vector<8x8xi1>, vector<8x8xf32>
    %cst_326 = arith.constant dense<0xFF800000> : vector<8xf32>
    %750 = vector.multi_reduction <maximumf>, %749, %cst_326 [1] : vector<8x8xf32> to vector<8xf32>
    %751 = vector.shape_cast %750 : vector<8xf32> to vector<8x1xf32>
    %752 = vector.broadcast %751 : vector<8x1xf32> to vector<8x8xf32>
    %753 = arith.subf %749, %752 : vector<8x8xf32>
    %754 = math.exp %753 : vector<8x8xf32>
    %cst_327 = arith.constant dense<0.000000e+00> : vector<8xf32>
    %755 = vector.multi_reduction <add>, %754, %cst_327 [1] : vector<8x8xf32> to vector<8xf32>
    %756 = vector.shape_cast %755 : vector<8xf32> to vector<8x1xf32>
    %757 = tpu.reciprocal %756 {approx = true} : vector<8x1xf32> -> vector<8x1xf32>
    %758 = vector.broadcast %757 : vector<8x1xf32> to vector<8x8xf32>
    %759 = arith.mulf %754, %758 : vector<8x8xf32>
    %760 = arith.truncf %759 : vector<8x8xf32> to vector<8x8xbf16>
    %761 = vector.extract_strided_slice %701 {offsets = [0, 16], sizes = [8, 8], strides = [1, 1]} : vector<8x32xbf16> to vector<8x8xbf16>
    %cst_328 = arith.constant dense<0.000000e+00> : vector<8x8xf32>
    %762 = tpu.matmul %760, %761, %cst_328 {dimension_numbers = #tpu.dot_dimension_numbers<[1], [0], [0], [1], [0, 0, 1, 1], [], []>} : vector<8x8xbf16>, vector<8x8xbf16>, vector<8x8xf32> -> vector<8x8xf32>
    %763 = vector.extract_strided_slice %657 {offsets = [0, 64], sizes = [8, 32], strides = [1, 1]} : vector<8x128xbf16> to vector<8x32xbf16>
    %764 = arith.truncf %762 : vector<8x8xf32> to vector<8x8xbf16>
    %cst_329 = arith.constant dense<0.000000e+00> : vector<8x32xf32>
    %765 = tpu.matmul %764, %763, %cst_329 {dimension_numbers = #tpu.dot_dimension_numbers<[1], [0], [0], [1], [0, 0, 1, 1], [], []>} : vector<8x8xbf16>, vector<8x32xbf16>, vector<8x32xf32> -> vector<8x32xf32>
    %766 = arith.addf %744, %765 : vector<8x32xf32>
    %767 = vector.extract_strided_slice %699 {offsets = [0, 24], sizes = [8, 8], strides = [1, 1]} : vector<8x32xbf16> to vector<8x8xbf16>
    %768 = vector.extract_strided_slice %700 {offsets = [0, 24], sizes = [8, 8], strides = [1, 1]} : vector<8x32xbf16> to vector<8x8xbf16>
    %cst_330 = arith.constant dense<0.000000e+00> : vector<8x8xf32>
    %769 = tpu.matmul %767, %768, %cst_330 {dimension_numbers = #tpu.dot_dimension_numbers<[1], [1], [0], [0], [0, 0, 1, 0], [], []>} : vector<8x8xbf16>, vector<8x8xbf16>, vector<8x8xf32> -> vector<8x8xf32>
    %cst_331 = arith.constant -1.000000e+09 : f32
    %770 = vector.broadcast %cst_331 : f32 to vector<8x8xf32>
    %771 = arith.select %345, %769, %770 : vector<8x8xi1>, vector<8x8xf32>
    %cst_332 = arith.constant dense<0xFF800000> : vector<8xf32>
    %772 = vector.multi_reduction <maximumf>, %771, %cst_332 [1] : vector<8x8xf32> to vector<8xf32>
    %773 = vector.shape_cast %772 : vector<8xf32> to vector<8x1xf32>
    %774 = vector.broadcast %773 : vector<8x1xf32> to vector<8x8xf32>
    %775 = arith.subf %771, %774 : vector<8x8xf32>
    %776 = math.exp %775 : vector<8x8xf32>
    %cst_333 = arith.constant dense<0.000000e+00> : vector<8xf32>
    %777 = vector.multi_reduction <add>, %776, %cst_333 [1] : vector<8x8xf32> to vector<8xf32>
    %778 = vector.shape_cast %777 : vector<8xf32> to vector<8x1xf32>
    %779 = tpu.reciprocal %778 {approx = true} : vector<8x1xf32> -> vector<8x1xf32>
    %780 = vector.broadcast %779 : vector<8x1xf32> to vector<8x8xf32>
    %781 = arith.mulf %776, %780 : vector<8x8xf32>
    %782 = arith.truncf %781 : vector<8x8xf32> to vector<8x8xbf16>
    %783 = vector.extract_strided_slice %701 {offsets = [0, 24], sizes = [8, 8], strides = [1, 1]} : vector<8x32xbf16> to vector<8x8xbf16>
    %cst_334 = arith.constant dense<0.000000e+00> : vector<8x8xf32>
    %784 = tpu.matmul %782, %783, %cst_334 {dimension_numbers = #tpu.dot_dimension_numbers<[1], [0], [0], [1], [0, 0, 1, 1], [], []>} : vector<8x8xbf16>, vector<8x8xbf16>, vector<8x8xf32> -> vector<8x8xf32>
    %785 = vector.extract_strided_slice %657 {offsets = [0, 96], sizes = [8, 32], strides = [1, 1]} : vector<8x128xbf16> to vector<8x32xbf16>
    %786 = arith.truncf %784 : vector<8x8xf32> to vector<8x8xbf16>
    %cst_335 = arith.constant dense<0.000000e+00> : vector<8x32xf32>
    %787 = tpu.matmul %786, %785, %cst_335 {dimension_numbers = #tpu.dot_dimension_numbers<[1], [0], [0], [1], [0, 0, 1, 1], [], []>} : vector<8x8xbf16>, vector<8x32xbf16>, vector<8x32xf32> -> vector<8x32xf32>
    %788 = arith.addf %766, %787 : vector<8x32xf32>
    %789 = vector.broadcast %671 : vector<1x32xf32> to vector<8x32xf32>
    %790 = arith.addf %788, %789 : vector<8x32xf32>
    %791 = arith.addf %790, %653 : vector<8x32xf32>
    %cst_336 = arith.constant dense<0.000000e+00> : vector<8xf32>
    %792 = vector.multi_reduction <add>, %791, %cst_336 [1] : vector<8x32xf32> to vector<8xf32>
    %793 = vector.shape_cast %792 : vector<8xf32> to vector<8x1xf32>
    %cst_337 = arith.constant 3.200000e+01 : f32
    %794 = vector.broadcast %cst_337 : f32 to vector<8x1xf32>
    %795 = arith.divf %793, %794 : vector<8x1xf32>
    %796 = vector.broadcast %795 : vector<8x1xf32> to vector<8x32xf32>
    %797 = arith.subf %791, %796 : vector<8x32xf32>
    %798 = arith.mulf %797, %797 : vector<8x32xf32>
    %cst_338 = arith.constant dense<0.000000e+00> : vector<8xf32>
    %799 = vector.multi_reduction <add>, %798, %cst_338 [1] : vector<8x32xf32> to vector<8xf32>
    %800 = vector.shape_cast %799 : vector<8xf32> to vector<8x1xf32>
    %cst_339 = arith.constant 3.200000e+01 : f32
    %801 = vector.broadcast %cst_339 : f32 to vector<8x1xf32>
    %802 = arith.divf %800, %801 : vector<8x1xf32>
    %803 = vector.broadcast %795 : vector<8x1xf32> to vector<8x32xf32>
    %804 = arith.subf %791, %803 : vector<8x32xf32>
    %cst_340 = arith.constant 9.99999974E-6 : f32
    %805 = vector.broadcast %cst_340 : f32 to vector<8x1xf32>
    %806 = arith.addf %802, %805 : vector<8x1xf32>
    %807 = math.rsqrt %806 : vector<8x1xf32>
    %808 = vector.broadcast %807 : vector<8x1xf32> to vector<8x32xf32>
    %809 = arith.mulf %804, %808 : vector<8x32xf32>
    %810 = vector.broadcast %683 : vector<1x32xf32> to vector<8x32xf32>
    %811 = arith.mulf %809, %810 : vector<8x32xf32>
    %812 = vector.broadcast %685 : vector<1x32xf32> to vector<8x32xf32>
    %813 = arith.addf %811, %812 : vector<8x32xf32>
    %814 = arith.truncf %813 : vector<8x32xf32> to vector<8x32xbf16>
    %cst_341 = arith.constant dense<0.000000e+00> : vector<8x32xf32>
    %815 = tpu.matmul %814, %659, %cst_341 {dimension_numbers = #tpu.dot_dimension_numbers<[1], [0], [0], [1], [0, 0, 1, 1], [], []>} : vector<8x32xbf16>, vector<32x32xbf16>, vector<8x32xf32> -> vector<8x32xf32>
    %816 = vector.broadcast %673 : vector<1x32xf32> to vector<8x32xf32>
    %817 = arith.addf %815, %816 : vector<8x32xf32>
    %cst_342 = arith.constant dense<0.000000e+00> : vector<8x64xf32>
    %818 = tpu.matmul %340, %661, %cst_342 {dimension_numbers = #tpu.dot_dimension_numbers<[1], [0], [0], [1], [0, 0, 1, 1], [], []>} : vector<8x32xbf16>, vector<32x64xbf16>, vector<8x64xf32> -> vector<8x64xf32>
    %819 = vector.broadcast %675 : vector<1x64xf32> to vector<8x64xf32>
    %820 = arith.addf %818, %819 : vector<8x64xf32>
    %821 = arith.truncf %817 : vector<8x32xf32> to vector<8x32xbf16>
    %822 = arith.truncf %820 : vector<8x64xf32> to vector<8x64xbf16>
    %823 = vector.extract_strided_slice %822 {offsets = [0, 0], sizes = [8, 32], strides = [1, 1]} : vector<8x64xbf16> to vector<8x32xbf16>
    %824 = vector.extract_strided_slice %822 {offsets = [0, 32], sizes = [8, 32], strides = [1, 1]} : vector<8x64xbf16> to vector<8x32xbf16>
    %825 = vector.extract_strided_slice %821 {offsets = [0, 0], sizes = [8, 8], strides = [1, 1]} : vector<8x32xbf16> to vector<8x8xbf16>
    %826 = vector.extract_strided_slice %823 {offsets = [0, 0], sizes = [8, 8], strides = [1, 1]} : vector<8x32xbf16> to vector<8x8xbf16>
    %cst_343 = arith.constant dense<0.000000e+00> : vector<8x8xf32>
    %827 = tpu.matmul %825, %826, %cst_343 {dimension_numbers = #tpu.dot_dimension_numbers<[1], [1], [0], [0], [0, 0, 1, 0], [], []>} : vector<8x8xbf16>, vector<8x8xbf16>, vector<8x8xf32> -> vector<8x8xf32>
    %cst_344 = arith.constant dense<0xFF800000> : vector<8xf32>
    %828 = vector.multi_reduction <maximumf>, %827, %cst_344 [1] : vector<8x8xf32> to vector<8xf32>
    %829 = vector.shape_cast %828 : vector<8xf32> to vector<8x1xf32>
    %830 = vector.broadcast %829 : vector<8x1xf32> to vector<8x8xf32>
    %831 = arith.subf %827, %830 : vector<8x8xf32>
    %832 = math.exp %831 : vector<8x8xf32>
    %cst_345 = arith.constant dense<0.000000e+00> : vector<8xf32>
    %833 = vector.multi_reduction <add>, %832, %cst_345 [1] : vector<8x8xf32> to vector<8xf32>
    %834 = vector.shape_cast %833 : vector<8xf32> to vector<8x1xf32>
    %835 = tpu.reciprocal %834 {approx = true} : vector<8x1xf32> -> vector<8x1xf32>
    %836 = vector.broadcast %835 : vector<8x1xf32> to vector<8x8xf32>
    %837 = arith.mulf %832, %836 : vector<8x8xf32>
    %838 = arith.truncf %837 : vector<8x8xf32> to vector<8x8xbf16>
    %839 = vector.extract_strided_slice %824 {offsets = [0, 0], sizes = [8, 8], strides = [1, 1]} : vector<8x32xbf16> to vector<8x8xbf16>
    %cst_346 = arith.constant dense<0.000000e+00> : vector<8x8xf32>
    %840 = tpu.matmul %838, %839, %cst_346 {dimension_numbers = #tpu.dot_dimension_numbers<[1], [0], [0], [1], [0, 0, 1, 1], [], []>} : vector<8x8xbf16>, vector<8x8xbf16>, vector<8x8xf32> -> vector<8x8xf32>
    %841 = vector.extract_strided_slice %663 {offsets = [0, 0], sizes = [8, 32], strides = [1, 1]} : vector<8x128xbf16> to vector<8x32xbf16>
    %842 = arith.truncf %840 : vector<8x8xf32> to vector<8x8xbf16>
    %cst_347 = arith.constant dense<0.000000e+00> : vector<8x32xf32>
    %843 = tpu.matmul %842, %841, %cst_347 {dimension_numbers = #tpu.dot_dimension_numbers<[1], [0], [0], [1], [0, 0, 1, 1], [], []>} : vector<8x8xbf16>, vector<8x32xbf16>, vector<8x32xf32> -> vector<8x32xf32>
    %844 = vector.extract_strided_slice %821 {offsets = [0, 8], sizes = [8, 8], strides = [1, 1]} : vector<8x32xbf16> to vector<8x8xbf16>
    %845 = vector.extract_strided_slice %823 {offsets = [0, 8], sizes = [8, 8], strides = [1, 1]} : vector<8x32xbf16> to vector<8x8xbf16>
    %cst_348 = arith.constant dense<0.000000e+00> : vector<8x8xf32>
    %846 = tpu.matmul %844, %845, %cst_348 {dimension_numbers = #tpu.dot_dimension_numbers<[1], [1], [0], [0], [0, 0, 1, 0], [], []>} : vector<8x8xbf16>, vector<8x8xbf16>, vector<8x8xf32> -> vector<8x8xf32>
    %cst_349 = arith.constant dense<0xFF800000> : vector<8xf32>
    %847 = vector.multi_reduction <maximumf>, %846, %cst_349 [1] : vector<8x8xf32> to vector<8xf32>
    %848 = vector.shape_cast %847 : vector<8xf32> to vector<8x1xf32>
    %849 = vector.broadcast %848 : vector<8x1xf32> to vector<8x8xf32>
    %850 = arith.subf %846, %849 : vector<8x8xf32>
    %851 = math.exp %850 : vector<8x8xf32>
    %cst_350 = arith.constant dense<0.000000e+00> : vector<8xf32>
    %852 = vector.multi_reduction <add>, %851, %cst_350 [1] : vector<8x8xf32> to vector<8xf32>
    %853 = vector.shape_cast %852 : vector<8xf32> to vector<8x1xf32>
    %854 = tpu.reciprocal %853 {approx = true} : vector<8x1xf32> -> vector<8x1xf32>
    %855 = vector.broadcast %854 : vector<8x1xf32> to vector<8x8xf32>
    %856 = arith.mulf %851, %855 : vector<8x8xf32>
    %857 = arith.truncf %856 : vector<8x8xf32> to vector<8x8xbf16>
    %858 = vector.extract_strided_slice %824 {offsets = [0, 8], sizes = [8, 8], strides = [1, 1]} : vector<8x32xbf16> to vector<8x8xbf16>
    %cst_351 = arith.constant dense<0.000000e+00> : vector<8x8xf32>
    %859 = tpu.matmul %857, %858, %cst_351 {dimension_numbers = #tpu.dot_dimension_numbers<[1], [0], [0], [1], [0, 0, 1, 1], [], []>} : vector<8x8xbf16>, vector<8x8xbf16>, vector<8x8xf32> -> vector<8x8xf32>
    %860 = vector.extract_strided_slice %663 {offsets = [0, 32], sizes = [8, 32], strides = [1, 1]} : vector<8x128xbf16> to vector<8x32xbf16>
    %861 = arith.truncf %859 : vector<8x8xf32> to vector<8x8xbf16>
    %cst_352 = arith.constant dense<0.000000e+00> : vector<8x32xf32>
    %862 = tpu.matmul %861, %860, %cst_352 {dimension_numbers = #tpu.dot_dimension_numbers<[1], [0], [0], [1], [0, 0, 1, 1], [], []>} : vector<8x8xbf16>, vector<8x32xbf16>, vector<8x32xf32> -> vector<8x32xf32>
    %863 = arith.addf %843, %862 : vector<8x32xf32>
    %864 = vector.extract_strided_slice %821 {offsets = [0, 16], sizes = [8, 8], strides = [1, 1]} : vector<8x32xbf16> to vector<8x8xbf16>
    %865 = vector.extract_strided_slice %823 {offsets = [0, 16], sizes = [8, 8], strides = [1, 1]} : vector<8x32xbf16> to vector<8x8xbf16>
    %cst_353 = arith.constant dense<0.000000e+00> : vector<8x8xf32>
    %866 = tpu.matmul %864, %865, %cst_353 {dimension_numbers = #tpu.dot_dimension_numbers<[1], [1], [0], [0], [0, 0, 1, 0], [], []>} : vector<8x8xbf16>, vector<8x8xbf16>, vector<8x8xf32> -> vector<8x8xf32>
    %cst_354 = arith.constant dense<0xFF800000> : vector<8xf32>
    %867 = vector.multi_reduction <maximumf>, %866, %cst_354 [1] : vector<8x8xf32> to vector<8xf32>
    %868 = vector.shape_cast %867 : vector<8xf32> to vector<8x1xf32>
    %869 = vector.broadcast %868 : vector<8x1xf32> to vector<8x8xf32>
    %870 = arith.subf %866, %869 : vector<8x8xf32>
    %871 = math.exp %870 : vector<8x8xf32>
    %cst_355 = arith.constant dense<0.000000e+00> : vector<8xf32>
    %872 = vector.multi_reduction <add>, %871, %cst_355 [1] : vector<8x8xf32> to vector<8xf32>
    %873 = vector.shape_cast %872 : vector<8xf32> to vector<8x1xf32>
    %874 = tpu.reciprocal %873 {approx = true} : vector<8x1xf32> -> vector<8x1xf32>
    %875 = vector.broadcast %874 : vector<8x1xf32> to vector<8x8xf32>
    %876 = arith.mulf %871, %875 : vector<8x8xf32>
    %877 = arith.truncf %876 : vector<8x8xf32> to vector<8x8xbf16>
    %878 = vector.extract_strided_slice %824 {offsets = [0, 16], sizes = [8, 8], strides = [1, 1]} : vector<8x32xbf16> to vector<8x8xbf16>
    %cst_356 = arith.constant dense<0.000000e+00> : vector<8x8xf32>
    %879 = tpu.matmul %877, %878, %cst_356 {dimension_numbers = #tpu.dot_dimension_numbers<[1], [0], [0], [1], [0, 0, 1, 1], [], []>} : vector<8x8xbf16>, vector<8x8xbf16>, vector<8x8xf32> -> vector<8x8xf32>
    %880 = vector.extract_strided_slice %663 {offsets = [0, 64], sizes = [8, 32], strides = [1, 1]} : vector<8x128xbf16> to vector<8x32xbf16>
    %881 = arith.truncf %879 : vector<8x8xf32> to vector<8x8xbf16>
    %cst_357 = arith.constant dense<0.000000e+00> : vector<8x32xf32>
    %882 = tpu.matmul %881, %880, %cst_357 {dimension_numbers = #tpu.dot_dimension_numbers<[1], [0], [0], [1], [0, 0, 1, 1], [], []>} : vector<8x8xbf16>, vector<8x32xbf16>, vector<8x32xf32> -> vector<8x32xf32>
    %883 = arith.addf %863, %882 : vector<8x32xf32>
    %884 = vector.extract_strided_slice %821 {offsets = [0, 24], sizes = [8, 8], strides = [1, 1]} : vector<8x32xbf16> to vector<8x8xbf16>
    %885 = vector.extract_strided_slice %823 {offsets = [0, 24], sizes = [8, 8], strides = [1, 1]} : vector<8x32xbf16> to vector<8x8xbf16>
    %cst_358 = arith.constant dense<0.000000e+00> : vector<8x8xf32>
    %886 = tpu.matmul %884, %885, %cst_358 {dimension_numbers = #tpu.dot_dimension_numbers<[1], [1], [0], [0], [0, 0, 1, 0], [], []>} : vector<8x8xbf16>, vector<8x8xbf16>, vector<8x8xf32> -> vector<8x8xf32>
    %cst_359 = arith.constant dense<0xFF800000> : vector<8xf32>
    %887 = vector.multi_reduction <maximumf>, %886, %cst_359 [1] : vector<8x8xf32> to vector<8xf32>
    %888 = vector.shape_cast %887 : vector<8xf32> to vector<8x1xf32>
    %889 = vector.broadcast %888 : vector<8x1xf32> to vector<8x8xf32>
    %890 = arith.subf %886, %889 : vector<8x8xf32>
    %891 = math.exp %890 : vector<8x8xf32>
    %cst_360 = arith.constant dense<0.000000e+00> : vector<8xf32>
    %892 = vector.multi_reduction <add>, %891, %cst_360 [1] : vector<8x8xf32> to vector<8xf32>
    %893 = vector.shape_cast %892 : vector<8xf32> to vector<8x1xf32>
    %894 = tpu.reciprocal %893 {approx = true} : vector<8x1xf32> -> vector<8x1xf32>
    %895 = vector.broadcast %894 : vector<8x1xf32> to vector<8x8xf32>
    %896 = arith.mulf %891, %895 : vector<8x8xf32>
    %897 = arith.truncf %896 : vector<8x8xf32> to vector<8x8xbf16>
    %898 = vector.extract_strided_slice %824 {offsets = [0, 24], sizes = [8, 8], strides = [1, 1]} : vector<8x32xbf16> to vector<8x8xbf16>
    %cst_361 = arith.constant dense<0.000000e+00> : vector<8x8xf32>
    %899 = tpu.matmul %897, %898, %cst_361 {dimension_numbers = #tpu.dot_dimension_numbers<[1], [0], [0], [1], [0, 0, 1, 1], [], []>} : vector<8x8xbf16>, vector<8x8xbf16>, vector<8x8xf32> -> vector<8x8xf32>
    %900 = vector.extract_strided_slice %663 {offsets = [0, 96], sizes = [8, 32], strides = [1, 1]} : vector<8x128xbf16> to vector<8x32xbf16>
    %901 = arith.truncf %899 : vector<8x8xf32> to vector<8x8xbf16>
    %cst_362 = arith.constant dense<0.000000e+00> : vector<8x32xf32>
    %902 = tpu.matmul %901, %900, %cst_362 {dimension_numbers = #tpu.dot_dimension_numbers<[1], [0], [0], [1], [0, 0, 1, 1], [], []>} : vector<8x8xbf16>, vector<8x32xbf16>, vector<8x32xf32> -> vector<8x32xf32>
    %903 = arith.addf %883, %902 : vector<8x32xf32>
    %904 = vector.broadcast %677 : vector<1x32xf32> to vector<8x32xf32>
    %905 = arith.addf %903, %904 : vector<8x32xf32>
    %906 = arith.addf %905, %813 : vector<8x32xf32>
    %cst_363 = arith.constant dense<0.000000e+00> : vector<8xf32>
    %907 = vector.multi_reduction <add>, %906, %cst_363 [1] : vector<8x32xf32> to vector<8xf32>
    %908 = vector.shape_cast %907 : vector<8xf32> to vector<8x1xf32>
    %cst_364 = arith.constant 3.200000e+01 : f32
    %909 = vector.broadcast %cst_364 : f32 to vector<8x1xf32>
    %910 = arith.divf %908, %909 : vector<8x1xf32>
    %911 = vector.broadcast %910 : vector<8x1xf32> to vector<8x32xf32>
    %912 = arith.subf %906, %911 : vector<8x32xf32>
    %913 = arith.mulf %912, %912 : vector<8x32xf32>
    %cst_365 = arith.constant dense<0.000000e+00> : vector<8xf32>
    %914 = vector.multi_reduction <add>, %913, %cst_365 [1] : vector<8x32xf32> to vector<8xf32>
    %915 = vector.shape_cast %914 : vector<8xf32> to vector<8x1xf32>
    %cst_366 = arith.constant 3.200000e+01 : f32
    %916 = vector.broadcast %cst_366 : f32 to vector<8x1xf32>
    %917 = arith.divf %915, %916 : vector<8x1xf32>
    %918 = vector.broadcast %910 : vector<8x1xf32> to vector<8x32xf32>
    %919 = arith.subf %906, %918 : vector<8x32xf32>
    %cst_367 = arith.constant 9.99999974E-6 : f32
    %920 = vector.broadcast %cst_367 : f32 to vector<8x1xf32>
    %921 = arith.addf %917, %920 : vector<8x1xf32>
    %922 = math.rsqrt %921 : vector<8x1xf32>
    %923 = vector.broadcast %922 : vector<8x1xf32> to vector<8x32xf32>
    %924 = arith.mulf %919, %923 : vector<8x32xf32>
    %925 = vector.broadcast %687 : vector<1x32xf32> to vector<8x32xf32>
    %926 = arith.mulf %924, %925 : vector<8x32xf32>
    %927 = vector.broadcast %689 : vector<1x32xf32> to vector<8x32xf32>
    %928 = arith.addf %926, %927 : vector<8x32xf32>
    %929 = arith.truncf %928 : vector<8x32xf32> to vector<8x32xbf16>
    %cst_368 = arith.constant dense<0.000000e+00> : vector<8x128xf32>
    %930 = tpu.matmul %929, %665, %cst_368 {dimension_numbers = #tpu.dot_dimension_numbers<[1], [0], [0], [1], [0, 0, 1, 1], [], []>} : vector<8x32xbf16>, vector<32x128xbf16>, vector<8x128xf32> -> vector<8x128xf32>
    %931 = vector.broadcast %679 : vector<1x128xf32> to vector<8x128xf32>
    %932 = arith.addf %930, %931 : vector<8x128xf32>
    %cst_369 = arith.constant 0.000000e+00 : f32
    %933 = vector.broadcast %cst_369 : f32 to vector<8x128xf32>
    %934 = arith.maximumf %932, %933 : vector<8x128xf32>
    %935 = arith.truncf %934 : vector<8x128xf32> to vector<8x128xbf16>
    %cst_370 = arith.constant dense<0.000000e+00> : vector<8x32xf32>
    %936 = tpu.matmul %935, %667, %cst_370 {dimension_numbers = #tpu.dot_dimension_numbers<[1], [0], [0], [1], [0, 0, 1, 1], [], []>} : vector<8x128xbf16>, vector<128x32xbf16>, vector<8x32xf32> -> vector<8x32xf32>
    %937 = vector.broadcast %681 : vector<1x32xf32> to vector<8x32xf32>
    %938 = arith.addf %936, %937 : vector<8x32xf32>
    %939 = arith.addf %938, %928 : vector<8x32xf32>
    %cst_371 = arith.constant dense<0.000000e+00> : vector<8xf32>
    %940 = vector.multi_reduction <add>, %939, %cst_371 [1] : vector<8x32xf32> to vector<8xf32>
    %941 = vector.shape_cast %940 : vector<8xf32> to vector<8x1xf32>
    %cst_372 = arith.constant 3.200000e+01 : f32
    %942 = vector.broadcast %cst_372 : f32 to vector<8x1xf32>
    %943 = arith.divf %941, %942 : vector<8x1xf32>
    %944 = vector.broadcast %943 : vector<8x1xf32> to vector<8x32xf32>
    %945 = arith.subf %939, %944 : vector<8x32xf32>
    %946 = arith.mulf %945, %945 : vector<8x32xf32>
    %cst_373 = arith.constant dense<0.000000e+00> : vector<8xf32>
    %947 = vector.multi_reduction <add>, %946, %cst_373 [1] : vector<8x32xf32> to vector<8xf32>
    %948 = vector.shape_cast %947 : vector<8xf32> to vector<8x1xf32>
    %cst_374 = arith.constant 3.200000e+01 : f32
    %949 = vector.broadcast %cst_374 : f32 to vector<8x1xf32>
    %950 = arith.divf %948, %949 : vector<8x1xf32>
    %951 = vector.broadcast %943 : vector<8x1xf32> to vector<8x32xf32>
    %952 = arith.subf %939, %951 : vector<8x32xf32>
    %cst_375 = arith.constant 9.99999974E-6 : f32
    %953 = vector.broadcast %cst_375 : f32 to vector<8x1xf32>
    %954 = arith.addf %950, %953 : vector<8x1xf32>
    %955 = math.rsqrt %954 : vector<8x1xf32>
    %956 = vector.broadcast %955 : vector<8x1xf32> to vector<8x32xf32>
    %957 = arith.mulf %952, %956 : vector<8x32xf32>
    %958 = vector.broadcast %691 : vector<1x32xf32> to vector<8x32xf32>
    %959 = arith.mulf %957, %958 : vector<8x32xf32>
    %960 = vector.broadcast %693 : vector<1x32xf32> to vector<8x32xf32>
    %961 = arith.addf %959, %960 : vector<8x32xf32>
    %962 = arith.truncf %961 : vector<8x32xf32> to vector<8x32xbf16>
    %c0_376 = arith.constant 0 : index
    %c0_377 = arith.constant 0 : index
    %963 = vector.load %arg7[%c0_376, %c0_377] : memref<32x128xbf16, #tpu.memory_space<vmem>>, vector<32x128xbf16>
    %cst_378 = arith.constant dense<0.000000e+00> : vector<8x128xf32>
    %964 = tpu.matmul %962, %963, %cst_378 {dimension_numbers = #tpu.dot_dimension_numbers<[1], [0], [0], [1], [0, 0, 1, 1], [], []>} : vector<8x32xbf16>, vector<32x128xbf16>, vector<8x128xf32> -> vector<8x128xf32>
    %c0_379 = arith.constant 0 : index
    %c0_380 = arith.constant 0 : index
    %965 = vector.load %arg8[%c0_379, %c0_380] : memref<1x128xf32, #tpu.memory_space<vmem>>, vector<1x128xf32>
    %966 = vector.broadcast %965 : vector<1x128xf32> to vector<8x128xf32>
    %967 = arith.addf %964, %966 : vector<8x128xf32>
    %c0_381 = arith.constant 0 : index
    %c0_382 = arith.constant 0 : index
    %c0_383 = arith.constant 0 : index
    %968 = vector.load %arg9[%c0_381, %c0_382, %c0_383] : memref<1x8x128xf32, #tpu.memory_space<vmem>>, vector<1x8x128xf32>
    %969 = vector.shape_cast %968 : vector<1x8x128xf32> to vector<8x128xf32>
    %970 = vector.shape_cast %967 : vector<8x128xf32> to vector<1x8x128xf32>
    tpu.vector_store %arg9[%c0_381, %c0_382, %c0_383], %970 {strides = array<i32>} : memref<1x8x128xf32, #tpu.memory_space<vmem>>, vector<1x8x128xf32>,
    return
  }
  func.func @transform_0(%arg0: i32) -> (i32, i32, i32) {
    %c0_i32 = arith.constant 0 : i32
    %c0_i32_0 = arith.constant 0 : i32
    %c0_i32_1 = arith.constant 0 : i32
    return %arg0, %c0_i32, %c0_i32_0 : i32, i32, i32
  }
  func.func @transform_1(%arg0: i32) -> (i32, i32, i32) {
    %c0_i32 = arith.constant 0 : i32
    %c0_i32_0 = arith.constant 0 : i32
    %c0_i32_1 = arith.constant 0 : i32
    return %arg0, %c0_i32, %c0_i32_0 : i32, i32, i32
  }
  func.func @transform_2(%arg0: i32) -> (i32, i32, i32) {
    %c0_i32 = arith.constant 0 : i32
    %c0_i32_0 = arith.constant 0 : i32
    %c0_i32_1 = arith.constant 0 : i32
    %c0_i32_2 = arith.constant 0 : i32
    return %c0_i32, %c0_i32_0, %c0_i32_1 : i32, i32, i32
  }
  func.func @transform_3(%arg0: i32) -> (i32, i32, i32) {
    %c0_i32 = arith.constant 0 : i32
    %c0_i32_0 = arith.constant 0 : i32
    %c0_i32_1 = arith.constant 0 : i32
    %c0_i32_2 = arith.constant 0 : i32
    return %c0_i32, %c0_i32_0, %c0_i32_1 : i32, i32, i32
  }
  func.func @transform_4(%arg0: i32) -> (i32, i32, i32) {
    %c0_i32 = arith.constant 0 : i32
    %c0_i32_0 = arith.constant 0 : i32
    %c0_i32_1 = arith.constant 0 : i32
    %c0_i32_2 = arith.constant 0 : i32
    return %c0_i32, %c0_i32_0, %c0_i32_1 : i32, i32, i32
  }
  func.func @transform_5(%arg0: i32) -> (i32, i32, i32) {
    %c0_i32 = arith.constant 0 : i32
    %c0_i32_0 = arith.constant 0 : i32
    %c0_i32_1 = arith.constant 0 : i32
    %c0_i32_2 = arith.constant 0 : i32
    return %c0_i32, %c0_i32_0, %c0_i32_1 : i32, i32, i32
  }
  func.func @transform_6(%arg0: i32) -> (i32, i32) {
    %c0_i32 = arith.constant 0 : i32
    %c0_i32_0 = arith.constant 0 : i32
    %c0_i32_1 = arith.constant 0 : i32
    return %c0_i32, %c0_i32_0 : i32, i32
  }
  func.func @transform_7(%arg0: i32) -> (i32, i32) {
    %c0_i32 = arith.constant 0 : i32
    %c0_i32_0 = arith.constant 0 : i32
    %c0_i32_1 = arith.constant 0 : i32
    return %c0_i32, %c0_i32_0 : i32, i32
  }
  func.func @transform_8(%arg0: i32) -> (i32, i32, i32) {
    %c0_i32 = arith.constant 0 : i32
    %c0_i32_0 = arith.constant 0 : i32
    %c0_i32_1 = arith.constant 0 : i32
    return %arg0, %c0_i32, %c0_i32_0 : i32, i32, i32
  }
}

</mosaic_0001>

<bundles_post_ra>
// kernel: transformer_forward.1
= control target key start
LH: loop header
LB: loop body
LE: loop exit
PB: predicated region body
PF: predicated region fallthrough
CT: control target
= control target key end

     0   :  { %s8579_s0 = inlined_call_operand.vmem [shape: f32[2,8,32], index: 0, kind: input, shape index: {}]   ;;  %s8580_s1 = inlined_call_operand.vmem [shape: f32[2,8,32], index: 1, kind: input, shape index: {}]   ;;  %s8581_s2 = inlined_call_operand.hbm [shape: bf16[2,208,128], index: 2, kind: input, shape index: {}]   ;;  %s8582_s3 = inlined_call_operand.vmem [shape: f32[2,8,128], index: 3, kind: input, shape index: {}]   ;;  %s8583_s4 = inlined_call_operand.vmem [shape: bf16[2,288,128], index: 4, kind: input, shape index: {}]   ;;  %s8584_s5 = inlined_call_operand.vmem [shape: f32[2,16,128], index: 5, kind: input, shape index: {}]   ;;  %s8585_s6 = inlined_call_operand.vmem [shape: bf16[32,128], index: 6, kind: input, shape index: {}]   ;;  %s8586_s7 = inlined_call_operand.vmem [shape: f32[1,128], index: 7, kind: input, shape index: {}]   ;;  %s8587_s8 = inlined_call_operand.hbm [shape: f32[2,8,128], index: 8, kind: output, shape index: {}]  }
   0x1   :  { %8619 = sst [smem:[#allocation11_spill]] %s8579_s0 }
   0x2   :  { %8620 = sst [smem:[#allocation12_spill]] %s8580_s1 }
   0x3   :  { %8621 = sst [smem:[#allocation13_spill]] %s8581_s2 }
   0x4   :  { %8622 = sst [smem:[#allocation14_spill]] %s8582_s3 }
   0x5   :  { %13 = vsyncpa [#allocation3], 0 }
   0x6   :  { %14 = vsyncpa [#allocation4], 0 }
   0x7   :  { %16 = vsyncpa [#allocation4 + $0x1], 0  ;;  %s7378_s27 = smov 0   ;;  %s7380_s28 = smov 0  }
   0x8   :  { %s7382_s29 = smov 0   ;;  %s7384_s30 = smov 0  }
   0x9 LB: > { %8623 = sst [smem:[#allocation8_spill]] %s7309_s29  ;;  %s7399_s9 = sadd.s32 4294967295, %s7313_s30   ;;  %s7313_s30 = sphi %s7384_s30, %s8654_s30   ;;  %s7309_s29 = sphi %s7382_s29, %s8656_s29   ;;  %s7305_s28 = sphi %s7380_s28, %s8658_s28   ;;  %s7301_s27 = sphi %s7378_s27, %s8657_s27  }
   0xa   : > { %s5878_s10 = sadd.s32 4294967294, %s7313_s30   ;;  %s7403_s11 = sadd.s32 1, %s7313_s30  }
   0xb   : > { %8624 = sst [smem:[#allocation9_spill]] %s7403_s11  ;;  %s207_s12 = sadd.s32 1, %s7309_s29 }
   0xc   : > { %s204_s13 = ssub.s32 %s7313_s30, %s7403_s11  ;;  %p217_p0 = scmp.ne.s32.totalorder %s7309_s29, %s7305_s28 }
   0xd   : > { %p205_p1 = scmp.eq.s32.totalorder %s204_s13, 0  ;;  %p218_p2 = scmp.eq.s32.totalorder %s7399_s9, 1 }
   0xe   : > { %p223_p3 = scmp.ne.s32.totalorder %s7305_s28, %s7301_s27  ;;  %p224_p4 = scmp.eq.s32.totalorder %s5878_s10, 1 }
   0xf   : > { %s7414_s14 = scalar_select %p205_p1, %s7309_s29, %s207_s12  }
  0x10   : > { %p7416_p5 = por %p218_p2, %p217_p0  ;;  %p7420_p6 = por %p224_p4, %p223_p3 }
  0x11   : > { %8625 = sst [smem:[#allocation10_spill]] %s7414_s14  ;;  %p5879_p7 = scmp.ge.s32.totalorder %s7313_s30, 1 }
  0x12   : > { %s8626_s15 = scalar_select %p7416_p5, 1, 0 }
  0x13   : > { %s8627_s16 = scalar_select %p7420_p6, 1, 0 }
  0x14   : > { %p231_p8 = scmp.lt.s32.totalorder %s7313_s30, 3  ;;  %p8588_p9 = scmp.eq.s32.totalorder %s7399_s9, 0 }
  0x15   : > { %s7315_s18 = smov [#allocation2]   ;;  %s8630_s2 = sld [smem:[#allocation13_spill]] }
  0x16   : > { %p7427_p10 = pnand %p5879_p7, %p231_p8  ;;  %s243_s19 = sshll.u32 %s7315_s18, 4  ;;  %s244_s19 = int_to_ptr.vmem [resolvable:$true] %s243_s19 }
  0x18   : > { %s8628_s17 = scalar_select %p7427_p10, 1, 0 }
  0x19   : > { %p6979_p11 = pneg %p7427_p10 }
  0x1b   : > { %p7435_p12 = pnand %p8588_p9, %p6979_p11  ;;  %s7219_s23 = scalar_lea.hbm %s8630_s2, 3328 }
  0x1c   : > { %p7220_p13 = scmp.ne.s32.totalorder %s8630_s2, %s7219_s23  ;;  %p7226_p3 = scmp.lt.u32.totalorder %s7219_s23, %s8630_s2 }
  0x1d   : > { %p7221_p0 = pneg %p7435_p12 }
  0x1f   : > { %p7222_p1 = pnand %p7221_p0, %p7220_p13 }
  0x21   : > { %p7223_p2 = pneg %p7222_p1 }
  0x23   : > { %p7228_p4 = pnand %p7226_p3, %p7223_p2 }
  0x25   : > { %7231 = shalt.err (!%p7228_p4)
}
  0x26   : > { %s7232_s12 = scalar_lea.vmem %s244_s19, 3328  ;;  %p7240_p9 = scmp.lt.s32.totalorder %s244_s19, %s244_s19 }
  0x27   : > { %p7233_p7 = scmp.ne.s32.totalorder %s244_s19, %s7232_s12  ;;  %p7241_p6 = scmp.lt.s32.totalorder %s7232_s12, %s7232_s12 }
  0x29   : > { %p7235_p8 = pnand %p7233_p7, %p7221_p0  ;;  %p7242_p5 = por %p7241_p6, %p7240_p9 }
  0x2b   : > { %p7236_p11 = pneg %p7235_p8 }
  0x2d   : > { %p7243_p10 = pnand %p7242_p5, %p7236_p11 }
  0x2f   : > { %7246 = shalt.err (!%p7243_p10)
}
  0x30   : > { %s7316_s13 = smov 64   ;;  %s7317_s18 = smov 4  }
  0x31   : > { %6982 = dma.hbm_to_vmem [thread:$0]  (!%p7435_p12), %s8630_s2, 3328, %s244_s19, [#allocation3], %s7316_s13, %s7316_s13, %s7317_s18  }
  0x32   : > { %p8631_p13 = scmp.ne.s32.totalorder %s8628_s17, 0 }
  0x33   : > { %p8632_p1 = scmp.eq.s32.totalorder (!%p8631_p13), %s7399_s9, 0 }
  0x34   : > { %288 = sbr.rel (%p8631_p13) target bundleno = 21565 (0x543d), region = 52 }
  0x3b   : > { %7292 = dma.done.wait (%p8632_p1), [#allocation3], 3328   ;;  %p8633_p0 = pmov %p8632_p1 }
  0x3c   : > { %p325_p5 = scmp.lt.s32.totalorder %s7399_s9, 1  ;;  %v7318_v0 = vmov 0.0   ;;  %vm7319_vm0 = vmmov 0   ;;  %s8634_s0 = sld [smem:[#allocation11_spill]]  ;;  %v7039_v1 = vld [vmem:[#allocation2] sm:$0xff]   ;;  %v7040_v2 = vld [vmem:[#allocation2 + $0x8] sm:$0xff]  }
  0x3d   : > { %7294 = vsyncadd (%p8633_p0), [#allocation3], 4294963968  ;;  %6357 = vmatprep.subr.bf16.mxu1 %v7318_v0  ;;  %6361 = vmatprep.mubr.msk.bf16.mxu1 %vm7319_vm0, %v7318_v0  ;;  %vm385_vm1 = vcmask 261120   ;;  %s8635_s3 = sld [smem:[#allocation14_spill]]  ;;  %s8610_s10 = smov 120   ;;  %vm433_vm2 = vcmask 64512  }
  0x3e   : > { %s7466_s19 = scalar_select %p325_p5, %s7399_s9, 1  ;;  %6371 = vmatprep.subr.bf16.mxu0 %v7318_v0  ;;  %6373 = vmatprep.mubr.msk.bf16.mxu0 %vm7319_vm0, %v7318_v0  ;;  %v339_v37 = vld [vmem:[#allocation2 + $0x10] sm:$0xf]  ;;  %vm497_vm3 = vcmask 1043456  }
  0x3f   : > { %6358 = vmatpush3.bf16.msra.mxu1 %v7039_v1  ;;  %s8614_s12 = smov 96   ;;  %s8612_s13 = smov 88   ;;  %v7516_v38 = vcombine.low %v339_v37, %v339_v37  ;;  %v708_v53 = vsel %vm497_vm3, %v339_v37, 0 }
  0x40   : > { %s8591_s17 = sshll.u32 %s7466_s19, 3  ;;  %6359 = vmatprep.subr.bf16.mxu1 %v7318_v0  ;;  %s8608_s18 = smov 64  }
  0x41   : > { %s8606_s21 = smov 56   ;;  %s8604_s22 = smov 80  }
  0x42   : > { %s328_s24 = scalar_lea.vmem %s8634_s0, %s8591_s17  ;;  %s8602_s20 = smov 112  }
  0x43   : > { %v7477_v3 = vld [vmem:[%s328_s24] sm:$0xff]  ;;  %6360 = vmatpush3.bf16.msra.mxu1 %v7040_v2  ;;  %s8600_s23 = smov 48   ;;  %s8598_s24 = smov 104  }
  0x44   : > { %v368_v4 = vpack.c.bf16 %v7477_v3, %v7477_v3  ;;  %6365 = vmatprep.subr.bf16.mxu1 %v7318_v0  ;;  %v5887_v5 = vld [vmem:[%s8635_s3] ss:$0 sm:$0xff]  ;;  %s8596_s25 = smov 72   ;;  %s8594_s26 = smov 40  }
  0x45   : > { %s8592_s17 = smov 32   ;;  %s8642_s0 = sshll.u32 %s7466_s19, 3 }
  0x46   : > { %6362 = vmatmul.mubr.msk.bf16.vlgmr.msra.gmra.mrb[0].mxu1 %vm385_vm1, %v368_v4  ;;  %s8643_s1 = sld [smem:[#allocation12_spill]]  ;;  %s8644_s19 = smov 96  }
  0x47   : > { %6367 = vmatprep.mubr.msk.bf16.mxu1 %vm7319_vm0, %v7318_v0  ;;  %p8652_p9 = scmp.ne.s32.totalorder %s8626_s15, 0 }
  0x4c   : > { %s332_s29 = scalar_lea.vmem %s8643_s1, %s8642_s0 }
 0x119   : > { %v423_v6 = vpop.f32.mrb[0].mxu1 }
 0x11a   : > { %v424_v7 = vadd.f32 %v5887_v5, %v423_v6  ;;  %v6363_v8 = vpop.f32.mrb[1].mxu1 }
 0x11b   : > { %v426_v9 = vpop.f32.mrb[2].mxu1 }
 0x11c   : > { %v7489_v10 = vpack.c.bf16 %v424_v7, %v424_v7  ;;  %v6364_v11 = vpop.f32.mrb[3].mxu1 }
 0x11e   : > { %542 = vrot.lane.b32.xlu1 %v7489_v10, %s8610_s10  ;;  %431 = vrot.lane.b32.xlu0 %v7489_v10, %s8614_s12 }
 0x122   : > { %544 = vrot.lane.b32.xlu0 %v7489_v10, %s8612_s13 }
 0x190   : > { %v432_v12 = vpop.permute.xlu0 %431  ;;  %v543_v16 = vpop.permute.xlu1 %542 }
 0x191   : > { %v438_v13 = vsel %vm433_vm2, %v432_v12, 0 }
 0x192   : > { %6366 = vmatpush3.bf16.xpose.msra.mxu1 %v438_v13 }
 0x193   : > { %6377 = vmatprep.subr.bf16.mxu1 %v7318_v0 }
 0x194   : > { %v545_v14 = vpop.permute.xlu0 %544 }
 0x195   : > { %v550_v15 = vsel %vm433_vm2, %v545_v14, 0 }
 0x199   : > { %6368 = vmatmul.mubr.msk.bf16.vlgmr.msra.gmra.mrb[4].mxu1 %vm433_vm2, %v7489_v10 }
 0x19a   : > { %6378 = vmatpush3.bf16.xpose.msra.mxu1 %v550_v15  ;;  %6379 = vmatprep.mubr.msk.bf16.mxu1 %vm7319_vm0, %v7318_v0 }
 0x19b   : > { %6389 = vmatprep.subr.bf16.mxu1 %v7318_v0 }
 0x1a1   : > { %6380 = vmatmul.mubr.msk.bf16.vlgmr.msra.gmra.mrb[8].mxu1 %vm433_vm2, %v543_v16 }
 0x1a2   : > { %6391 = vmatprep.mubr.msk.bf16.mxu1 %vm7319_vm0, %v7318_v0 }
 0x26c   : > { %v474_v17 = vpop.f32.mrb[4].mxu1 }
 0x26d   : > { %v6369_v18 = vpop.f32.mrb[5].mxu1  ;;  %v480_v19 = vsel %vm433_vm2, %v474_v17, -inf }
 0x26e   : > { %481 = vmax.xlane.f32.xlu1 %v480_v19  ;;  %v477_v20 = vpop.f32.mrb[6].mxu1 }
 0x26f   : > { %v6370_v21 = vpop.f32.mrb[7].mxu1 }
 0x274   : > { %v586_v22 = vpop.f32.mrb[8].mxu1 }
 0x275   : > { %v6381_v23 = vpop.f32.mrb[9].mxu1  ;;  %v592_v24 = vsel %vm433_vm2, %v586_v22, -inf }
 0x276   : > { %593 = vmax.xlane.f32.xlu0 %v592_v24  ;;  %v589_v25 = vpop.f32.mrb[10].mxu1 }
 0x277   : > { %v6382_v26 = vpop.f32.mrb[11].mxu1 }
 0x2fb   : > { %v482_v27 = vpop.xlane.xlu1 %481 }
 0x2fc   : > { %v483_v28 = vsub.f32 %v474_v17, %v482_v27 }
 0x2fe   : > { %v484_v29 = vmul.f32 1.442695, %v483_v28 }
 0x300   : > { %7103 = vpow2.f32 %v484_v29 }
 0x303   : > { %v594_v30 = vpop.xlane.xlu0 %593 }
 0x304   : > { %v595_v31 = vsub.f32 %v586_v22, %v594_v30 }
 0x306   : > { %v596_v32 = vmul.f32 1.442695, %v595_v31 }
 0x308   : > { %7105 = vpow2.f32 %v596_v32 }
 0x30a   : > { %v7104_v33 = vpop.eup %7103 }
 0x30b   : > { %v486_v34 = vsel %vm433_vm2, %v7104_v33, 0.0 }
 0x30c   : > { %487 = vadd.xlane.f32.xlu0 %v486_v34 }
 0x312   : > { %v7106_v35 = vpop.eup %7105 }
 0x313   : > { %v598_v36 = vsel %vm433_vm2, %v7106_v35, 0.0 }
 0x314   : > { %599 = vadd.xlane.f32.xlu1 %v598_v36 }
 0x322   : > { %492 = vrot.lane.b32.xlu0 %v7489_v10, %s8608_s18 }
 0x325   : > { %604 = vrot.lane.b32.xlu1 %v7489_v10, %s8606_s21 }
 0x326   : > { %752 = vrot.lane.b32.xlu0 %v7489_v10, %s8604_s22 }
 0x329   : > { %656 = vrot.lane.b32.xlu1 %v7516_v38, %s8614_s12 }
 0x32d   : > { %750 = vrot.lane.b32.xlu1 %v7489_v10, %s8602_s20  ;;  %s8636_s20 = smov 112  }
 0x399   : > { %v488_v39 = vpop.xlane.xlu0 %487 }
 0x39a   : > { %7107 = vrcp.f32 %v488_v39 }
 0x39d   : > { %v493_v40 = vpop.permute.xlu0 %492 }
 0x39e   : > { %v499_v41 = vsel %vm497_vm3, %v493_v40, 0 }
 0x39f   : > { %6372 = vmatpush3.bf16.msra.mxu0 %v499_v41 }
 0x3a0   : > { %6383 = vmatprep.subr.bf16.mxu0 %v7318_v0 }
 0x3a1   : > { %v600_v42 = vpop.xlane.xlu1 %599  ;;  %v753_v59 = vpop.permute.xlu0 %752 }
 0x3a2   : > { %7109 = vrcp.f32 %v600_v42  ;;  %v758_v1 = vsel %vm433_vm2, %v753_v59, 0 }
 0x3a4   : > { %v7108_v43 = vpop.eup %7107 }
 0x3a5   : > { %v605_v44 = vpop.permute.xlu1 %604  ;;  %v490_v45 = vmul.f32 %v7108_v43, %v7104_v33 }
 0x3a6   : > { %v610_v47 = vsel %vm497_vm3, %v605_v44, 0 }
 0x3a7   : > { %v491_v46 = vpack.c.bf16 %v490_v45, %v490_v45 }
 0x3a9   : > { %v657_v48 = vpop.permute.xlu1 %656  ;;  %6374 = vmatmul.mubr.msk.bf16.vlgmr.msra.gmra.mrb[0].mxu0 %vm433_vm2, %v491_v46 }
 0x3aa   : > { %v662_v49 = vsel %vm497_vm3, %v657_v48, 0  ;;  %6384 = vmatpush3.bf16.msra.mxu0 %v610_v47  ;;  %6385 = vmatprep.mubr.msk.bf16.mxu0 %vm7319_vm0, %v7318_v0 }
 0x3ab   : > { %6395 = vmatprep.subr.bf16.mxu0 %v7318_v0  ;;  %6390 = vmatpush3.bf16.msra.mxu1 %v662_v49 }
 0x3ac   : > { %v7110_v50 = vpop.eup %7109  ;;  %6401 = vmatprep.subr.bf16.mxu1 %v7318_v0 }
 0x3ad   : > { %v602_v51 = vmul.f32 %v7110_v50, %v7106_v35  ;;  %v751_v4 = vpop.permute.xlu1 %750 }
 0x3af   : > { %v603_v52 = vpack.c.bf16 %v602_v51, %v602_v51 }
 0x3b1   : > { %6386 = vmatmul.mubr.msk.bf16.vlgmr.msra.gmra.mrb[4].mxu0 %vm433_vm2, %v603_v52 }
 0x3b2   : > { %6397 = vmatprep.mubr.msk.bf16.mxu0 %vm7319_vm0, %v7318_v0  ;;  %6396 = vmatpush3.bf16.msra.mxu0 %v708_v53 }
 0x3b3   : > { %6407 = vmatprep.subr.bf16.mxu0 %v7318_v0 }
 0x47c   : > { %v535_v54 = vpop.f32.mrb[0].mxu0 }
 0x47d   : > { %v541_v55 = vpack.c.bf16 %v535_v54, %v535_v54  ;;  %v6375_v56 = vpop.f32.mrb[1].mxu0 }
 0x47e   : > { %v538_v57 = vpop.f32.mrb[2].mxu0 }
 0x47f   : > { %v6376_v58 = vpop.f32.mrb[3].mxu0  ;;  %6398 = vmatmul.mubr.msk.bf16.vlgmr.msra.gmra.mrb[8].mxu0 %vm433_vm2, %v541_v55 }
 0x480   : > { %6409 = vmatprep.mubr.msk.bf16.mxu0 %vm7319_vm0, %v7318_v0 }
 0x484   : > { %v646_v60 = vpop.f32.mrb[4].mxu0 }
 0x485   : > { %v652_v61 = vpack.c.bf16 %v646_v60, %v646_v60  ;;  %v6387_v62 = vpop.f32.mrb[5].mxu0 }
 0x486   : > { %v649_v63 = vpop.f32.mrb[6].mxu0 }
 0x487   : > { %v6388_v2 = vpop.f32.mrb[7].mxu0  ;;  %6392 = vmatmul.mubr.msk.bf16.vlgmr.msra.gmra.mrb[12].mxu1 %vm433_vm2, %v652_v61 }
 0x488   : > { %6402 = vmatpush3.bf16.xpose.msra.mxu1 %v758_v1  ;;  %6403 = vmatprep.mubr.msk.bf16.mxu1 %vm7319_vm0, %v7318_v0 }
 0x489   : > { %6413 = vmatprep.subr.bf16.mxu1 %v7318_v0 }
 0x48f   : > { %6404 = vmatmul.mubr.msk.bf16.vlgmr.msra.gmra.mrb[16].mxu1 %vm433_vm2, %v751_v4 }
 0x490   : > { %6415 = vmatprep.mubr.msk.bf16.mxu1 %vm7319_vm0, %v7318_v0 }
 0x552   : > { %v744_v5 = vpop.f32.mrb[8].mxu0 }
 0x553   : > { %v6399_v6 = vpop.f32.mrb[9].mxu0 }
 0x554   : > { %v747_v7 = vpop.f32.mrb[10].mxu0  ;;  %v5904_v6 = vld [vmem:[%s8635_s3 + $0x1] ss:$0 sm:$0xff] }
 0x555   : > { %v6400_v8 = vpop.f32.mrb[11].mxu0 }
 0x55a   : > { %v698_v9 = vpop.f32.mrb[12].mxu1 }
 0x55b   : > { %v7549_v11 = vadd.f32 %v744_v5, %v698_v9  ;;  %v6393_v12 = vpop.f32.mrb[13].mxu1 }
 0x55c   : > { %v701_v13 = vpop.f32.mrb[14].mxu1 }
 0x55d   : > { %v6394_v14 = vpop.f32.mrb[15].mxu1 }
 0x562   : > { %v794_v15 = vpop.f32.mrb[16].mxu1 }
 0x563   : > { %v6405_v16 = vpop.f32.mrb[17].mxu1  ;;  %v800_v17 = vsel %vm433_vm2, %v794_v15, -inf }
 0x564   : > { %801 = vmax.xlane.f32.xlu0 %v800_v17  ;;  %v797_v18 = vpop.f32.mrb[18].mxu1 }
 0x565   : > { %v6406_v19 = vpop.f32.mrb[19].mxu1 }
 0x57a   : > { %812 = vrot.lane.b32.xlu0 %v7489_v10, %s8600_s23  ;;  %s8637_s23 = smov 48  }
 0x57e   : > { %910 = vrot.lane.b32.xlu0 %v7489_v10, %s8598_s24  ;;  %s8640_s24 = smov 40  }
 0x5f1   : > { %v802_v20 = vpop.xlane.xlu0 %801 }
 0x5f2   : > { %v803_v21 = vsub.f32 %v794_v15, %v802_v20 }
 0x5f4   : > { %v804_v22 = vmul.f32 1.442695, %v803_v21  ;;  %v7042_v21 = vld [vmem:[#allocation2 + $0x18] sm:$0xff]  }
 0x5f5   : > { %v813_v23 = vpop.permute.xlu0 %812 }
 0x5f6   : > { %7111 = vpow2.f32 %v804_v22  ;;  %v818_v24 = vsel %vm497_vm3, %v813_v23, 0  ;;  %v7043_v22 = vld [vmem:[#allocation2 + $0x20] sm:$0xff]   ;;  %v7044_v23 = vld [vmem:[#allocation2 + $0x28] sm:$0xff]  }
 0x5f7   : > { %6408 = vmatpush3.bf16.msra.mxu0 %v818_v24  ;;  %v7046_v24 = vld [vmem:[#allocation2 + $0x38] sm:$0xff]  }
 0x5f8   : > { %6419 = vmatprep.subr.bf16.mxu0 %v7318_v0 }
 0x5f9   : > { %v911_v33 = vpop.permute.xlu0 %910 }
 0x600   : > { %v7112_v25 = vpop.eup %7111 }
 0x601   : > { %v806_v26 = vsel %vm433_vm2, %v7112_v25, 0.0 }
 0x602   : > { %807 = vadd.xlane.f32.xlu1 %v806_v26  ;;  %v7048_v26 = vld [vmem:[#allocation2 + $0x48] sm:$0xff]  }
 0x613   : > { %912 = vrot.lane.b32.xlu1 %v7489_v10, %s8596_s25  ;;  %s8641_s25 = smov 32  }
 0x68f   : > { %v808_v27 = vpop.xlane.xlu1 %807 }
 0x690   : > { %7113 = vrcp.f32 %v808_v27  ;;  %v7049_v27 = vld [vmem:[#allocation2 + $0x50] sm:$0xff]  }
 0x693   : > { %v913_v30 = vpop.permute.xlu1 %912 }
 0x694   : > { %v918_v32 = vsel %vm433_vm2, %v913_v30, 0 }
 0x69a   : > { %v7114_v28 = vpop.eup %7113 }
 0x69b   : > { %v810_v29 = vmul.f32 %v7114_v28, %v7112_v25  ;;  %v7047_v25 = vld [vmem:[#allocation2 + $0x40] sm:$0xff]  }
 0x69d   : > { %v811_v31 = vpack.c.bf16 %v810_v29, %v810_v29 }
 0x69f   : > { %6410 = vmatmul.mubr.msk.bf16.vlgmr.msra.gmra.mrb[12].mxu0 %vm433_vm2, %v811_v31 }
 0x6a0   : > { %6420 = vmatpush3.bf16.xpose.msra.mxu0 %v918_v32  ;;  %6421 = vmatprep.mubr.msk.bf16.mxu0 %vm7319_vm0, %v7318_v0  ;;  %v5905_v32 = vld [vmem:[%s8635_s3 + $0x4] ss:$0 sm:$0xff] }
 0x6a1   : > { %6431 = vmatprep.subr.bf16.mxu0 %v7318_v0 }
 0x6a7   : > { %6422 = vmatmul.mubr.msk.bf16.vlgmr.msra.gmra.mrb[16].mxu0 %vm433_vm2, %v911_v33 }
 0x6a8   : > { %6433 = vmatprep.mubr.msk.bf16.mxu0 %vm7319_vm0, %v7318_v0 }
 0x772   : > { %v854_v34 = vpop.f32.mrb[12].mxu0 }
 0x773   : > { %v6411_v35 = vpop.f32.mrb[13].mxu0  ;;  %v860_v52 = vpack.c.bf16 %v854_v34, %v854_v34  ;;  %v5906_v34 = vld [vmem:[%s8635_s3 + $0x5] ss:$0 sm:$0xff] }
 0x774   : > { %v857_v36 = vpop.f32.mrb[14].mxu0 }
 0x775   : > { %v6412_v37 = vpop.f32.mrb[15].mxu0 }
 0x77a   : > { %v954_v39 = vpop.f32.mrb[16].mxu0 }
 0x77b   : > { %v6423_v40 = vpop.f32.mrb[17].mxu0  ;;  %v960_v41 = vsel %vm433_vm2, %v954_v39, -inf }
 0x77c   : > { %961 = vmax.xlane.f32.xlu1 %v960_v41  ;;  %v957_v42 = vpop.f32.mrb[18].mxu0  ;;  %v7051_v40 = vld [vmem:[#allocation2 + $0x60] sm:$0xff]  }
 0x77d   : > { %v6424_v43 = vpop.f32.mrb[19].mxu0  ;;  %v5907_v41 = vld [vmem:[%s8635_s3 + $0x2] ss:$0 sm:$0xff] }
 0x78d   : > { %972 = vrot.lane.b32.xlu1 %v7489_v10, %s8594_s26  ;;  %s8639_s26 = smov 72  }
 0x791   : > { %1021 = vrot.lane.b32.xlu1 %v7516_v38, %s8592_s17  ;;  %s8638_s17 = smov 104  }
 0x809   : > { %v962_v44 = vpop.xlane.xlu1 %961 }
 0x80a   : > { %v963_v45 = vsub.f32 %v954_v39, %v962_v44  ;;  %v7050_v39 = vld [vmem:[#allocation2 + $0x58] sm:$0xff]  }
 0x80c   : > { %v964_v46 = vmul.f32 1.442695, %v963_v45 }
 0x80d   : > { %v973_v51 = vpop.permute.xlu1 %972 }
 0x80e   : > { %7115 = vpow2.f32 %v964_v46  ;;  %v978_v53 = vsel %vm497_vm3, %v973_v51, 0 }
 0x811   : > { %v1022_v56 = vpop.permute.xlu1 %1021 }
 0x812   : > { %v1027_v57 = vsel %vm497_vm3, %v1022_v56, 0 }
 0x813   : > { %6432 = vmatpush3.bf16.msra.mxu0 %v1027_v57 }
 0x814   : > { %6445 = vmatprep.subr.bf16.mxu0 %v7318_v0 }
 0x818   : > { %v7116_v47 = vpop.eup %7115 }
 0x819   : > { %v966_v48 = vsel %vm433_vm2, %v7116_v47, 0.0 }
 0x81a   : > { %967 = vadd.xlane.f32.xlu0 %v966_v48 }
 0x830   : > { %861 = vrot.lane.b32.xlu0 %v7516_v38, %s8608_s18 }
 0x8a7   : > { %v968_v49 = vpop.xlane.xlu0 %967 }
 0x8a8   : > { %7117 = vrcp.f32 %v968_v49  ;;  %v5911_v49 = vld [vmem:[%s8635_s3 + $0x3] ss:$0 sm:$0xff] }
 0x8ab   : > { %v862_v50 = vpop.permute.xlu0 %861 }
 0x8ac   : > { %v867_v10 = vsel %vm497_vm3, %v862_v50, 0 }
 0x8ad   : > { %6414 = vmatpush3.bf16.msra.mxu1 %v867_v10 }
 0x8ae   : > { %6425 = vmatprep.subr.bf16.mxu1 %v7318_v0 }
 0x8b0   : > { %6416 = vmatmul.mubr.msk.bf16.vlgmr.msra.gmra.mrb[20].mxu1 %vm433_vm2, %v860_v52 }
 0x8b1   : > { %6426 = vmatpush3.bf16.msra.mxu1 %v978_v53  ;;  %6427 = vmatprep.mubr.msk.bf16.mxu1 %vm7319_vm0, %v7318_v0 }
 0x8b2   : > { %v7118_v54 = vpop.eup %7117  ;;  %6437 = vmatprep.subr.bf16.mxu1 %v7318_v0 }
 0x8b3   : > { %v970_v38 = vmul.f32 %v7118_v54, %v7116_v47 }
 0x8b5   : > { %v971_v55 = vpack.c.bf16 %v970_v38, %v970_v38 }
 0x8b8   : > { %6428 = vmatmul.mubr.msk.bf16.vlgmr.msra.gmra.mrb[24].mxu1 %vm433_vm2, %v971_v55 }
 0x8b9   : > { %6441 = vmatprep.mubr.msk.bf16.mxu1 %vm7319_vm0, %v7318_v0  ;;  %6438 = vmatpush3.bf16.msra.mxu1 %v7042_v21 }
 0x8ba   : > { %6439 = vmatprep.subr.bf16.mxu1 %v7318_v0 }
 0x8bd   : > { %6440 = vmatpush3.bf16.msra.mxu1 %v7043_v22 }
 0x8be   : > { %6465 = vmatprep.subr.bf16.mxu1 %v7318_v0 }
 0x983   : > { %v903_v58 = vpop.f32.mrb[20].mxu1 }
 0x984   : > { %v909_v59 = vadd.f32 %v903_v58, %v7549_v11  ;;  %v6417_v60 = vpop.f32.mrb[21].mxu1 }
 0x985   : > { %v906_v61 = vpop.f32.mrb[22].mxu1  ;;  %v7052_v60 = vld [vmem:[#allocation2 + $0x68] sm:$0xff]  }
 0x986   : > { %v6418_v62 = vpop.f32.mrb[23].mxu1  ;;  %v7053_v61 = vld [vmem:[#allocation2 + $0x70] sm:$0xff]  }
 0x98b   : > { %v1014_v63 = vpop.f32.mrb[24].mxu1 }
 0x98c   : > { %v1020_v1 = vpack.c.bf16 %v1014_v63, %v1014_v63  ;;  %v6429_v2 = vpop.f32.mrb[25].mxu1 }
 0x98d   : > { %v1017_v4 = vpop.f32.mrb[26].mxu1 }
 0x98e   : > { %v6430_v5 = vpop.f32.mrb[27].mxu1  ;;  %6434 = vmatmul.mubr.msk.bf16.vlgmr.msra.gmra.mrb[20].mxu0 %vm433_vm2, %v1020_v1  ;;  %v5920_v4 = vld [vmem:[%s8635_s3 + $0x6] ss:$0 sm:$0xff] }
 0x98f   : > { %6461 = vmatprep.mubr.msk.bf16.mxu0 %vm7319_vm0, %v7318_v0  ;;  %6446 = vmatpush3.bf16.msra.mxu0 %v7044_v23 }
 0x990   : > { %6447 = vmatprep.subr.bf16.mxu0 %v7318_v0 }
 0xa61   : > { %v1063_v7 = vpop.f32.mrb[20].mxu0 }
 0xa62   : > { %v1069_v8 = vadd.f32 %v1063_v7, %v909_v59  ;;  %v6435_v9 = vpop.f32.mrb[21].mxu0 }
 0xa63   : > { %v1066_v11 = vpop.f32.mrb[22].mxu0 }
 0xa64   : > { %v1074_v12 = vadd.f32 %v5904_v6, %v1069_v8  ;;  %v6436_v13 = vpop.f32.mrb[23].mxu0  ;;  %v5921_v6 = vld [vmem:[%s8635_s3 + $0x7] ss:$0 sm:$0xff]  ;;  %v5930_v11 = vld [vmem:[%s8635_s3 + $0x8] ss:$0 sm:$0xff] }
 0xa66   : > { %v1075_v14 = vadd.f32 %v1074_v12, %v7477_v3  ;;  %v7045_v3 = vld [vmem:[#allocation2 + $0x30] sm:$0xff]  }
 0xa67   : > { %6448 = vmatpush3.bf16.msra.mxu0 %v7045_v3 }
 0xa68   : > { %v1076_v15 = vsel %vm385_vm1, %v1075_v14, 0.0  ;;  %6449 = vmatprep.subr.bf16.mxu0 %v7318_v0 }
 0xa69   : > { %1077 = vadd.xlane.f32.xlu0 %v1076_v15 }
 0xa6b   : > { %6450 = vmatpush3.bf16.msra.mxu0 %v7046_v24 }
 0xa6c   : > { %6451 = vmatprep.subr.bf16.mxu0 %v7318_v0 }
 0xa6f   : > { %6452 = vmatpush3.bf16.msra.mxu0 %v7047_v25 }
 0xa70   : > { %6453 = vmatprep.subr.bf16.mxu0 %v7318_v0 }
 0xa73   : > { %6454 = vmatpush3.bf16.msra.mxu0 %v7048_v26 }
 0xa74   : > { %6455 = vmatprep.subr.bf16.mxu0 %v7318_v0 }
 0xa77   : > { %6456 = vmatpush3.bf16.msra.mxu0 %v7049_v27 }
 0xa78   : > { %6457 = vmatprep.subr.bf16.mxu0 %v7318_v0 }
 0xa7b   : > { %6458 = vmatpush3.bf16.msra.mxu0 %v7050_v39 }
 0xa7c   : > { %6459 = vmatprep.subr.bf16.mxu0 %v7318_v0 }
 0xa7f   : > { %6460 = vmatpush3.bf16.msra.mxu0 %v7051_v40 }
 0xa80   : > { %6491 = vmatprep.subr.bf16.mxu0 %v7318_v0 }
 0xaf6   : > { %v1078_v16 = vpop.xlane.xlu0 %1077 }
 0xaf7   : > { %v1080_v17 = vmul.f32 0.03125, %v1078_v16 }
 0xaf9   : > { %v1081_v18 = vsub.f32 %v1075_v14, %v1080_v17 }
 0xafb   : > { %v1082_v19 = vmul.f32 %v1081_v18, %v1081_v18 }
 0xafd   : > { %v1083_v20 = vsel %vm385_vm1, %v1082_v19, 0.0 }
 0xafe   : > { %1084 = vadd.xlane.f32.xlu1 %v1083_v20 }
 0xb8b   : > { %v1085_v28 = vpop.xlane.xlu1 %1084 }
 0xb8c   : > { %v1086_v29 = vmul.f32 0.03125, %v1085_v28 }
 0xb8e   : > { %v1087_v30 = vadd.f32 1e-05, %v1086_v29 }
 0xb90   : > { %7119 = vrsqrt.f32 %v1087_v30 }
 0xb9a   : > { %v7120_v31 = vpop.eup %7119 }
 0xb9b   : > { %v1089_v33 = vmul.f32 %v7120_v31, %v1081_v18 }
 0xb9d   : > { %v1094_v35 = vmul.f32 %v5905_v32, %v1089_v33 }
 0xb9f   : > { %v1099_v36 = vadd.f32 %v5906_v34, %v1094_v35 }
 0xba1   : > { %v1100_v37 = vpack.c.bf16 %v1099_v36, %v1099_v36 }
 0xba3   : > { %6442 = vmatmul.mubr.msk.bf16.vlgmr.msra.gmra.mrb[28].mxu1 %vm385_vm1, %v1100_v37 }
 0xba4   : > { %6469 = vmatprep.mubr.msk.bf16.mxu1 %vm7319_vm0, %v7318_v0  ;;  %6466 = vmatpush3.bf16.msra.mxu1 %v7052_v60 }
 0xba5   : > { %6467 = vmatprep.subr.bf16.mxu1 %v7318_v0 }
 0xba8   : > { %6468 = vmatpush3.bf16.msra.mxu1 %v7053_v61 }
 0xba9   : > { %6473 = vmatprep.subr.bf16.mxu1 %v7318_v0 }
 0xc76   : > { %v1154_v42 = vpop.f32.mrb[28].mxu1 }
 0xc77   : > { %v1155_v43 = vadd.f32 %v5907_v41, %v1154_v42  ;;  %v6443_v44 = vpop.f32.mrb[29].mxu1 }
 0xc78   : > { %v1157_v45 = vpop.f32.mrb[30].mxu1 }
 0xc79   : > { %v1160_v46 = vmax.f32 %v1155_v43, 0.0  ;;  %v6444_v47 = vpop.f32.mrb[31].mxu1 }
 0xc7b   : > { %v1161_v48 = vpack.c.bf16 %v1160_v46, %v1160_v46 }
 0xc7d   : > { %6462 = vmatmul.mubr.bf16.vlgmr.msra.gmra.mrb[24].mxu0 %v1161_v48 }
 0xc7e   : > { %6493 = vmatprep.mubr.msk.bf16.mxu0 %vm7319_vm0, %v7318_v0 }
 0xd50   : > { %v1248_v50 = vpop.f32.mrb[24].mxu0 }
 0xd51   : > { %v1249_v10 = vadd.f32 %v5911_v49, %v1248_v50  ;;  %v6463_v51 = vpop.f32.mrb[25].mxu0 }
 0xd52   : > { %v1251_v52 = vpop.f32.mrb[26].mxu0 }
 0xd53   : > { %v6464_v53 = vpop.f32.mrb[27].mxu0  ;;  %v1254_v54 = vadd.f32 %v1249_v10, %v1099_v36 }
 0xd55   : > { %v1255_v38 = vsel %vm385_vm1, %v1254_v54, 0.0 }
 0xd56   : > { %1256 = vadd.xlane.f32.xlu0 %v1255_v38 }
 0xde3   : > { %v1257_v55 = vpop.xlane.xlu0 %1256 }
 0xde4   : > { %v1258_v56 = vmul.f32 0.03125, %v1257_v55 }
 0xde6   : > { %v1259_v57 = vsub.f32 %v1254_v54, %v1258_v56  ;;  %v1283_v54 = vld [vmem:[#allocation2 + $0x78] sm:$0xf] }
 0xde7   : > { %v7684_v38 = vcombine.low %v1283_v54, %v1283_v54  ;;  %v1650_v61 = vsel %vm497_vm3, %v1283_v54, 0 }
 0xde8   : > { %v1260_v58 = vmul.f32 %v1259_v57, %v1259_v57 }
 0xdea   : > { %v1261_v59 = vsel %vm385_vm1, %v1260_v58, 0.0 }
 0xdeb   : > { %1262 = vadd.xlane.f32.xlu0 %v1261_v59 }
 0xe78   : > { %v1263_v62 = vpop.xlane.xlu0 %1262 }
 0xe79   : > { %v1264_v63 = vmul.f32 0.03125, %v1263_v62 }
 0xe7b   : > { %v1265_v1 = vadd.f32 1e-05, %v1264_v63 }
 0xe7d   : > { %7121 = vrsqrt.f32 %v1265_v1 }
 0xe87   : > { %v7122_v2 = vpop.eup %7121 }
 0xe88   : > { %v1267_v5 = vmul.f32 %v7122_v2, %v1259_v57 }
 0xe8a   : > { %v1272_v7 = vmul.f32 %v5920_v4, %v1267_v5 }
 0xe8c   : > { %v7636_v8 = vadd.f32 %v5921_v6, %v1272_v7 }
 0xe8e   : > { %v1313_v9 = vpack.c.bf16 %v7636_v8, %v7636_v8 }
 0xe90   : > { %6470 = vmatmul.mubr.msk.bf16.vlgmr.msra.gmra.mrb[32].mxu1 %vm385_vm1, %v1313_v9 }
 0xe91   : > { %6475 = vmatprep.mubr.msk.bf16.mxu1 %vm7319_vm0, %v7318_v0 }
 0xf63   : > { %v1367_v12 = vpop.f32.mrb[32].mxu1 }
 0xf64   : > { %v1368_v13 = vadd.f32 %v5930_v11, %v1367_v12  ;;  %v6471_v14 = vpop.f32.mrb[33].mxu1 }
 0xf65   : > { %v1370_v15 = vpop.f32.mrb[34].mxu1 }
 0xf66   : > { %v7646_v16 = vpack.c.bf16 %v1368_v13, %v1368_v13  ;;  %v6472_v17 = vpop.f32.mrb[35].mxu1 }
 0xf68   : > { %1375 = vrot.lane.b32.xlu1 %v7646_v16, %s8614_s12 }
 0xf6c   : > { %1486 = vrot.lane.b32.xlu1 %v7646_v16, %s8612_s13  ;;  %s8646_s13 = smov 120  }
 0xf70   : > { %1484 = vrot.lane.b32.xlu1 %v7646_v16, %s8610_s10  ;;  %s8651_s10 = smov 80  }
 0xfda   : > { %v1376_v18 = vpop.permute.xlu1 %1375 }
 0xfdb   : > { %v1381_v19 = vsel %vm433_vm2, %v1376_v18, 0 }
 0xfdc   : > { %6474 = vmatpush3.bf16.xpose.msra.mxu1 %v1381_v19 }
 0xfdd   : > { %6479 = vmatprep.subr.bf16.mxu1 %v7318_v0 }
 0xfde   : > { %v1487_v34 = vpop.permute.xlu1 %1486 }
 0xfdf   : > { %v1492_v36 = vsel %vm433_vm2, %v1487_v34, 0 }
 0xfe2   : > { %v1485_v37 = vpop.permute.xlu1 %1484 }
 0xfe3   : > { %6476 = vmatmul.mubr.msk.bf16.vlgmr.msra.gmra.mrb[36].mxu1 %vm433_vm2, %v7646_v16 }
 0xfe4   : > { %6481 = vmatprep.mubr.msk.bf16.mxu1 %vm7319_vm0, %v7318_v0 }
0x10b6   : > { %v1417_v20 = vpop.f32.mrb[36].mxu1 }
0x10b7   : > { %v6477_v21 = vpop.f32.mrb[37].mxu1  ;;  %v1423_v22 = vsel %vm433_vm2, %v1417_v20, -inf }
0x10b8   : > { %1424 = vmax.xlane.f32.xlu0 %v1423_v22  ;;  %v1420_v23 = vpop.f32.mrb[38].mxu1 }
0x10b9   : > { %v6478_v3 = vpop.f32.mrb[39].mxu1 }
0x1145   : > { %v1425_v24 = vpop.xlane.xlu0 %1424 }
0x1146   : > { %v1426_v25 = vsub.f32 %v1417_v20, %v1425_v24 }
0x1148   : > { %v1427_v26 = vmul.f32 1.442695, %v1426_v25 }
0x114a   : > { %7123 = vpow2.f32 %v1427_v26 }
0x1154   : > { %v7124_v27 = vpop.eup %7123 }
0x1155   : > { %v1429_v28 = vsel %vm433_vm2, %v7124_v27, 0.0 }
0x1156   : > { %1430 = vadd.xlane.f32.xlu0 %v1429_v28 }
0x116c   : > { %1435 = vrot.lane.b32.xlu0 %v7646_v16, %s8608_s18 }
0x11e3   : > { %v1431_v29 = vpop.xlane.xlu0 %1430 }
0x11e4   : > { %7125 = vrcp.f32 %v1431_v29 }
0x11e7   : > { %v1436_v30 = vpop.permute.xlu0 %1435 }
0x11e8   : > { %v1441_v31 = vsel %vm497_vm3, %v1436_v30, 0 }
0x11e9   : > { %6480 = vmatpush3.bf16.msra.mxu1 %v1441_v31 }
0x11ea   : > { %6485 = vmatprep.subr.bf16.mxu1 %v7318_v0 }
0x11ee   : > { %v7126_v32 = vpop.eup %7125 }
0x11ef   : > { %v1433_v33 = vmul.f32 %v7126_v32, %v7124_v27 }
0x11f1   : > { %v1434_v35 = vpack.c.bf16 %v1433_v33, %v1433_v33 }
0x11f3   : > { %6482 = vmatmul.mubr.msk.bf16.vlgmr.msra.gmra.mrb[40].mxu1 %vm433_vm2, %v1434_v35 }
0x11f4   : > { %6486 = vmatpush3.bf16.xpose.msra.mxu1 %v1492_v36  ;;  %6487 = vmatprep.mubr.msk.bf16.mxu1 %vm7319_vm0, %v7318_v0 }
0x11f5   : > { %6497 = vmatprep.subr.bf16.mxu1 %v7318_v0 }
0x11fb   : > { %6488 = vmatmul.mubr.msk.bf16.vlgmr.msra.gmra.mrb[44].mxu1 %vm433_vm2, %v1485_v37 }
0x11fc   : > { %6499 = vmatprep.mubr.msk.bf16.mxu1 %vm7319_vm0, %v7318_v0 }
0x12c6   : > { %v1477_v39 = vpop.f32.mrb[40].mxu1 }
0x12c7   : > { %v6483_v40 = vpop.f32.mrb[41].mxu1  ;;  %v1483_v62 = vpack.c.bf16 %v1477_v39, %v1477_v39 }
0x12c8   : > { %v1480_v41 = vpop.f32.mrb[42].mxu1 }
0x12c9   : > { %v6484_v42 = vpop.f32.mrb[43].mxu1 }
0x12ce   : > { %v1528_v43 = vpop.f32.mrb[44].mxu1 }
0x12cf   : > { %v6489_v44 = vpop.f32.mrb[45].mxu1  ;;  %v1534_v45 = vsel %vm433_vm2, %v1528_v43, -inf }
0x12d0   : > { %1535 = vmax.xlane.f32.xlu1 %v1534_v45  ;;  %v1531_v46 = vpop.f32.mrb[46].mxu1 }
0x12d1   : > { %v6490_v47 = vpop.f32.mrb[47].mxu1 }
0x12e1   : > { %1546 = vrot.lane.b32.xlu1 %v7646_v16, %s8606_s21  ;;  %s8649_s21 = smov 64  }
0x12e5   : > { %1694 = vrot.lane.b32.xlu1 %v7646_v16, %s8604_s22  ;;  %s8650_s22 = smov 56  }
0x12e9   : > { %1692 = vrot.lane.b32.xlu1 %v7646_v16, %s8636_s20 }
0x135d   : > { %v1536_v48 = vpop.xlane.xlu1 %1535 }
0x135e   : > { %v1537_v49 = vsub.f32 %v1528_v43, %v1536_v48 }
0x1360   : > { %v1538_v50 = vmul.f32 1.442695, %v1537_v49 }
0x1361   : > { %v1547_v10 = vpop.permute.xlu1 %1546 }
0x1362   : > { %7127 = vpow2.f32 %v1538_v50  ;;  %v1552_v51 = vsel %vm497_vm3, %v1547_v10, 0 }
0x1363   : > { %6492 = vmatpush3.bf16.msra.mxu0 %v1552_v51 }
0x1364   : > { %6503 = vmatprep.subr.bf16.mxu0 %v7318_v0 }
0x1365   : > { %v1695_v63 = vpop.permute.xlu1 %1694 }
0x1366   : > { %v1700_v6 = vsel %vm433_vm2, %v1695_v63, 0 }
0x1369   : > { %v1693_v12 = vpop.permute.xlu1 %1692 }
0x136c   : > { %v7128_v52 = vpop.eup %7127 }
0x136d   : > { %v1540_v53 = vsel %vm433_vm2, %v7128_v52, 0.0 }
0x136e   : > { %1541 = vadd.xlane.f32.xlu0 %v1540_v53 }
0x1384   : > { %1598 = vrot.lane.b32.xlu0 %v7684_v38, %s8614_s12  ;;  %s8645_s12 = smov 88  }
0x13fb   : > { %v1542_v55 = vpop.xlane.xlu0 %1541 }
0x13fc   : > { %7129 = vrcp.f32 %v1542_v55 }
0x13ff   : > { %v1599_v58 = vpop.permute.xlu0 %1598 }
0x1400   : > { %v1604_v59 = vsel %vm497_vm3, %v1599_v58, 0 }
0x1401   : > { %6498 = vmatpush3.bf16.msra.mxu1 %v1604_v59 }
0x1402   : > { %6509 = vmatprep.subr.bf16.mxu1 %v7318_v0 }
0x1406   : > { %v7130_v56 = vpop.eup %7129 }
0x1407   : > { %v1544_v57 = vmul.f32 %v7130_v56, %v7128_v52 }
0x1409   : > { %v1545_v60 = vpack.c.bf16 %v1544_v57, %v1544_v57 }
0x140b   : > { %6494 = vmatmul.mubr.msk.bf16.vlgmr.msra.gmra.mrb[28].mxu0 %vm433_vm2, %v1545_v60 }
0x140c   : > { %6504 = vmatpush3.bf16.msra.mxu0 %v1650_v61  ;;  %6505 = vmatprep.mubr.msk.bf16.mxu0 %vm7319_vm0, %v7318_v0 }
0x140d   : > { %6515 = vmatprep.subr.bf16.mxu0 %v7318_v0 }
0x1413   : > { %6506 = vmatmul.mubr.msk.bf16.vlgmr.msra.gmra.mrb[32].mxu0 %vm433_vm2, %v1483_v62 }
0x1414   : > { %6517 = vmatprep.mubr.msk.bf16.mxu0 %vm7319_vm0, %v7318_v0 }
0x14de   : > { %v1588_v1 = vpop.f32.mrb[28].mxu0 }
0x14df   : > { %v1594_v2 = vpack.c.bf16 %v1588_v1, %v1588_v1  ;;  %v6495_v4 = vpop.f32.mrb[29].mxu0 }
0x14e0   : > { %v1591_v5 = vpop.f32.mrb[30].mxu0 }
0x14e1   : > { %v6496_v7 = vpop.f32.mrb[31].mxu0  ;;  %6500 = vmatmul.mubr.msk.bf16.vlgmr.msra.gmra.mrb[48].mxu1 %vm433_vm2, %v1594_v2 }
0x14e2   : > { %6510 = vmatpush3.bf16.xpose.msra.mxu1 %v1700_v6  ;;  %6511 = vmatprep.mubr.msk.bf16.mxu1 %vm7319_vm0, %v7318_v0 }
0x14e3   : > { %6521 = vmatprep.subr.bf16.mxu1 %v7318_v0 }
0x14e6   : > { %v1686_v9 = vpop.f32.mrb[32].mxu0 }
0x14e7   : > { %v6507_v11 = vpop.f32.mrb[33].mxu0 }
0x14e8   : > { %v1689_v13 = vpop.f32.mrb[34].mxu0 }
0x14e9   : > { %v6508_v14 = vpop.f32.mrb[35].mxu0  ;;  %6512 = vmatmul.mubr.msk.bf16.vlgmr.msra.gmra.mrb[52].mxu1 %vm433_vm2, %v1693_v12  ;;  %v5947_v12 = vld [vmem:[%s8635_s3 + $0x9] ss:$0 sm:$0xff] }
0x14ea   : > { %6523 = vmatprep.mubr.msk.bf16.mxu1 %vm7319_vm0, %v7318_v0 }
0x15b4   : > { %v1640_v15 = vpop.f32.mrb[48].mxu1 }
0x15b5   : > { %v7706_v17 = vadd.f32 %v1686_v9, %v1640_v15  ;;  %v6501_v18 = vpop.f32.mrb[49].mxu1 }
0x15b6   : > { %v1643_v19 = vpop.f32.mrb[50].mxu1 }
0x15b7   : > { %v6502_v20 = vpop.f32.mrb[51].mxu1 }
0x15bc   : > { %v1736_v21 = vpop.f32.mrb[52].mxu1 }
0x15bd   : > { %v6513_v22 = vpop.f32.mrb[53].mxu1  ;;  %v1742_v23 = vsel %vm433_vm2, %v1736_v21, -inf }
0x15be   : > { %1743 = vmax.xlane.f32.xlu0 %v1742_v23  ;;  %v1739_v3 = vpop.f32.mrb[54].mxu1 }
0x15bf   : > { %v6514_v24 = vpop.f32.mrb[55].mxu1 }
0x15d4   : > { %1754 = vrot.lane.b32.xlu0 %v7646_v16, %s8637_s23 }
0x15d8   : > { %1852 = vrot.lane.b32.xlu0 %v7646_v16, %s8638_s17 }
0x164b   : > { %v1744_v25 = vpop.xlane.xlu0 %1743 }
0x164c   : > { %v1745_v26 = vsub.f32 %v1736_v21, %v1744_v25 }
0x164e   : > { %v1746_v27 = vmul.f32 1.442695, %v1745_v26  ;;  %v7055_v26 = vld [vmem:[#allocation2 + $0x80] sm:$0xff]  }
0x164f   : > { %v1755_v28 = vpop.permute.xlu0 %1754 }
0x1650   : > { %7131 = vpow2.f32 %v1746_v27  ;;  %v1760_v29 = vsel %vm497_vm3, %v1755_v28, 0  ;;  %v7056_v27 = vld [vmem:[#allocation2 + $0x88] sm:$0xff]   ;;  %v7059_v28 = vld [vmem:[#allocation2 + $0x90] sm:$0xff]  }
0x1651   : > { %6516 = vmatpush3.bf16.msra.mxu0 %v1760_v29  ;;  %v7061_v29 = vld [vmem:[#allocation2 + $0xa0] sm:$0xff]  }
0x1652   : > { %6527 = vmatprep.subr.bf16.mxu0 %v7318_v0 }
0x1653   : > { %v1853_v39 = vpop.permute.xlu0 %1852 }
0x165a   : > { %v7132_v30 = vpop.eup %7131 }
0x165b   : > { %v1748_v31 = vsel %vm433_vm2, %v7132_v30, 0.0 }
0x165c   : > { %1749 = vadd.xlane.f32.xlu1 %v1748_v31  ;;  %v7063_v31 = vld [vmem:[#allocation2 + $0xb0] sm:$0xff]  }
0x166d   : > { %1854 = vrot.lane.b32.xlu1 %v7646_v16, %s8639_s26 }
0x16e9   : > { %v1750_v32 = vpop.xlane.xlu1 %1749 }
0x16ea   : > { %7133 = vrcp.f32 %v1750_v32  ;;  %v7064_v32 = vld [vmem:[#allocation2 + $0xb8] sm:$0xff]  }
0x16ed   : > { %v1855_v35 = vpop.permute.xlu1 %1854 }
0x16ee   : > { %v1860_v37 = vsel %vm433_vm2, %v1855_v35, 0 }
0x16f4   : > { %v7134_v33 = vpop.eup %7133 }
0x16f5   : > { %v1752_v34 = vmul.f32 %v7134_v33, %v7132_v30  ;;  %v7062_v30 = vld [vmem:[#allocation2 + $0xa8] sm:$0xff]  }
0x16f7   : > { %v1753_v36 = vpack.c.bf16 %v1752_v34, %v1752_v34 }
0x16f9   : > { %6518 = vmatmul.mubr.msk.bf16.vlgmr.msra.gmra.mrb[36].mxu0 %vm433_vm2, %v1753_v36 }
0x16fa   : > { %6528 = vmatpush3.bf16.xpose.msra.mxu0 %v1860_v37  ;;  %6529 = vmatprep.mubr.msk.bf16.mxu0 %vm7319_vm0, %v7318_v0  ;;  %v5948_v37 = vld [vmem:[%s8635_s3 + $0xc] ss:$0 sm:$0xff] }
0x16fb   : > { %6539 = vmatprep.subr.bf16.mxu0 %v7318_v0 }
0x1701   : > { %6530 = vmatmul.mubr.msk.bf16.vlgmr.msra.gmra.mrb[40].mxu0 %vm433_vm2, %v1853_v39 }
0x1702   : > { %6541 = vmatprep.mubr.msk.bf16.mxu0 %vm7319_vm0, %v7318_v0 }
0x17cc   : > { %v1796_v40 = vpop.f32.mrb[36].mxu0 }
0x17cd   : > { %v6519_v41 = vpop.f32.mrb[37].mxu0  ;;  %v1802_v56 = vpack.c.bf16 %v1796_v40, %v1796_v40  ;;  %v5949_v40 = vld [vmem:[%s8635_s3 + $0xd] ss:$0 sm:$0xff] }
0x17ce   : > { %v1799_v42 = vpop.f32.mrb[38].mxu0 }
0x17cf   : > { %v6520_v43 = vpop.f32.mrb[39].mxu0 }
0x17d0   : > { %v7057_v43 = vld [vmem:[%s8583_s4] sm:$0xff]  }
0x17d4   : > { %v1896_v44 = vpop.f32.mrb[40].mxu0 }
0x17d5   : > { %v6531_v45 = vpop.f32.mrb[41].mxu0  ;;  %v1902_v46 = vsel %vm433_vm2, %v1896_v44, -inf }
0x17d6   : > { %1903 = vmax.xlane.f32.xlu1 %v1902_v46  ;;  %v1899_v47 = vpop.f32.mrb[42].mxu0  ;;  %v7783_v45 = vld [vmem:[%s332_s29] sm:$0xff]  ;;  %v7058_v46 = vld [vmem:[%s8583_s4 + $0x8] sm:$0xff]  }
0x17d7   : > { %v6532_v48 = vpop.f32.mrb[43].mxu0  ;;  %v2273_v47 = vpack.c.bf16 %v7783_v45, %v7783_v45 }
0x17d8   : > { %v7065_v48 = vld [vmem:[#allocation2 + $0xc0] sm:$0xff]  }
0x17e7   : > { %1914 = vrot.lane.b32.xlu1 %v7646_v16, %s8640_s24 }
0x17eb   : > { %1963 = vrot.lane.b32.xlu1 %v7684_v38, %s8641_s25 }
0x1863   : > { %v1904_v49 = vpop.xlane.xlu1 %1903 }
0x1864   : > { %v1905_v50 = vsub.f32 %v1896_v44, %v1904_v49  ;;  %v7066_v49 = vld [vmem:[#allocation2 + $0xc8] sm:$0xff]  }
0x1866   : > { %v1906_v10 = vmul.f32 1.442695, %v1905_v50  ;;  %v5950_v50 = vld [vmem:[%s8635_s3 + $0xa] ss:$0 sm:$0xff] }
0x1867   : > { %v1915_v16 = vpop.permute.xlu1 %1914 }
0x1868   : > { %7135 = vpow2.f32 %v1906_v10  ;;  %v1920_v57 = vsel %vm497_vm3, %v1915_v16, 0 }
0x186b   : > { %v1964_v60 = vpop.permute.xlu1 %1963 }
0x186c   : > { %v1969_v61 = vsel %vm497_vm3, %v1964_v60, 0 }
0x186d   : > { %6540 = vmatpush3.bf16.msra.mxu0 %v1969_v61 }
0x186e   : > { %6553 = vmatprep.subr.bf16.mxu0 %v7318_v0 }
0x1872   : > { %v7136_v51 = vpop.eup %7135 }
0x1873   : > { %v1908_v52 = vsel %vm433_vm2, %v7136_v51, 0.0 }
0x1874   : > { %1909 = vadd.xlane.f32.xlu0 %v1908_v52 }
0x188a   : > { %1803 = vrot.lane.b32.xlu0 %v7684_v38, %s8608_s18  ;;  %s7332_s18 = smov [#allocation5]  }
0x188b   : > { %s7251_s0 = sshll.u32 %s7332_s18, 4  ;;  %s7252_s0 = int_to_ptr.vmem [resolvable:$false] %s7251_s0 }
0x1901   : > { %v1910_v53 = vpop.xlane.xlu0 %1909 }
0x1902   : > { %7137 = vrcp.f32 %v1910_v53 }
0x1905   : > { %v1804_v54 = vpop.permute.xlu0 %1803 }
0x1906   : > { %v1809_v55 = vsel %vm497_vm3, %v1804_v54, 0 }
0x1907   : > { %6522 = vmatpush3.bf16.msra.mxu1 %v1809_v55 }
0x1908   : > { %6533 = vmatprep.subr.bf16.mxu1 %v7318_v0 }
0x190a   : > { %6524 = vmatmul.mubr.msk.bf16.vlgmr.msra.gmra.mrb[56].mxu1 %vm433_vm2, %v1802_v56  ;;  %v5965_v56 = vld [vmem:[%s8584_s5] ss:$0 sm:$0xff] }
0x190b   : > { %6534 = vmatpush3.bf16.msra.mxu1 %v1920_v57  ;;  %6535 = vmatprep.mubr.msk.bf16.mxu1 %vm7319_vm0, %v7318_v0 }
0x190c   : > { %v7138_v58 = vpop.eup %7137  ;;  %6545 = vmatprep.subr.bf16.mxu1 %v7318_v0 }
0x190d   : > { %v1912_v38 = vmul.f32 %v7138_v58, %v7136_v51 }
0x190f   : > { %v1913_v59 = vpack.c.bf16 %v1912_v38, %v1912_v38 }
0x1912   : > { %6536 = vmatmul.mubr.msk.bf16.vlgmr.msra.gmra.mrb[60].mxu1 %vm433_vm2, %v1913_v59 }
0x1913   : > { %6549 = vmatprep.mubr.msk.bf16.mxu1 %vm7319_vm0, %v7318_v0  ;;  %6546 = vmatpush3.bf16.msra.mxu1 %v7055_v26 }
0x1914   : > { %6547 = vmatprep.subr.bf16.mxu1 %v7318_v0 }
0x1917   : > { %6548 = vmatpush3.bf16.msra.mxu1 %v7056_v27 }
0x1918   : > { %6573 = vmatprep.subr.bf16.mxu1 %v7318_v0 }
0x19dd   : > { %v1845_v62 = vpop.f32.mrb[56].mxu1 }
0x19de   : > { %v1851_v63 = vadd.f32 %v1845_v62, %v7706_v17  ;;  %v6525_v1 = vpop.f32.mrb[57].mxu1 }
0x19df   : > { %v1848_v2 = vpop.f32.mrb[58].mxu1 }
0x19e0   : > { %v6526_v4 = vpop.f32.mrb[59].mxu1 }
0x19e5   : > { %v1956_v5 = vpop.f32.mrb[60].mxu1 }
0x19e6   : > { %v1962_v6 = vpack.c.bf16 %v1956_v5, %v1956_v5  ;;  %v6537_v7 = vpop.f32.mrb[61].mxu1 }
0x19e7   : > { %v1959_v9 = vpop.f32.mrb[62].mxu1 }
0x19e8   : > { %v6538_v11 = vpop.f32.mrb[63].mxu1  ;;  %6542 = vmatmul.mubr.msk.bf16.vlgmr.msra.gmra.mrb[44].mxu0 %vm433_vm2, %v1962_v6  ;;  %v2221_v6 = vlaneseq }
0x19e9   : > { %6569 = vmatprep.mubr.msk.bf16.mxu0 %vm7319_vm0, %v7318_v0  ;;  %6554 = vmatpush3.bf16.msra.mxu0 %v7059_v28 }
0x19ea   : > { %6555 = vmatprep.subr.bf16.mxu0 %v7318_v0  ;;  %v2222_v7 = vshrl.u32 %v2221_v6, 7  ;;  %v2224_v9 = vand.u32 127, %v2221_v6 }
0x19ec   : > { %vm7823_vm4 = vcmp.ge.s32.totalorder %v2222_v7, %v2224_v9 }
0x1abb   : > { %v2005_v13 = vpop.f32.mrb[44].mxu0 }
0x1abc   : > { %v2011_v14 = vadd.f32 %v2005_v13, %v1851_v63  ;;  %v6543_v15 = vpop.f32.mrb[45].mxu0 }
0x1abd   : > { %v2008_v17 = vpop.f32.mrb[46].mxu0 }
0x1abe   : > { %v2016_v18 = vadd.f32 %v5947_v12, %v2011_v14  ;;  %v6544_v19 = vpop.f32.mrb[47].mxu0 }
0x1ac0   : > { %v2017_v20 = vadd.f32 %v2016_v18, %v7636_v8  ;;  %v7060_v8 = vld [vmem:[#allocation2 + $0x98] sm:$0xff]  }
0x1ac1   : > { %6556 = vmatpush3.bf16.msra.mxu0 %v7060_v8 }
0x1ac2   : > { %v2018_v21 = vsel %vm385_vm1, %v2017_v20, 0.0  ;;  %6557 = vmatprep.subr.bf16.mxu0 %v7318_v0 }
0x1ac3   : > { %2019 = vadd.xlane.f32.xlu0 %v2018_v21 }
0x1ac5   : > { %6558 = vmatpush3.bf16.msra.mxu0 %v7061_v29 }
0x1ac6   : > { %6559 = vmatprep.subr.bf16.mxu0 %v7318_v0 }
0x1ac9   : > { %6560 = vmatpush3.bf16.msra.mxu0 %v7062_v30 }
0x1aca   : > { %6561 = vmatprep.subr.bf16.mxu0 %v7318_v0 }
0x1acd   : > { %6562 = vmatpush3.bf16.msra.mxu0 %v7063_v31 }
0x1ace   : > { %6563 = vmatprep.subr.bf16.mxu0 %v7318_v0 }
0x1ad1   : > { %6564 = vmatpush3.bf16.msra.mxu0 %v7064_v32 }
0x1ad2   : > { %6565 = vmatprep.subr.bf16.mxu0 %v7318_v0 }
0x1ad5   : > { %6566 = vmatpush3.bf16.msra.mxu0 %v7065_v48 }
0x1ad6   : > { %6567 = vmatprep.subr.bf16.mxu0 %v7318_v0 }
0x1ad9   : > { %6568 = vmatpush3.bf16.msra.mxu0 %v7066_v49 }
0x1ada   : > { %6599 = vmatprep.subr.bf16.mxu0 %v7318_v0 }
0x1b50   : > { %v2020_v22 = vpop.xlane.xlu0 %2019 }
0x1b51   : > { %v2021_v23 = vmul.f32 0.03125, %v2020_v22 }
0x1b53   : > { %v2022_v3 = vsub.f32 %v2017_v20, %v2021_v23 }
0x1b55   : > { %v2023_v24 = vmul.f32 %v2022_v3, %v2022_v3 }
0x1b57   : > { %v2024_v25 = vsel %vm385_vm1, %v2023_v24, 0.0 }
0x1b58   : > { %2025 = vadd.xlane.f32.xlu1 %v2024_v25 }
0x1be5   : > { %v2026_v33 = vpop.xlane.xlu1 %2025 }
0x1be6   : > { %v2027_v34 = vmul.f32 0.03125, %v2026_v33 }
0x1be8   : > { %v2028_v35 = vadd.f32 1e-05, %v2027_v34 }
0x1bea   : > { %7139 = vrsqrt.f32 %v2028_v35 }
0x1bf4   : > { %v7140_v36 = vpop.eup %7139 }
0x1bf5   : > { %v2030_v39 = vmul.f32 %v7140_v36, %v2022_v3 }
0x1bf7   : > { %v2035_v41 = vmul.f32 %v5948_v37, %v2030_v39 }
0x1bf9   : > { %v7770_v42 = vadd.f32 %v5949_v40, %v2035_v41 }
0x1bfb   : > { %v2041_v44 = vpack.c.bf16 %v7770_v42, %v7770_v42 }
0x1bfd   : > { %6550 = vmatmul.mubr.msk.bf16.vlgmr.msra.gmra.mrb[64].mxu1 %vm385_vm1, %v2041_v44 }
0x1bfe   : > { %6574 = vmatpush3.bf16.msra.mxu1 %v7057_v43  ;;  %6577 = vmatprep.mubr.msk.bf16.mxu1 %vm7319_vm0, %v7318_v0 }
0x1bff   : > { %6575 = vmatprep.subr.bf16.mxu1 %v7318_v0 }
0x1c02   : > { %6576 = vmatpush3.bf16.msra.mxu1 %v7058_v46 }
0x1c03   : > { %6581 = vmatprep.subr.bf16.mxu1 %v7318_v0 }
0x1c05   : > { %6578 = vmatmul.mubr.msk.bf16.vlgmr.msra.gmra.mrb[68].mxu1 %vm385_vm1, %v2273_v47 }
0x1c06   : > { %6583 = vmatprep.mubr.msk.bf16.mxu1 %vm7319_vm0, %v7318_v0 }
0x1cd0   : > { %v2095_v10 = vpop.f32.mrb[64].mxu1 }
0x1cd1   : > { %v2096_v51 = vadd.f32 %v5950_v50, %v2095_v10  ;;  %v6551_v52 = vpop.f32.mrb[65].mxu1  ;;  %v2230_v10 = vld [vmem:[%s8583_s4 + $0x10] sm:$0xf] }
0x1cd2   : > { %v2098_v53 = vpop.f32.mrb[66].mxu1 }
0x1cd3   : > { %v2101_v54 = vmax.f32 %v2096_v51, 0.0  ;;  %v6552_v55 = vpop.f32.mrb[67].mxu1  ;;  %v7856_v51 = vcombine.low %v2230_v10, %v2230_v10 }
0x1cd5   : > { %v2102_v16 = vpack.c.bf16 %v2101_v54, %v2101_v54 }
0x1cd7   : > { %6570 = vmatmul.mubr.bf16.vlgmr.msra.gmra.mrb[48].mxu0 %v2102_v16 }
0x1cd8   : > { %v2327_v57 = vpop.f32.mrb[68].mxu1  ;;  %6601 = vmatprep.mubr.msk.bf16.mxu0 %vm7319_vm0, %v7318_v0 }
0x1cd9   : > { %v2328_v58 = vadd.f32 %v5965_v56, %v2327_v57  ;;  %v6579_v38 = vpop.f32.mrb[69].mxu1  ;;  %v2612_v57 = vsel %vm497_vm3, %v2230_v10, 0 }
0x1cda   : > { %v2330_v59 = vpop.f32.mrb[70].mxu1 }
0x1cdb   : > { %v7807_v60 = vpack.c.bf16 %v2328_v58, %v2328_v58  ;;  %v6580_v61 = vpop.f32.mrb[71].mxu1 }
0x1cdd   : > { %2335 = vrot.lane.b32.xlu0 %v7807_v60, %s8644_s19 }
0x1ce1   : > { %2447 = vrot.lane.b32.xlu0 %v7807_v60, %s8645_s12 }
0x1ce5   : > { %2445 = vrot.lane.b32.xlu0 %v7807_v60, %s8646_s13 }
0x1d4f   : > { %v2336_v62 = vpop.permute.xlu0 %2335 }
0x1d50   : > { %v2341_v63 = vsel %vm433_vm2, %v2336_v62, 0 }
0x1d51   : > { %6582 = vmatpush3.bf16.xpose.msra.mxu1 %v2341_v63 }
0x1d52   : > { %6587 = vmatprep.subr.bf16.mxu1 %v7318_v0 }
0x1d53   : > { %v2448_v28 = vpop.permute.xlu0 %2447 }
0x1d54   : > { %v2453_v29 = vsel %vm433_vm2, %v2448_v28, 0 }
0x1d57   : > { %v2446_v30 = vpop.permute.xlu0 %2445 }
0x1d58   : > { %6584 = vmatmul.mubr.msk.bf16.vlgmr.msra.gmra.mrb[72].mxu1 %vm433_vm2, %v7807_v60 }
0x1d59   : > { %6589 = vmatprep.mubr.msk.bf16.mxu1 %vm7319_vm0, %v7318_v0 }
0x1daa   : > { %v7821_v1 = vpop.f32.mrb[48].mxu0 }
0x1dab   : > { %v6571_v2 = vpop.f32.mrb[49].mxu0 }
0x1dac   : > { %v2192_v4 = vpop.f32.mrb[50].mxu0 }
0x1dad   : > { %v6572_v5 = vpop.f32.mrb[51].mxu0 }
0x1e2b   : > { %v2377_v12 = vpop.f32.mrb[72].mxu1 }
0x1e2c   : > { %v2383_v13 = vsel %vm7823_vm4, %v2377_v12, -1e+09  ;;  %v6585_v14 = vpop.f32.mrb[73].mxu1 }
0x1e2d   : > { %v2380_v15 = vpop.f32.mrb[74].mxu1  ;;  %v2384_v17 = vsel %vm433_vm2, %v2383_v13, -inf }
0x1e2e   : > { %2385 = vmax.xlane.f32.xlu1 %v2384_v17  ;;  %v6586_v18 = vpop.f32.mrb[75].mxu1 }
0x1ebb   : > { %v2386_v19 = vpop.xlane.xlu1 %2385 }
0x1ebc   : > { %v2387_v20 = vsub.f32 %v2383_v13, %v2386_v19 }
0x1ebe   : > { %v2388_v21 = vmul.f32 1.442695, %v2387_v20 }
0x1ec0   : > { %7141 = vpow2.f32 %v2388_v21 }
0x1eca   : > { %v7142_v22 = vpop.eup %7141 }
0x1ecb   : > { %v2390_v23 = vsel %vm433_vm2, %v7142_v22, 0.0 }
0x1ecc   : > { %2391 = vadd.xlane.f32.xlu1 %v2390_v23 }
0x1edd   : > { %2396 = vrot.lane.b32.xlu1 %v7807_v60, %s8649_s21 }
0x1f59   : > { %v2392_v3 = vpop.xlane.xlu1 %2391 }
0x1f5a   : > { %7143 = vrcp.f32 %v2392_v3 }
0x1f5d   : > { %v2397_v24 = vpop.permute.xlu1 %2396 }
0x1f5e   : > { %v2402_v25 = vsel %vm497_vm3, %v2397_v24, 0 }
0x1f5f   : > { %6588 = vmatpush3.bf16.msra.mxu1 %v2402_v25 }
0x1f60   : > { %6593 = vmatprep.subr.bf16.mxu1 %v7318_v0 }
0x1f64   : > { %v7144_v26 = vpop.eup %7143 }
0x1f65   : > { %v2394_v27 = vmul.f32 %v7144_v26, %v7142_v22 }
0x1f67   : > { %v2395_v8 = vpack.c.bf16 %v2394_v27, %v2394_v27 }
0x1f69   : > { %6590 = vmatmul.mubr.msk.bf16.vlgmr.msra.gmra.mrb[76].mxu1 %vm433_vm2, %v2395_v8 }
0x1f6a   : > { %6594 = vmatpush3.bf16.xpose.msra.mxu1 %v2453_v29  ;;  %6595 = vmatprep.mubr.msk.bf16.mxu1 %vm7319_vm0, %v7318_v0 }
0x1f6b   : > { %6605 = vmatprep.subr.bf16.mxu1 %v7318_v0 }
0x1f71   : > { %6596 = vmatmul.mubr.msk.bf16.vlgmr.msra.gmra.mrb[80].mxu1 %vm433_vm2, %v2446_v30 }
0x1f72   : > { %6607 = vmatprep.mubr.msk.bf16.mxu1 %vm7319_vm0, %v7318_v0 }
0x203c   : > { %v2438_v31 = vpop.f32.mrb[76].mxu1 }
0x203d   : > { %v6591_v32 = vpop.f32.mrb[77].mxu1  ;;  %v2444_v58 = vpack.c.bf16 %v2438_v31, %v2438_v31 }
0x203e   : > { %v2441_v33 = vpop.f32.mrb[78].mxu1 }
0x203f   : > { %v6592_v34 = vpop.f32.mrb[79].mxu1 }
0x2044   : > { %v2489_v35 = vpop.f32.mrb[80].mxu1 }
0x2045   : > { %v2495_v36 = vsel %vm7823_vm4, %v2489_v35, -1e+09  ;;  %v6597_v37 = vpop.f32.mrb[81].mxu1 }
0x2046   : > { %v2492_v39 = vpop.f32.mrb[82].mxu1  ;;  %v2496_v40 = vsel %vm433_vm2, %v2495_v36, -inf }
0x2047   : > { %2497 = vmax.xlane.f32.xlu0 %v2496_v40  ;;  %v6598_v41 = vpop.f32.mrb[83].mxu1 }
0x205d   : > { %2508 = vrot.lane.b32.xlu0 %v7807_v60, %s8650_s22 }
0x2061   : > { %2656 = vrot.lane.b32.xlu0 %v7807_v60, %s8651_s10 }
0x20d4   : > { %v2498_v43 = vpop.xlane.xlu0 %2497 }
0x20d5   : > { %v2499_v44 = vsub.f32 %v2495_v36, %v2498_v43 }
0x20d7   : > { %v2500_v46 = vmul.f32 1.442695, %v2499_v44 }
0x20d8   : > { %v2509_v47 = vpop.permute.xlu0 %2508 }
0x20d9   : > { %7145 = vpow2.f32 %v2500_v46  ;;  %v2514_v48 = vsel %vm497_vm3, %v2509_v47, 0 }
0x20da   : > { %6600 = vmatpush3.bf16.msra.mxu0 %v2514_v48 }
0x20db   : > { %6611 = vmatprep.subr.bf16.mxu0 %v7318_v0 }
0x20dc   : > { %v2657_v38 = vpop.permute.xlu0 %2656 }
0x20dd   : > { %v2662_v2 = vsel %vm433_vm2, %v2657_v38, 0 }
0x20e3   : > { %v7146_v49 = vpop.eup %7145 }
0x20e4   : > { %v2502_v50 = vsel %vm433_vm2, %v7146_v49, 0.0 }
0x20e5   : > { %2503 = vadd.xlane.f32.xlu1 %v2502_v50 }
0x20f6   : > { %2560 = vrot.lane.b32.xlu1 %v7856_v51, %s8644_s19 }
0x20fa   : > { %2654 = vrot.lane.b32.xlu1 %v7807_v60, %s8636_s20 }
0x2172   : > { %v2504_v52 = vpop.xlane.xlu1 %2503 }
0x2173   : > { %7147 = vrcp.f32 %v2504_v52 }
0x2176   : > { %v2561_v53 = vpop.permute.xlu1 %2560 }
0x2177   : > { %v2566_v54 = vsel %vm497_vm3, %v2561_v53, 0 }
0x2178   : > { %6606 = vmatpush3.bf16.msra.mxu1 %v2566_v54 }
0x2179   : > { %6617 = vmatprep.subr.bf16.mxu1 %v7318_v0 }
0x217a   : > { %v2655_v7 = vpop.permute.xlu1 %2654 }
0x217d   : > { %v7148_v55 = vpop.eup %7147 }
0x217e   : > { %v2506_v16 = vmul.f32 %v7148_v55, %v7146_v49  ;;  %v5954_v55 = vld [vmem:[%s8635_s3 + $0xb] ss:$0 sm:$0xff] }
0x2180   : > { %v2507_v56 = vpack.c.bf16 %v2506_v16, %v2506_v16 }
0x2182   : > { %6602 = vmatmul.mubr.msk.bf16.vlgmr.msra.gmra.mrb[52].mxu0 %vm433_vm2, %v2507_v56 }
0x2183   : > { %6612 = vmatpush3.bf16.msra.mxu0 %v2612_v57  ;;  %6613 = vmatprep.mubr.msk.bf16.mxu0 %vm7319_vm0, %v7318_v0 }
0x2184   : > { %6623 = vmatprep.subr.bf16.mxu0 %v7318_v0 }
0x218a   : > { %6614 = vmatmul.mubr.msk.bf16.vlgmr.msra.gmra.mrb[56].mxu0 %vm433_vm2, %v2444_v58 }
0x218b   : > { %6625 = vmatprep.mubr.msk.bf16.mxu0 %vm7319_vm0, %v7318_v0 }
0x2255   : > { %v2550_v59 = vpop.f32.mrb[52].mxu0 }
0x2256   : > { %v2556_v61 = vpack.c.bf16 %v2550_v59, %v2550_v59  ;;  %v6603_v62 = vpop.f32.mrb[53].mxu0 }
0x2257   : > { %v2553_v63 = vpop.f32.mrb[54].mxu0 }
0x2258   : > { %v6604_v4 = vpop.f32.mrb[55].mxu0  ;;  %6608 = vmatmul.mubr.msk.bf16.vlgmr.msra.gmra.mrb[84].mxu1 %vm433_vm2, %v2556_v61 }
0x2259   : > { %6618 = vmatpush3.bf16.xpose.msra.mxu1 %v2662_v2  ;;  %6619 = vmatprep.mubr.msk.bf16.mxu1 %vm7319_vm0, %v7318_v0 }
0x225a   : > { %6629 = vmatprep.subr.bf16.mxu1 %v7318_v0 }
0x225d   : > { %v2648_v5 = vpop.f32.mrb[56].mxu0 }
0x225e   : > { %v6615_v6 = vpop.f32.mrb[57].mxu0 }
0x225f   : > { %v2651_v9 = vpop.f32.mrb[58].mxu0 }
0x2260   : > { %v6616_v12 = vpop.f32.mrb[59].mxu0  ;;  %6620 = vmatmul.mubr.msk.bf16.vlgmr.msra.gmra.mrb[88].mxu1 %vm433_vm2, %v2655_v7 }
0x2261   : > { %6631 = vmatprep.mubr.msk.bf16.mxu1 %vm7319_vm0, %v7318_v0 }
0x232b   : > { %v2602_v13 = vpop.f32.mrb[84].mxu1 }
0x232c   : > { %v7880_v14 = vadd.f32 %v2648_v5, %v2602_v13  ;;  %v6609_v15 = vpop.f32.mrb[85].mxu1 }
0x232d   : > { %v2605_v17 = vpop.f32.mrb[86].mxu1 }
0x232e   : > { %v6610_v18 = vpop.f32.mrb[87].mxu1 }
0x2333   : > { %v2698_v19 = vpop.f32.mrb[88].mxu1 }
0x2334   : > { %v2704_v20 = vsel %vm7823_vm4, %v2698_v19, -1e+09  ;;  %v6621_v21 = vpop.f32.mrb[89].mxu1 }
0x2335   : > { %v2701_v22 = vpop.f32.mrb[90].mxu1  ;;  %v2705_v23 = vsel %vm433_vm2, %v2704_v20, -inf }
0x2336   : > { %2706 = vmax.xlane.f32.xlu0 %v2705_v23  ;;  %v6622_v3 = vpop.f32.mrb[91].mxu1 }
0x2337   : > { %v5963_v3 = vld [vmem:[%s8635_s3 + $0xe] ss:$0 sm:$0xff] }
0x234c   : > { %2717 = vrot.lane.b32.xlu0 %v7807_v60, %s8637_s23 }
0x2350   : > { %2815 = vrot.lane.b32.xlu0 %v7807_v60, %s8638_s17 }
0x23c3   : > { %v2707_v24 = vpop.xlane.xlu0 %2706 }
0x23c4   : > { %v2708_v25 = vsub.f32 %v2704_v20, %v2707_v24 }
0x23c6   : > { %v2709_v26 = vmul.f32 1.442695, %v2708_v25  ;;  %v7068_v25 = vld [vmem:[%s8583_s4 + $0x28] sm:$0xff]  }
0x23c7   : > { %v2718_v27 = vpop.permute.xlu0 %2717 }
0x23c8   : > { %7149 = vpow2.f32 %v2709_v26  ;;  %v2723_v28 = vsel %vm497_vm3, %v2718_v27, 0 }
0x23c9   : > { %6624 = vmatpush3.bf16.msra.mxu0 %v2723_v28 }
0x23ca   : > { %6635 = vmatprep.subr.bf16.mxu0 %v7318_v0 }
0x23cb   : > { %v2816_v36 = vpop.permute.xlu0 %2815 }
0x23d2   : > { %v7150_v8 = vpop.eup %7149 }
0x23d3   : > { %v2711_v29 = vsel %vm433_vm2, %v7150_v8, 0.0 }
0x23d4   : > { %2712 = vadd.xlane.f32.xlu1 %v2711_v29 }
0x23e5   : > { %2817 = vrot.lane.b32.xlu1 %v7807_v60, %s8639_s26 }
0x2461   : > { %v2713_v30 = vpop.xlane.xlu1 %2712 }
0x2462   : > { %7151 = vrcp.f32 %v2713_v30  ;;  %v7069_v30 = vld [vmem:[%s8583_s4 + $0x30] sm:$0xff]  }
0x2465   : > { %v2818_v33 = vpop.permute.xlu1 %2817 }
0x2466   : > { %v2823_v35 = vsel %vm433_vm2, %v2818_v33, 0  ;;  %v5982_v33 = vld [vmem:[%s8584_s5 + $0x1] ss:$0 sm:$0xff] }
0x246c   : > { %v7152_v31 = vpop.eup %7151 }
0x246d   : > { %v2715_v32 = vmul.f32 %v7152_v31, %v7150_v8 }
0x246f   : > { %v2716_v34 = vpack.c.bf16 %v2715_v32, %v2715_v32 }
0x2471   : > { %6626 = vmatmul.mubr.msk.bf16.vlgmr.msra.gmra.mrb[60].mxu0 %vm433_vm2, %v2716_v34 }
0x2472   : > { %6636 = vmatpush3.bf16.xpose.msra.mxu0 %v2823_v35  ;;  %6637 = vmatprep.mubr.msk.bf16.mxu0 %vm7319_vm0, %v7318_v0 }
0x2473   : > { %6647 = vmatprep.subr.bf16.mxu0 %v7318_v0 }
0x2479   : > { %6638 = vmatmul.mubr.msk.bf16.vlgmr.msra.gmra.mrb[64].mxu0 %vm433_vm2, %v2816_v36 }
0x247a   : > { %6649 = vmatprep.mubr.msk.bf16.mxu0 %vm7319_vm0, %v7318_v0 }
0x2544   : > { %v2759_v37 = vpop.f32.mrb[60].mxu0 }
0x2545   : > { %v6627_v39 = vpop.f32.mrb[61].mxu0  ;;  %v2765_v61 = vpack.c.bf16 %v2759_v37, %v2759_v37 }
0x2546   : > { %v2762_v40 = vpop.f32.mrb[62].mxu0 }
0x2547   : > { %v6628_v41 = vpop.f32.mrb[63].mxu0 }
0x254c   : > { %v2859_v43 = vpop.f32.mrb[64].mxu0 }
0x254d   : > { %v2865_v44 = vsel %vm7823_vm4, %v2859_v43, -1e+09  ;;  %v6639_v46 = vpop.f32.mrb[65].mxu0 }
0x254e   : > { %v2862_v47 = vpop.f32.mrb[66].mxu0  ;;  %v2866_v48 = vsel %vm433_vm2, %v2865_v44, -inf }
0x254f   : > { %2867 = vmax.xlane.f32.xlu1 %v2866_v48  ;;  %v6640_v49 = vpop.f32.mrb[67].mxu0 }
0x2550   : > { %v5989_v49 = vld [vmem:[%s8584_s5 + $0x3] ss:$0 sm:$0xff] }
0x2560   : > { %2878 = vrot.lane.b32.xlu1 %v7807_v60, %s8640_s24  ;;  %v2190_v60 = vadd.f32 %v5954_v55, %v7821_v1 }
0x2562   : > { %v2195_v16 = vadd.f32 %v2190_v60, %v7770_v42  ;;  %v7070_v60 = vld [vmem:[%s8583_s4 + $0x18] sm:$0xff]  }
0x2564   : > { %2927 = vrot.lane.b32.xlu1 %v7856_v51, %s8641_s25  ;;  %v2196_v56 = vsel %vm385_vm1, %v2195_v16, 0.0 }
0x25dc   : > { %v2868_v50 = vpop.xlane.xlu1 %2867 }
0x25dd   : > { %v2869_v10 = vsub.f32 %v2865_v44, %v2868_v50 }
0x25df   : > { %v2870_v52 = vmul.f32 1.442695, %v2869_v10 }
0x25e0   : > { %v2879_v59 = vpop.permute.xlu1 %2878 }
0x25e1   : > { %7153 = vpow2.f32 %v2870_v52 }
0x25e4   : > { %v2928_v7 = vpop.permute.xlu1 %2927 }
0x25e5   : > { %v2933_v9 = vsel %vm497_vm3, %v2928_v7, 0 }
0x25e6   : > { %6648 = vmatpush3.bf16.msra.mxu0 %v2933_v9 }
0x25e7   : > { %6661 = vmatprep.subr.bf16.mxu0 %v7318_v0 }
0x25eb   : > { %v7154_v53 = vpop.eup %7153 }
0x25ec   : > { %v2872_v54 = vsel %vm433_vm2, %v7154_v53, 0.0 }
0x25ed   : > { %2873 = vadd.xlane.f32.xlu0 %v2872_v54 }
0x2603   : > { %2766 = vrot.lane.b32.xlu0 %v7856_v51, %s8649_s21  ;;  %v2884_v51 = vsel %vm497_vm3, %v2879_v59, 0  ;;  %v5983_v59 = vld [vmem:[%s8584_s5 + $0x7] ss:$0 sm:$0xff] }
0x2622   : > { %2197 = vadd.xlane.f32.xlu0 %v2196_v56 }
0x267a   : > { %v2874_v57 = vpop.xlane.xlu0 %2873 }
0x267b   : > { %7155 = vrcp.f32 %v2874_v57 }
0x267e   : > { %v2767_v58 = vpop.permute.xlu0 %2766 }
0x267f   : > { %v2772_v38 = vsel %vm497_vm3, %v2767_v58, 0 }
0x2680   : > { %6630 = vmatpush3.bf16.msra.mxu1 %v2772_v38 }
0x2681   : > { %6641 = vmatprep.subr.bf16.mxu1 %v7318_v0 }
0x2683   : > { %6632 = vmatmul.mubr.msk.bf16.vlgmr.msra.gmra.mrb[92].mxu1 %vm433_vm2, %v2765_v61 }
0x2684   : > { %6642 = vmatpush3.bf16.msra.mxu1 %v2884_v51  ;;  %6643 = vmatprep.mubr.msk.bf16.mxu1 %vm7319_vm0, %v7318_v0  ;;  %v5984_v51 = vld [vmem:[%s8584_s5 + $0x8] ss:$0 sm:$0xff] }
0x2685   : > { %v7156_v42 = vpop.eup %7155  ;;  %6653 = vmatprep.subr.bf16.mxu1 %v7318_v0 }
0x2686   : > { %v2876_v1 = vmul.f32 %v7156_v42, %v7154_v53 }
0x2688   : > { %v2877_v62 = vpack.c.bf16 %v2876_v1, %v2876_v1 }
0x268b   : > { %6644 = vmatmul.mubr.msk.bf16.vlgmr.msra.gmra.mrb[96].mxu1 %vm433_vm2, %v2877_v62 }
0x268c   : > { %6657 = vmatprep.mubr.msk.bf16.mxu1 %vm7319_vm0, %v7318_v0  ;;  %6654 = vmatpush3.bf16.msra.mxu1 %v7070_v60 }
0x268d   : > { %6655 = vmatprep.subr.bf16.mxu1 %v7318_v0 }
0x26af   : > { %v2198_v63 = vpop.xlane.xlu0 %2197 }
0x26b0   : > { %v2199_v2 = vmul.f32 0.03125, %v2198_v63 }
0x26b2   : > { %v2200_v4 = vsub.f32 %v2195_v16, %v2199_v2  ;;  %v7071_v16 = vld [vmem:[%s8583_s4 + $0x20] sm:$0xff]  }
0x26b3   : > { %6656 = vmatpush3.bf16.msra.mxu1 %v7071_v16  ;;  %v5985_v2 = vld [vmem:[%s8584_s5 + $0x2] ss:$0 sm:$0xff] }
0x26b4   : > { %v2201_v5 = vmul.f32 %v2200_v4, %v2200_v4  ;;  %6669 = vmatprep.subr.bf16.mxu1 %v7318_v0 }
0x26b6   : > { %v2202_v6 = vsel %vm385_vm1, %v2201_v5, 0.0 }
0x26b7   : > { %2203 = vadd.xlane.f32.xlu0 %v2202_v6 }
0x2744   : > { %v2204_v12 = vpop.xlane.xlu0 %2203 }
0x2745   : > { %v2205_v13 = vmul.f32 0.03125, %v2204_v12 }
0x2747   : > { %v2206_v15 = vadd.f32 1e-05, %v2205_v13 }
0x2749   : > { %7157 = vrsqrt.f32 %v2206_v15 }
0x2753   : > { %v7158_v20 = vpop.eup %7157 }
0x2754   : > { %v2208_v23 = vmul.f32 %v7158_v20, %v2200_v4 }
0x2756   : > { %v2808_v17 = vpop.f32.mrb[92].mxu1  ;;  %v2213_v28 = vmul.f32 %v5963_v3, %v2208_v23 }
0x2757   : > { %v2814_v18 = vadd.f32 %v2808_v17, %v7880_v14  ;;  %v6633_v19 = vpop.f32.mrb[93].mxu1  ;;  %v5964_v14 = vld [vmem:[%s8635_s3 + $0xf] ss:$0 sm:$0xff] }
0x2758   : > { %v2811_v21 = vpop.f32.mrb[94].mxu1  ;;  %v2218_v31 = vadd.f32 %v5964_v14, %v2213_v28 }
0x2759   : > { %v6634_v22 = vpop.f32.mrb[95].mxu1 }
0x275a   : > { %v7948_v32 = vpack.c.bf16 %v2218_v31, %v2218_v31 }
0x275e   : > { %v2920_v24 = vpop.f32.mrb[96].mxu1 }
0x275f   : > { %v2926_v26 = vpack.c.bf16 %v2920_v24, %v2920_v24  ;;  %v6645_v27 = vpop.f32.mrb[97].mxu1 }
0x2760   : > { %v2923_v8 = vpop.f32.mrb[98].mxu1 }
0x2761   : > { %v6646_v29 = vpop.f32.mrb[99].mxu1  ;;  %6650 = vmatmul.mubr.msk.bf16.vlgmr.msra.gmra.mrb[68].mxu0 %vm433_vm2, %v2926_v26 }
0x2762   : > { %6662 = vmatpush3.bf16.msra.mxu0 %v7068_v25  ;;  %6665 = vmatprep.mubr.msk.bf16.mxu0 %vm7319_vm0, %v7318_v0 }
0x2763   : > { %6663 = vmatprep.subr.bf16.mxu0 %v7318_v0 }
0x2766   : > { %6664 = vmatpush3.bf16.msra.mxu0 %v7069_v30  ;;  %v2239_v30 = vld [vmem:[%s8583_s4 + $0x38] sm:$0xf] }
0x2767   : > { %6675 = vmatprep.subr.bf16.mxu0 %v7318_v0  ;;  %v8016_v31 = vcombine.low %v2239_v30, %v2239_v30 }
0x2769   : > { %6666 = vmatmul.mubr.msk.bf16.vlgmr.msra.gmra.mrb[72].mxu0 %vm385_vm1, %v7948_v32 }
0x276a   : > { %6677 = vmatprep.mubr.msk.bf16.mxu0 %vm7319_vm0, %v7318_v0 }
0x2834   : > { %v2969_v34 = vpop.f32.mrb[68].mxu0 }
0x2835   : > { %v2975_v35 = vadd.f32 %v2969_v34, %v2814_v18  ;;  %v6651_v36 = vpop.f32.mrb[69].mxu0 }
0x2836   : > { %v2972_v37 = vpop.f32.mrb[70].mxu0 }
0x2837   : > { %v2980_v39 = vadd.f32 %v5982_v33, %v2975_v35  ;;  %v6652_v40 = vpop.f32.mrb[71].mxu0 }
0x2839   : > { %v2981_v41 = vadd.f32 %v2980_v39, %v7783_v45 }
0x283b   : > { %v2982_v43 = vsel %vm385_vm1, %v2981_v41, 0.0 }
0x283c   : > { %2983 = vadd.xlane.f32.xlu1 %v2982_v43  ;;  %v3118_v44 = vpop.f32.mrb[72].mxu0 }
0x283d   : > { %v6667_v46 = vpop.f32.mrb[73].mxu0  ;;  %v3119_v50 = vadd.f32 %v5989_v49, %v3118_v44 }
0x283e   : > { %v3121_v47 = vpop.f32.mrb[74].mxu0 }
0x283f   : > { %v6668_v48 = vpop.f32.mrb[75].mxu0  ;;  %v7963_v10 = vpack.c.bf16 %v3119_v50, %v3119_v50 }
0x2841   : > { %v3130_v63 = vsel %vm433_vm2, %v7963_v10, 0 }
0x284d   : > { %3237 = vrot.lane.b32.xlu1 %v7963_v10, %s8646_s13 }
0x28c9   : > { %v2984_v52 = vpop.xlane.xlu1 %2983 }
0x28ca   : > { %v2985_v53 = vmul.f32 0.03125, %v2984_v52 }
0x28cc   : > { %v2986_v45 = vsub.f32 %v2981_v41, %v2985_v53 }
0x28cd   : > { %v3238_v7 = vpop.permute.xlu1 %3237 }
0x28ce   : > { %v2987_v54 = vmul.f32 %v2986_v45, %v2986_v45  ;;  %v3243_v15 = vsel %vm433_vm2, %v3238_v7, 0 }
0x28d0   : > { %v2988_v55 = vsel %vm385_vm1, %v2987_v54, 0.0 }
0x28d1   : > { %2989 = vadd.xlane.f32.xlu0 %v2988_v55  ;;  %v3401_v55 = vsel %vm497_vm3, %v2239_v30, 0 }
0x295e   : > { %v2990_v56 = vpop.xlane.xlu0 %2989 }
0x295f   : > { %v2991_v57 = vmul.f32 0.03125, %v2990_v56 }
0x2961   : > { %v2992_v58 = vadd.f32 1e-05, %v2991_v57 }
0x2963   : > { %7159 = vrsqrt.f32 %v2992_v58 }
0x296d   : > { %v7160_v38 = vpop.eup %7159 }
0x296e   : > { %v2994_v61 = vmul.f32 %v7160_v38, %v2986_v45 }
0x2970   : > { %v2999_v42 = vmul.f32 %v5983_v59, %v2994_v61 }
0x2972   : > { %v7982_v1 = vadd.f32 %v5984_v51, %v2999_v42 }
0x2974   : > { %v3005_v62 = vpack.c.bf16 %v7982_v1, %v7982_v1 }
0x2976   : > { %6658 = vmatmul.mubr.msk.bf16.vlgmr.msra.gmra.mrb[100].mxu1 %vm385_vm1, %v3005_v62 }
0x2977   : > { %6670 = vmatpush3.bf16.xpose.msra.mxu1 %v3130_v63  ;;  %6671 = vmatprep.mubr.msk.bf16.mxu1 %vm7319_vm0, %v7318_v0 }
0x2978   : > { %6681 = vmatprep.subr.bf16.mxu1 %v7318_v0 }
0x2a49   : > { %v3059_v4 = vpop.f32.mrb[100].mxu1 }
0x2a4a   : > { %v3060_v5 = vadd.f32 %v5985_v2, %v3059_v4  ;;  %v6659_v6 = vpop.f32.mrb[101].mxu1 }
0x2a4b   : > { %v3062_v9 = vpop.f32.mrb[102].mxu1 }
0x2a4c   : > { %v7995_v12 = vpack.c.bf16 %v3060_v5, %v3060_v5  ;;  %v6660_v13 = vpop.f32.mrb[103].mxu1 }
0x2a4e   : > { %3235 = vrot.lane.b32.xlu0 %v7995_v12, %s8646_s13  ;;  %6672 = vmatmul.mubr.msk.bf16.vlgmr.msra.gmra.mrb[104].mxu1 %vm433_vm2, %v7995_v12 }
0x2a4f   : > { %6682 = vmatpush3.bf16.xpose.msra.mxu1 %v3243_v15  ;;  %6683 = vmatprep.mubr.msk.bf16.mxu1 %vm7319_vm0, %v7318_v0 }
0x2a50   : > { %6693 = vmatprep.subr.bf16.mxu1 %v7318_v0 }
0x2ac0   : > { %v3236_v17 = vpop.permute.xlu0 %3235 }
0x2ac1   : > { %6684 = vmatmul.mubr.msk.bf16.vlgmr.msra.gmra.mrb[108].mxu1 %vm433_vm2, %v3236_v17 }
0x2ac2   : > { %6695 = vmatprep.mubr.msk.bf16.mxu1 %vm7319_vm0, %v7318_v0 }
0x2b21   : > { %v3166_v18 = vpop.f32.mrb[104].mxu1 }
0x2b22   : > { %v6673_v19 = vpop.f32.mrb[105].mxu1  ;;  %v3172_v20 = vsel %vm433_vm2, %v3166_v18, -inf }
0x2b23   : > { %3173 = vmax.xlane.f32.xlu1 %v3172_v20  ;;  %v3169_v21 = vpop.f32.mrb[106].mxu1 }
0x2b24   : > { %v6674_v22 = vpop.f32.mrb[107].mxu1 }
0x2b94   : > { %v3279_v23 = vpop.f32.mrb[108].mxu1 }
0x2b95   : > { %v6685_v3 = vpop.f32.mrb[109].mxu1  ;;  %v3285_v24 = vsel %vm433_vm2, %v3279_v23, -inf }
0x2b96   : > { %3286 = vmax.xlane.f32.xlu0 %v3285_v24  ;;  %v3282_v25 = vpop.f32.mrb[110].mxu1 }
0x2b97   : > { %v6686_v26 = vpop.f32.mrb[111].mxu1 }
0x2bb0   : > { %v3174_v27 = vpop.xlane.xlu1 %3173 }
0x2bb1   : > { %v3175_v28 = vsub.f32 %v3166_v18, %v3174_v27 }
0x2bb3   : > { %v3176_v8 = vmul.f32 1.442695, %v3175_v28 }
0x2bb5   : > { %7161 = vpow2.f32 %v3176_v8 }
0x2bbf   : > { %v7162_v14 = vpop.eup %7161 }
0x2bc0   : > { %v3178_v29 = vsel %vm433_vm2, %v7162_v14, 0.0 }
0x2bc1   : > { %3179 = vadd.xlane.f32.xlu1 %v3178_v29 }
0x2bd2   : > { %3185 = vrot.lane.b32.xlu1 %v7963_v10, %s8644_s19 }
0x2bd6   : > { %3349 = vrot.lane.b32.xlu1 %v8016_v31, %s8644_s19 }
0x2bda   : > { %3445 = vrot.lane.b32.xlu1 %v7963_v10, %s8636_s20 }
0x2c23   : > { %v3287_v33 = vpop.xlane.xlu0 %3286 }
0x2c24   : > { %v3288_v34 = vsub.f32 %v3279_v23, %v3287_v33 }
0x2c26   : > { %v3289_v35 = vmul.f32 1.442695, %v3288_v34 }
0x2c28   : > { %7163 = vpow2.f32 %v3289_v35 }
0x2c32   : > { %v7164_v36 = vpop.eup %7163 }
0x2c33   : > { %v3291_v37 = vsel %vm433_vm2, %v7164_v36, 0.0 }
0x2c34   : > { %3292 = vadd.xlane.f32.xlu0 %v3291_v37 }
0x2c4a   : > { %3297 = vrot.lane.b32.xlu0 %v7963_v10, %s8645_s12 }
0x2c4e   : > { %v3180_v39 = vpop.xlane.xlu1 %3179  ;;  %3443 = vrot.lane.b32.xlu0 %v7995_v12, %s8636_s20 }
0x2c4f   : > { %7165 = vrcp.f32 %v3180_v39 }
0x2c52   : > { %v3186_v40 = vpop.permute.xlu1 %3185 }
0x2c53   : > { %v3191_v41 = vsel %vm497_vm3, %v3186_v40, 0 }
0x2c54   : > { %6676 = vmatpush3.bf16.msra.mxu0 %v3191_v41 }
0x2c55   : > { %6687 = vmatprep.subr.bf16.mxu0 %v7318_v0 }
0x2c56   : > { %v3350_v43 = vpop.permute.xlu1 %3349 }
0x2c57   : > { %v3355_v44 = vsel %vm497_vm3, %v3350_v43, 0 }
0x2c58   : > { %6694 = vmatpush3.bf16.msra.mxu1 %v3355_v44 }
0x2c59   : > { %v7166_v46 = vpop.eup %7165  ;;  %6705 = vmatprep.subr.bf16.mxu1 %v7318_v0 }
0x2c5a   : > { %v3182_v47 = vmul.f32 %v7166_v46, %v7162_v14  ;;  %v3446_v38 = vpop.permute.xlu1 %3445 }
0x2c5b   : > { %v3451_v62 = vsel %vm433_vm2, %v3446_v38, 0 }
0x2c5c   : > { %v3183_v48 = vpack.c.bf16 %v3182_v47, %v3182_v47 }
0x2c5e   : > { %6678 = vmatmul.mubr.msk.bf16.vlgmr.msra.gmra.mrb[76].mxu0 %vm433_vm2, %v3183_v48 }
0x2c5f   : > { %6689 = vmatprep.mubr.msk.bf16.mxu0 %vm7319_vm0, %v7318_v0 }
0x2cc1   : > { %v3293_v49 = vpop.xlane.xlu0 %3292 }
0x2cc2   : > { %7167 = vrcp.f32 %v3293_v49 }
0x2cc5   : > { %v3298_v50 = vpop.permute.xlu0 %3297 }
0x2cc6   : > { %v3303_v52 = vsel %vm497_vm3, %v3298_v50, 0 }
0x2cc7   : > { %6688 = vmatpush3.bf16.msra.mxu0 %v3303_v52 }
0x2cc8   : > { %6699 = vmatprep.subr.bf16.mxu0 %v7318_v0 }
0x2cc9   : > { %v3444_v2 = vpop.permute.xlu0 %3443 }
0x2ccc   : > { %v7168_v53 = vpop.eup %7167 }
0x2ccd   : > { %v3295_v45 = vmul.f32 %v7168_v53, %v7164_v36 }
0x2ccf   : > { %v3296_v54 = vpack.c.bf16 %v3295_v45, %v3295_v45 }
0x2cd1   : > { %6690 = vmatmul.mubr.msk.bf16.vlgmr.msra.gmra.mrb[80].mxu0 %vm433_vm2, %v3296_v54 }
0x2cd2   : > { %6700 = vmatpush3.bf16.msra.mxu0 %v3401_v55  ;;  %6701 = vmatprep.mubr.msk.bf16.mxu0 %vm7319_vm0, %v7318_v0 }
0x2cd3   : > { %6711 = vmatprep.subr.bf16.mxu0 %v7318_v0 }
0x2d31   : > { %v3227_v60 = vpop.f32.mrb[76].mxu0 }
0x2d32   : > { %v3233_v16 = vpack.c.bf16 %v3227_v60, %v3227_v60  ;;  %v6679_v56 = vpop.f32.mrb[77].mxu0 }
0x2d33   : > { %v3230_v57 = vpop.f32.mrb[78].mxu0 }
0x2d34   : > { %v6680_v58 = vpop.f32.mrb[79].mxu0  ;;  %6702 = vmatmul.mubr.msk.bf16.vlgmr.msra.gmra.mrb[84].mxu0 %vm433_vm2, %v3233_v16 }
0x2d35   : > { %6713 = vmatprep.mubr.msk.bf16.mxu0 %vm7319_vm0, %v7318_v0 }
0x2da4   : > { %v3339_v59 = vpop.f32.mrb[80].mxu0 }
0x2da5   : > { %v3345_v61 = vpack.c.bf16 %v3339_v59, %v3339_v59  ;;  %v6691_v51 = vpop.f32.mrb[81].mxu0 }
0x2da6   : > { %v3342_v42 = vpop.f32.mrb[82].mxu0 }
0x2da7   : > { %v6692_v63 = vpop.f32.mrb[83].mxu0  ;;  %6696 = vmatmul.mubr.msk.bf16.vlgmr.msra.gmra.mrb[112].mxu1 %vm433_vm2, %v3345_v61 }
0x2da8   : > { %6706 = vmatpush3.bf16.xpose.msra.mxu1 %v3451_v62  ;;  %6707 = vmatprep.mubr.msk.bf16.mxu1 %vm7319_vm0, %v7318_v0 }
0x2da9   : > { %6717 = vmatprep.subr.bf16.mxu1 %v7318_v0 }
0x2daf   : > { %6708 = vmatmul.mubr.msk.bf16.vlgmr.msra.gmra.mrb[116].mxu1 %vm433_vm2, %v3444_v2 }
0x2db0   : > { %6719 = vmatprep.mubr.msk.bf16.mxu1 %vm7319_vm0, %v7318_v0 }
0x2e07   : > { %v3437_v4 = vpop.f32.mrb[84].mxu0 }
0x2e08   : > { %v6703_v5 = vpop.f32.mrb[85].mxu0 }
0x2e09   : > { %v3440_v6 = vpop.f32.mrb[86].mxu0 }
0x2e0a   : > { %v6704_v7 = vpop.f32.mrb[87].mxu0 }
0x2e0b   : > { %v6006_v7 = vld [vmem:[%s8584_s5 + $0x4] ss:$0 sm:$0xff] }
0x2e7a   : > { %v3391_v9 = vpop.f32.mrb[112].mxu1 }
0x2e7b   : > { %v8052_v13 = vadd.f32 %v3437_v4, %v3391_v9  ;;  %v6697_v15 = vpop.f32.mrb[113].mxu1 }
0x2e7c   : > { %v3394_v17 = vpop.f32.mrb[114].mxu1 }
0x2e7d   : > { %v6698_v18 = vpop.f32.mrb[115].mxu1 }
0x2e82   : > { %v3487_v19 = vpop.f32.mrb[116].mxu1 }
0x2e83   : > { %v6709_v20 = vpop.f32.mrb[117].mxu1  ;;  %v3493_v21 = vsel %vm433_vm2, %v3487_v19, -inf }
0x2e84   : > { %3494 = vmax.xlane.f32.xlu1 %v3493_v21  ;;  %v3490_v22 = vpop.f32.mrb[118].mxu1 }
0x2e85   : > { %v6710_v23 = vpop.f32.mrb[119].mxu1 }
0x2e95   : > { %3605 = vrot.lane.b32.xlu1 %v7963_v10, %s8638_s17 }
0x2e99   : > { %3603 = vrot.lane.b32.xlu1 %v7995_v12, %s8638_s17 }
0x2f11   : > { %v3495_v3 = vpop.xlane.xlu1 %3494 }
0x2f12   : > { %v3496_v24 = vsub.f32 %v3487_v19, %v3495_v3 }
0x2f14   : > { %v3497_v25 = vmul.f32 1.442695, %v3496_v24 }
0x2f15   : > { %v3606_v30 = vpop.permute.xlu1 %3605 }
0x2f16   : > { %7169 = vpow2.f32 %v3497_v25  ;;  %v3611_v34 = vsel %vm433_vm2, %v3606_v30, 0 }
0x2f19   : > { %v3604_v35 = vpop.permute.xlu1 %3603 }
0x2f20   : > { %v7170_v26 = vpop.eup %7169 }
0x2f21   : > { %v3499_v27 = vsel %vm433_vm2, %v7170_v26, 0.0 }
0x2f22   : > { %3500 = vadd.xlane.f32.xlu0 %v3499_v27  ;;  %v7074_v27 = vld [vmem:[%s8583_s4 + $0x48] sm:$0xff]  }
0x2f38   : > { %3505 = vrot.lane.b32.xlu0 %v7963_v10, %s8651_s10 }
0x2faf   : > { %v3501_v28 = vpop.xlane.xlu0 %3500 }
0x2fb0   : > { %7171 = vrcp.f32 %v3501_v28  ;;  %v7076_v28 = vld [vmem:[%s8583_s4 + $0x58] sm:$0xff]  }
0x2fb3   : > { %v3506_v8 = vpop.permute.xlu0 %3505 }
0x2fb4   : > { %v3511_v14 = vsel %vm497_vm3, %v3506_v8, 0  ;;  %v7077_v8 = vld [vmem:[%s8583_s4 + $0x60] sm:$0xff]  }
0x2fb5   : > { %6712 = vmatpush3.bf16.msra.mxu0 %v3511_v14  ;;  %v7078_v14 = vld [vmem:[%s8583_s4 + $0x68] sm:$0xff]  }
0x2fb6   : > { %6723 = vmatprep.subr.bf16.mxu0 %v7318_v0 }
0x2fba   : > { %v7172_v12 = vpop.eup %7171 }
0x2fbb   : > { %v3503_v29 = vmul.f32 %v7172_v12, %v7170_v26  ;;  %v7073_v26 = vld [vmem:[%s8583_s4 + $0x40] sm:$0xff]   ;;  %v7079_v12 = vld [vmem:[%s8583_s4 + $0x70] sm:$0xff]  }
0x2fbd   : > { %v3504_v33 = vpack.c.bf16 %v3503_v29, %v3503_v29  ;;  %v7080_v29 = vld [vmem:[%s8583_s4 + $0x78] sm:$0xff]  }
0x2fbf   : > { %6714 = vmatmul.mubr.msk.bf16.vlgmr.msra.gmra.mrb[88].mxu0 %vm433_vm2, %v3504_v33 }
0x2fc0   : > { %6724 = vmatpush3.bf16.xpose.msra.mxu0 %v3611_v34  ;;  %6725 = vmatprep.mubr.msk.bf16.mxu0 %vm7319_vm0, %v7318_v0 }
0x2fc1   : > { %6735 = vmatprep.subr.bf16.mxu0 %v7318_v0 }
0x2fc7   : > { %6726 = vmatmul.mubr.msk.bf16.vlgmr.msra.gmra.mrb[92].mxu0 %vm433_vm2, %v3604_v35 }
0x2fc8   : > { %6737 = vmatprep.mubr.msk.bf16.mxu0 %vm7319_vm0, %v7318_v0 }
0x3092   : > { %v3547_v36 = vpop.f32.mrb[88].mxu0 }
0x3093   : > { %v6715_v37 = vpop.f32.mrb[89].mxu0  ;;  %v3553_v45 = vpack.c.bf16 %v3547_v36, %v3547_v36  ;;  %v6007_v36 = vld [vmem:[%s8584_s5 + $0x9] ss:$0 sm:$0xff] }
0x3094   : > { %v3550_v39 = vpop.f32.mrb[90].mxu0 }
0x3095   : > { %v6716_v40 = vpop.f32.mrb[91].mxu0  ;;  %v6008_v39 = vld [vmem:[%s8584_s5 + $0xa] ss:$0 sm:$0xff] }
0x309a   : > { %v3647_v41 = vpop.f32.mrb[92].mxu0 }
0x309b   : > { %v6727_v43 = vpop.f32.mrb[93].mxu0  ;;  %v3653_v44 = vsel %vm433_vm2, %v3647_v41, -inf }
0x309c   : > { %3654 = vmax.xlane.f32.xlu0 %v3653_v44  ;;  %v3650_v46 = vpop.f32.mrb[94].mxu0  ;;  %v7081_v44 = vld [vmem:[%s8583_s4 + $0x80] sm:$0xff]  }
0x309d   : > { %v6728_v47 = vpop.f32.mrb[95].mxu0  ;;  %v7082_v46 = vld [vmem:[%s8583_s4 + $0x88] sm:$0xff]  }
0x309e   : > { %v6009_v47 = vld [vmem:[%s8584_s5 + $0x5] ss:$0 sm:$0xff] }
0x30b2   : > { %3554 = vrot.lane.b32.xlu0 %v8016_v31, %s8649_s21 }
0x30b6   : > { %3714 = vrot.lane.b32.xlu0 %v8016_v31, %s8641_s25 }
0x3129   : > { %v3655_v48 = vpop.xlane.xlu0 %3654 }
0x312a   : > { %v3656_v49 = vsub.f32 %v3647_v41, %v3655_v48 }
0x312c   : > { %v3657_v50 = vmul.f32 1.442695, %v3656_v49 }
0x312d   : > { %v3555_v52 = vpop.permute.xlu0 %3554 }
0x312e   : > { %7173 = vpow2.f32 %v3657_v50  ;;  %v3560_v53 = vsel %vm497_vm3, %v3555_v52, 0 }
0x312f   : > { %6718 = vmatpush3.bf16.msra.mxu1 %v3560_v53 }
0x3130   : > { %6729 = vmatprep.subr.bf16.mxu1 %v7318_v0 }
0x3131   : > { %v3715_v31 = vpop.permute.xlu0 %3714 }
0x3132   : > { %6720 = vmatmul.mubr.msk.bf16.vlgmr.msra.gmra.mrb[120].mxu1 %vm433_vm2, %v3553_v45  ;;  %v3720_v60 = vsel %vm497_vm3, %v3715_v31, 0 }
0x3133   : > { %6731 = vmatprep.mubr.msk.bf16.mxu1 %vm7319_vm0, %v7318_v0  ;;  %6736 = vmatpush3.bf16.msra.mxu0 %v3720_v60 }
0x3134   : > { %6749 = vmatprep.subr.bf16.mxu0 %v7318_v0 }
0x3138   : > { %v7174_v54 = vpop.eup %7173 }
0x3139   : > { %v3659_v55 = vsel %vm433_vm2, %v7174_v54, 0.0 }
0x313a   : > { %3660 = vadd.xlane.f32.xlu1 %v3659_v55  ;;  %v6013_v55 = vld [vmem:[%s8584_s5 + $0x6] ss:$0 sm:$0xff] }
0x314b   : > { %3665 = vrot.lane.b32.xlu1 %v7963_v10, %s8639_s26 }
0x31c7   : > { %v3661_v16 = vpop.xlane.xlu1 %3660 }
0x31c8   : > { %7175 = vrcp.f32 %v3661_v16 }
0x31cb   : > { %v3666_v56 = vpop.permute.xlu1 %3665 }
0x31cc   : > { %v3671_v57 = vsel %vm497_vm3, %v3666_v56, 0 }
0x31cd   : > { %6730 = vmatpush3.bf16.msra.mxu1 %v3671_v57 }
0x31ce   : > { %6741 = vmatprep.subr.bf16.mxu1 %v7318_v0 }
0x31d2   : > { %v7176_v58 = vpop.eup %7175 }
0x31d3   : > { %v3663_v38 = vmul.f32 %v7176_v58, %v7174_v54 }
0x31d5   : > { %v3664_v59 = vpack.c.bf16 %v3663_v38, %v3663_v38 }
0x31d7   : > { %6732 = vmatmul.mubr.msk.bf16.vlgmr.msra.gmra.mrb[124].mxu1 %vm433_vm2, %v3664_v59 }
0x31d8   : > { %6745 = vmatprep.mubr.msk.bf16.mxu1 %vm7319_vm0, %v7318_v0  ;;  %6742 = vmatpush3.bf16.msra.mxu1 %v7073_v26 }
0x31d9   : > { %6743 = vmatprep.subr.bf16.mxu1 %v7318_v0 }
0x31dc   : > { %6744 = vmatpush3.bf16.msra.mxu1 %v7074_v27 }
0x31dd   : > { %6769 = vmatprep.subr.bf16.mxu1 %v7318_v0 }
0x3205   : > { %v3596_v10 = vpop.f32.mrb[120].mxu1 }
0x3206   : > { %v3602_v61 = vadd.f32 %v3596_v10, %v8052_v13  ;;  %v6721_v51 = vpop.f32.mrb[121].mxu1 }
0x3207   : > { %v3599_v42 = vpop.f32.mrb[122].mxu1 }
0x3208   : > { %v6722_v62 = vpop.f32.mrb[123].mxu1 }
0x3209   : > { %v7083_v62 = vld [vmem:[%s8583_s4 + $0x90] sm:$0xff]  }
0x32aa   : > { %v3707_v63 = vpop.f32.mrb[124].mxu1 }
0x32ab   : > { %v3713_v2 = vpack.c.bf16 %v3707_v63, %v3707_v63  ;;  %v6733_v4 = vpop.f32.mrb[125].mxu1  ;;  %v7084_v63 = vld [vmem:[%s8583_s4 + $0x98] sm:$0xff]  }
0x32ac   : > { %v3710_v5 = vpop.f32.mrb[126].mxu1 }
0x32ad   : > { %v6734_v6 = vpop.f32.mrb[127].mxu1  ;;  %6738 = vmatmul.mubr.msk.bf16.vlgmr.msra.gmra.mrb[96].mxu0 %vm433_vm2, %v3713_v2 }
0x32ae   : > { %6765 = vmatprep.mubr.msk.bf16.mxu0 %vm7319_vm0, %v7318_v0 }
0x3380   : > { %v3756_v9 = vpop.f32.mrb[96].mxu0 }
0x3381   : > { %v3762_v15 = vadd.f32 %v3756_v9, %v3602_v61  ;;  %v6739_v13 = vpop.f32.mrb[97].mxu0 }
0x3382   : > { %v3759_v17 = vpop.f32.mrb[98].mxu0 }
0x3383   : > { %v3767_v18 = vadd.f32 %v6006_v7, %v3762_v15  ;;  %v6740_v19 = vpop.f32.mrb[99].mxu0  ;;  %v6022_v7 = vld [vmem:[%s8584_s5 + $0xb] ss:$0 sm:$0xff]  ;;  %v6023_v15 = vld [vmem:[%s8584_s5 + $0xc] ss:$0 sm:$0xff] }
0x3384   : > { %v6071_v19 = vld [vmem:[%s8584_s5 + $0x10] ss:$0 sm:$0xff] }
0x3385   : > { %v3768_v20 = vadd.f32 %v3767_v18, %v7982_v1  ;;  %v7075_v1 = vld [vmem:[%s8583_s4 + $0x50] sm:$0xff]  }
0x3386   : > { %6750 = vmatpush3.bf16.msra.mxu0 %v7075_v1 }
0x3387   : > { %v3769_v21 = vsel %vm385_vm1, %v3768_v20, 0.0  ;;  %6751 = vmatprep.subr.bf16.mxu0 %v7318_v0 }
0x3388   : > { %3770 = vadd.xlane.f32.xlu1 %v3769_v21 }
0x338a   : > { %6752 = vmatpush3.bf16.msra.mxu0 %v7076_v28 }
0x338b   : > { %6753 = vmatprep.subr.bf16.mxu0 %v7318_v0 }
0x338e   : > { %6754 = vmatpush3.bf16.msra.mxu0 %v7077_v8 }
0x338f   : > { %6755 = vmatprep.subr.bf16.mxu0 %v7318_v0 }
0x3392   : > { %6756 = vmatpush3.bf16.msra.mxu0 %v7078_v14 }
0x3393   : > { %6757 = vmatprep.subr.bf16.mxu0 %v7318_v0 }
0x3396   : > { %6758 = vmatpush3.bf16.msra.mxu0 %v7079_v12 }
0x3397   : > { %6759 = vmatprep.subr.bf16.mxu0 %v7318_v0 }
0x339a   : > { %6760 = vmatpush3.bf16.msra.mxu0 %v7080_v29 }
0x339b   : > { %6761 = vmatprep.subr.bf16.mxu0 %v7318_v0 }
0x339e   : > { %6762 = vmatpush3.bf16.msra.mxu0 %v7081_v44 }
0x339f   : > { %6763 = vmatprep.subr.bf16.mxu0 %v7318_v0 }
0x33a2   : > { %6764 = vmatpush3.bf16.msra.mxu0 %v7082_v46 }
0x33a3   : > { %6795 = vmatprep.subr.bf16.mxu0 %v7318_v0 }
0x3415   : > { %v3771_v22 = vpop.xlane.xlu1 %3770 }
0x3416   : > { %v3772_v23 = vmul.f32 0.03125, %v3771_v22 }
0x3418   : > { %v3773_v3 = vsub.f32 %v3768_v20, %v3772_v23 }
0x341a   : > { %v3774_v24 = vmul.f32 %v3773_v3, %v3773_v3 }
0x341c   : > { %v3775_v25 = vsel %vm385_vm1, %v3774_v24, 0.0 }
0x341d   : > { %3776 = vadd.xlane.f32.xlu0 %v3775_v25 }
0x34aa   : > { %v3777_v30 = vpop.xlane.xlu0 %3776 }
0x34ab   : > { %v3778_v33 = vmul.f32 0.03125, %v3777_v30 }
0x34ad   : > { %v3779_v34 = vadd.f32 1e-05, %v3778_v33 }
0x34af   : > { %7177 = vrsqrt.f32 %v3779_v34 }
0x34b9   : > { %v7178_v35 = vpop.eup %7177 }
0x34ba   : > { %v3781_v37 = vmul.f32 %v7178_v35, %v3773_v3 }
0x34bc   : > { %v3786_v40 = vmul.f32 %v6007_v36, %v3781_v37 }
0x34be   : > { %v3791_v41 = vadd.f32 %v6008_v39, %v3786_v40 }
0x34c0   : > { %v3792_v43 = vpack.c.bf16 %v3791_v41, %v3791_v41 }
0x34c2   : > { %6746 = vmatmul.mubr.msk.bf16.vlgmr.msra.gmra.mrb[128].mxu1 %vm385_vm1, %v3792_v43 }
0x34c3   : > { %6773 = vmatprep.mubr.msk.bf16.mxu1 %vm7319_vm0, %v7318_v0  ;;  %6770 = vmatpush3.bf16.msra.mxu1 %v7083_v62 }
0x34c4   : > { %6771 = vmatprep.subr.bf16.mxu1 %v7318_v0 }
0x34c7   : > { %6772 = vmatpush3.bf16.msra.mxu1 %v7084_v63 }
0x34c8   : > { %6777 = vmatprep.subr.bf16.mxu1 %v7318_v0 }
0x3595   : > { %v3846_v48 = vpop.f32.mrb[128].mxu1 }
0x3596   : > { %v3847_v49 = vadd.f32 %v6009_v47, %v3846_v48  ;;  %v6747_v50 = vpop.f32.mrb[129].mxu1 }
0x3597   : > { %v3849_v52 = vpop.f32.mrb[130].mxu1 }
0x3598   : > { %v3852_v53 = vmax.f32 %v3847_v49, 0.0  ;;  %v6748_v45 = vpop.f32.mrb[131].mxu1 }
0x359a   : > { %v3853_v54 = vpack.c.bf16 %v3852_v53, %v3852_v53 }
0x359c   : > { %6766 = vmatmul.mubr.bf16.vlgmr.msra.gmra.mrb[100].mxu0 %v3853_v54 }
0x359d   : > { %6797 = vmatprep.mubr.msk.bf16.mxu0 %vm7319_vm0, %v7318_v0 }
0x366f   : > { %v3940_v31 = vpop.f32.mrb[100].mxu0 }
0x3670   : > { %v3941_v60 = vadd.f32 %v6013_v55, %v3940_v31  ;;  %v6767_v16 = vpop.f32.mrb[101].mxu0 }
0x3671   : > { %v3943_v56 = vpop.f32.mrb[102].mxu0  ;;  %v6028_v16 = vld [vmem:[%s8583_s4 + $0xa0] sm:$0xf] }
0x3672   : > { %v3946_v57 = vadd.f32 %v3941_v60, %v3791_v41  ;;  %v6768_v58 = vpop.f32.mrb[103].mxu0  ;;  %v8221_v56 = vcombine.low %v6028_v16, %v6028_v16 }
0x3674   : > { %v3947_v38 = vsel %vm385_vm1, %v3946_v57, 0.0 }
0x3675   : > { %3948 = vadd.xlane.f32.xlu0 %v3947_v38 }
0x3702   : > { %v3949_v59 = vpop.xlane.xlu0 %3948 }
0x3703   : > { %v3950_v10 = vmul.f32 0.03125, %v3949_v59 }
0x3705   : > { %v3951_v61 = vsub.f32 %v3946_v57, %v3950_v10 }
0x3707   : > { %v3952_v51 = vmul.f32 %v3951_v61, %v3951_v61 }
0x3709   : > { %v3953_v42 = vsel %vm385_vm1, %v3952_v51, 0.0 }
0x370a   : > { %3954 = vadd.xlane.f32.xlu1 %v3953_v42 }
0x3797   : > { %v3955_v2 = vpop.xlane.xlu1 %3954 }
0x3798   : > { %v3956_v4 = vmul.f32 0.03125, %v3955_v2 }
0x379a   : > { %v3957_v5 = vadd.f32 1e-05, %v3956_v4 }
0x379c   : > { %7179 = vrsqrt.f32 %v3957_v5 }
0x37a6   : > { %v7180_v6 = vpop.eup %7179 }
0x37a7   : > { %v3959_v9 = vmul.f32 %v7180_v6, %v3951_v61  ;;  %v4358_v6 = vsel %vm497_vm3, %v6028_v16, 0 }
0x37a9   : > { %v3964_v13 = vmul.f32 %v6022_v7, %v3959_v9 }
0x37ab   : > { %v8175_v17 = vadd.f32 %v6023_v15, %v3964_v13 }
0x37ad   : > { %v4019_v18 = vpack.c.bf16 %v8175_v17, %v8175_v17 }
0x37af   : > { %6774 = vmatmul.mubr.msk.bf16.vlgmr.msra.gmra.mrb[132].mxu1 %vm385_vm1, %v4019_v18 }
0x37b0   : > { %6779 = vmatprep.mubr.msk.bf16.mxu1 %vm7319_vm0, %v7318_v0 }
0x3882   : > { %v4073_v20 = vpop.f32.mrb[132].mxu1 }
0x3883   : > { %v4074_v21 = vadd.f32 %v6071_v19, %v4073_v20  ;;  %v6775_v22 = vpop.f32.mrb[133].mxu1 }
0x3884   : > { %v4076_v23 = vpop.f32.mrb[134].mxu1 }
0x3885   : > { %v8185_v3 = vpack.c.bf16 %v4074_v21, %v4074_v21  ;;  %v6776_v24 = vpop.f32.mrb[135].mxu1 }
0x3887   : > { %4081 = vrot.lane.b32.xlu0 %v8185_v3, %s8644_s19 }
0x388b   : > { %4193 = vrot.lane.b32.xlu0 %v8185_v3, %s8645_s12 }
0x388f   : > { %4191 = vrot.lane.b32.xlu0 %v8185_v3, %s8646_s13 }
0x38f9   : > { %v4082_v25 = vpop.permute.xlu0 %4081 }
0x38fa   : > { %v4087_v26 = vsel %vm433_vm2, %v4082_v25, 0 }
0x38fb   : > { %6778 = vmatpush3.bf16.xpose.msra.mxu1 %v4087_v26 }
0x38fc   : > { %6783 = vmatprep.subr.bf16.mxu1 %v7318_v0 }
0x38fd   : > { %v4194_v43 = vpop.permute.xlu0 %4193 }
0x38fe   : > { %v4199_v46 = vsel %vm433_vm2, %v4194_v43, 0 }
0x3901   : > { %v4192_v47 = vpop.permute.xlu0 %4191 }
0x3902   : > { %6780 = vmatmul.mubr.msk.bf16.vlgmr.msra.gmra.mrb[136].mxu1 %vm433_vm2, %v8185_v3 }
0x3903   : > { %6785 = vmatprep.mubr.msk.bf16.mxu1 %vm7319_vm0, %v7318_v0 }
0x39d5   : > { %v4123_v27 = vpop.f32.mrb[136].mxu1 }
0x39d6   : > { %v4129_v1 = vsel %vm7823_vm4, %v4123_v27, -1e+09  ;;  %v6781_v28 = vpop.f32.mrb[137].mxu1 }
0x39d7   : > { %v4130_v8 = vsel %vm433_vm2, %v4129_v1, -inf  ;;  %v4126_v14 = vpop.f32.mrb[138].mxu1 }
0x39d8   : > { %4131 = vmax.xlane.f32.xlu1 %v4130_v8  ;;  %v6782_v12 = vpop.f32.mrb[139].mxu1 }
0x3a65   : > { %v4132_v29 = vpop.xlane.xlu1 %4131 }
0x3a66   : > { %v4133_v30 = vsub.f32 %v4129_v1, %v4132_v29 }
0x3a68   : > { %v4134_v33 = vmul.f32 1.442695, %v4133_v30 }
0x3a6a   : > { %7181 = vpow2.f32 %v4134_v33 }
0x3a74   : > { %v7182_v34 = vpop.eup %7181 }
0x3a75   : > { %v4136_v35 = vsel %vm433_vm2, %v7182_v34, 0.0 }
0x3a76   : > { %4137 = vadd.xlane.f32.xlu1 %v4136_v35 }
0x3a87   : > { %4142 = vrot.lane.b32.xlu1 %v8185_v3, %s8649_s21 }
0x3b03   : > { %v4138_v36 = vpop.xlane.xlu1 %4137 }
0x3b04   : > { %7183 = vrcp.f32 %v4138_v36 }
0x3b07   : > { %v4143_v37 = vpop.permute.xlu1 %4142 }
0x3b08   : > { %v4148_v39 = vsel %vm497_vm3, %v4143_v37, 0 }
0x3b09   : > { %6784 = vmatpush3.bf16.msra.mxu1 %v4148_v39 }
0x3b0a   : > { %6789 = vmatprep.subr.bf16.mxu1 %v7318_v0 }
0x3b0e   : > { %v7184_v40 = vpop.eup %7183 }
0x3b0f   : > { %v4140_v41 = vmul.f32 %v7184_v40, %v7182_v34 }
0x3b11   : > { %v4141_v44 = vpack.c.bf16 %v4140_v41, %v4140_v41 }
0x3b13   : > { %6786 = vmatmul.mubr.msk.bf16.vlgmr.msra.gmra.mrb[140].mxu1 %vm433_vm2, %v4141_v44 }
0x3b14   : > { %6790 = vmatpush3.bf16.xpose.msra.mxu1 %v4199_v46  ;;  %6791 = vmatprep.mubr.msk.bf16.mxu1 %vm7319_vm0, %v7318_v0 }
0x3b15   : > { %6801 = vmatprep.subr.bf16.mxu1 %v7318_v0 }
0x3b1b   : > { %6792 = vmatmul.mubr.msk.bf16.vlgmr.msra.gmra.mrb[144].mxu1 %vm433_vm2, %v4192_v47 }
0x3b1c   : > { %6803 = vmatprep.mubr.msk.bf16.mxu1 %vm7319_vm0, %v7318_v0 }
0x3be6   : > { %v4184_v48 = vpop.f32.mrb[140].mxu1 }
0x3be7   : > { %v6787_v49 = vpop.f32.mrb[141].mxu1  ;;  %v4190_v7 = vpack.c.bf16 %v4184_v48, %v4184_v48 }
0x3be8   : > { %v4187_v50 = vpop.f32.mrb[142].mxu1 }
0x3be9   : > { %v6788_v52 = vpop.f32.mrb[143].mxu1 }
0x3bee   : > { %v4235_v53 = vpop.f32.mrb[144].mxu1 }
0x3bef   : > { %v4241_v45 = vsel %vm7823_vm4, %v4235_v53, -1e+09  ;;  %v6793_v54 = vpop.f32.mrb[145].mxu1 }
0x3bf0   : > { %v4242_v55 = vsel %vm433_vm2, %v4241_v45, -inf  ;;  %v4238_v31 = vpop.f32.mrb[146].mxu1 }
0x3bf1   : > { %4243 = vmax.xlane.f32.xlu1 %v4242_v55  ;;  %v6794_v60 = vpop.f32.mrb[147].mxu1 }
0x3c02   : > { %4306 = vrot.lane.b32.xlu1 %v8221_v56, %s8644_s19 }
0x3c06   : > { %4402 = vrot.lane.b32.xlu1 %v8185_v3, %s8651_s10 }
0x3c7e   : > { %v4244_v57 = vpop.xlane.xlu1 %4243 }
0x3c7f   : > { %v4245_v58 = vsub.f32 %v4241_v45, %v4244_v57 }
0x3c81   : > { %v4246_v38 = vmul.f32 1.442695, %v4245_v58 }
0x3c82   : > { %v4307_v59 = vpop.permute.xlu1 %4306 }
0x3c83   : > { %7185 = vpow2.f32 %v4246_v38  ;;  %v4312_v10 = vsel %vm497_vm3, %v4307_v59, 0 }
0x3c84   : > { %6802 = vmatpush3.bf16.msra.mxu1 %v4312_v10 }
0x3c85   : > { %6813 = vmatprep.subr.bf16.mxu1 %v7318_v0 }
0x3c86   : > { %v4403_v9 = vpop.permute.xlu1 %4402 }
0x3c87   : > { %v4408_v20 = vsel %vm433_vm2, %v4403_v9, 0 }
0x3c8d   : > { %v7186_v61 = vpop.eup %7185 }
0x3c8e   : > { %v4248_v51 = vsel %vm433_vm2, %v7186_v61, 0.0 }
0x3c8f   : > { %4249 = vadd.xlane.f32.xlu0 %v4248_v51 }
0x3ca5   : > { %4254 = vrot.lane.b32.xlu0 %v8185_v3, %s8650_s22 }
0x3ca9   : > { %4400 = vrot.lane.b32.xlu0 %v8185_v3, %s8636_s20 }
0x3d1c   : > { %v4250_v42 = vpop.xlane.xlu0 %4249 }
0x3d1d   : > { %7187 = vrcp.f32 %v4250_v42 }
0x3d20   : > { %v4255_v62 = vpop.permute.xlu0 %4254 }
0x3d21   : > { %v4260_v63 = vsel %vm497_vm3, %v4255_v62, 0 }
0x3d22   : > { %6796 = vmatpush3.bf16.msra.mxu0 %v4260_v63 }
0x3d23   : > { %6807 = vmatprep.subr.bf16.mxu0 %v7318_v0 }
0x3d24   : > { %v4401_v24 = vpop.permute.xlu0 %4400 }
0x3d27   : > { %v7188_v2 = vpop.eup %7187 }
0x3d28   : > { %v4252_v4 = vmul.f32 %v7188_v2, %v7186_v61 }
0x3d2a   : > { %v4253_v5 = vpack.c.bf16 %v4252_v4, %v4252_v4 }
0x3d2c   : > { %6798 = vmatmul.mubr.msk.bf16.vlgmr.msra.gmra.mrb[104].mxu0 %vm433_vm2, %v4253_v5 }
0x3d2d   : > { %6808 = vmatpush3.bf16.msra.mxu0 %v4358_v6  ;;  %6809 = vmatprep.mubr.msk.bf16.mxu0 %vm7319_vm0, %v7318_v0 }
0x3d2e   : > { %6819 = vmatprep.subr.bf16.mxu0 %v7318_v0 }
0x3d34   : > { %6810 = vmatmul.mubr.msk.bf16.vlgmr.msra.gmra.mrb[108].mxu0 %vm433_vm2, %v4190_v7 }
0x3d35   : > { %6821 = vmatprep.mubr.msk.bf16.mxu0 %vm7319_vm0, %v7318_v0 }
0x3dff   : > { %v4296_v15 = vpop.f32.mrb[104].mxu0 }
0x3e00   : > { %v4302_v13 = vpack.c.bf16 %v4296_v15, %v4296_v15  ;;  %v6799_v18 = vpop.f32.mrb[105].mxu0 }
0x3e01   : > { %v4299_v19 = vpop.f32.mrb[106].mxu0 }
0x3e02   : > { %v6800_v21 = vpop.f32.mrb[107].mxu0  ;;  %6804 = vmatmul.mubr.msk.bf16.vlgmr.msra.gmra.mrb[148].mxu1 %vm433_vm2, %v4302_v13 }
0x3e03   : > { %6814 = vmatpush3.bf16.xpose.msra.mxu1 %v4408_v20  ;;  %6815 = vmatprep.mubr.msk.bf16.mxu1 %vm7319_vm0, %v7318_v0 }
0x3e04   : > { %6825 = vmatprep.subr.bf16.mxu1 %v7318_v0 }
0x3e07   : > { %v4394_v22 = vpop.f32.mrb[108].mxu0 }
0x3e08   : > { %v6811_v23 = vpop.f32.mrb[109].mxu0 }
0x3e09   : > { %v4397_v25 = vpop.f32.mrb[110].mxu0  ;;  %v7086_v23 = vld [vmem:[%s8583_s4 + $0xb8] sm:$0xff]  }
0x3e0a   : > { %v6812_v26 = vpop.f32.mrb[111].mxu0  ;;  %6816 = vmatmul.mubr.msk.bf16.vlgmr.msra.gmra.mrb[152].mxu1 %vm433_vm2, %v4401_v24 }
0x3e0b   : > { %6827 = vmatprep.mubr.msk.bf16.mxu1 %vm7319_vm0, %v7318_v0 }
0x3ed5   : > { %v4348_v27 = vpop.f32.mrb[148].mxu1 }
0x3ed6   : > { %v8252_v1 = vadd.f32 %v4394_v22, %v4348_v27  ;;  %v6805_v28 = vpop.f32.mrb[149].mxu1 }
0x3ed7   : > { %v4351_v8 = vpop.f32.mrb[150].mxu1  ;;  %v7087_v28 = vld [vmem:[%s8583_s4 + $0xc0] sm:$0xff]  }
0x3ed8   : > { %v6806_v14 = vpop.f32.mrb[151].mxu1 }
0x3edd   : > { %v4444_v12 = vpop.f32.mrb[152].mxu1 }
0x3ede   : > { %v4450_v29 = vsel %vm7823_vm4, %v4444_v12, -1e+09  ;;  %v6817_v30 = vpop.f32.mrb[153].mxu1 }
0x3edf   : > { %v4451_v33 = vsel %vm433_vm2, %v4450_v29, -inf  ;;  %v4447_v34 = vpop.f32.mrb[154].mxu1 }
0x3ee0   : > { %4452 = vmax.xlane.f32.xlu1 %v4451_v33  ;;  %v6818_v35 = vpop.f32.mrb[155].mxu1 }
0x3ef1   : > { %4563 = vrot.lane.b32.xlu1 %v8185_v3, %s8639_s26 }
0x3ef5   : > { %4561 = vrot.lane.b32.xlu1 %v8185_v3, %s8638_s17 }
0x3f6d   : > { %v4453_v36 = vpop.xlane.xlu1 %4452 }
0x3f6e   : > { %v4454_v37 = vsub.f32 %v4450_v29, %v4453_v36 }
0x3f70   : > { %v4455_v39 = vmul.f32 1.442695, %v4454_v37 }
0x3f71   : > { %v4564_v49 = vpop.permute.xlu1 %4563 }
0x3f72   : > { %7189 = vpow2.f32 %v4455_v39  ;;  %v4569_v52 = vsel %vm433_vm2, %v4564_v49, 0  ;;  %v7088_v49 = vld [vmem:[%s8583_s4 + $0xa8] sm:$0xff]  }
0x3f75   : > { %v4562_v53 = vpop.permute.xlu1 %4561 }
0x3f7c   : > { %v7190_v40 = vpop.eup %7189 }
0x3f7d   : > { %v4457_v41 = vsel %vm433_vm2, %v7190_v40, 0.0 }
0x3f7e   : > { %4458 = vadd.xlane.f32.xlu0 %v4457_v41 }
0x3f94   : > { %4463 = vrot.lane.b32.xlu0 %v8185_v3, %s8637_s23  ;;  %s7253_s23 = scalar_lea.vmem %s7252_s0, 256 }
0x400b   : > { %v4459_v43 = vpop.xlane.xlu0 %4458 }
0x400c   : > { %7191 = vrcp.f32 %v4459_v43 }
0x400f   : > { %v4464_v44 = vpop.permute.xlu0 %4463 }
0x4010   : > { %v4469_v46 = vsel %vm497_vm3, %v4464_v44, 0 }
0x4011   : > { %6820 = vmatpush3.bf16.msra.mxu0 %v4469_v46 }
0x4012   : > { %6831 = vmatprep.subr.bf16.mxu0 %v7318_v0 }
0x4016   : > { %v7192_v47 = vpop.eup %7191 }
0x4017   : > { %v4461_v48 = vmul.f32 %v7192_v47, %v7190_v40  ;;  %v6095_v47 = vld [vmem:[%s8584_s5 + $0x13] ss:$0 sm:$0xff] }
0x4019   : > { %v4462_v50 = vpack.c.bf16 %v4461_v48, %v4461_v48 }
0x401b   : > { %6822 = vmatmul.mubr.msk.bf16.vlgmr.msra.gmra.mrb[112].mxu0 %vm433_vm2, %v4462_v50  ;;  %v7089_v50 = vld [vmem:[%s8583_s4 + $0xb0] sm:$0xff]  }
0x401c   : > { %6832 = vmatpush3.bf16.xpose.msra.mxu0 %v4569_v52  ;;  %6833 = vmatprep.mubr.msk.bf16.mxu0 %vm7319_vm0, %v7318_v0 }
0x401d   : > { %6843 = vmatprep.subr.bf16.mxu0 %v7318_v0 }
0x4023   : > { %6834 = vmatmul.mubr.msk.bf16.vlgmr.msra.gmra.mrb[116].mxu0 %vm433_vm2, %v4562_v53 }
0x4024   : > { %6845 = vmatprep.mubr.msk.bf16.mxu0 %vm7319_vm0, %v7318_v0 }
0x40ee   : > { %v4505_v45 = vpop.f32.mrb[112].mxu0 }
0x40ef   : > { %v6823_v54 = vpop.f32.mrb[113].mxu0  ;;  %v4511_v62 = vpack.c.bf16 %v4505_v45, %v4505_v45 }
0x40f0   : > { %v4508_v55 = vpop.f32.mrb[114].mxu0 }
0x40f1   : > { %v6824_v31 = vpop.f32.mrb[115].mxu0  ;;  %v6089_v55 = vld [vmem:[%s8584_s5 + $0x17] ss:$0 sm:$0xff] }
0x40f6   : > { %v4605_v60 = vpop.f32.mrb[116].mxu0 }
0x40f7   : > { %v4611_v16 = vsel %vm7823_vm4, %v4605_v60, -1e+09  ;;  %v6835_v57 = vpop.f32.mrb[117].mxu0  ;;  %v6090_v60 = vld [vmem:[%s8584_s5 + $0x18] ss:$0 sm:$0xff] }
0x40f8   : > { %v4612_v58 = vsel %vm433_vm2, %v4611_v16, -inf  ;;  %v4608_v38 = vpop.f32.mrb[118].mxu0 }
0x40f9   : > { %4613 = vmax.xlane.f32.xlu0 %v4612_v58  ;;  %v6836_v59 = vpop.f32.mrb[119].mxu0 }
0x40fa   : > { %v6091_v59 = vld [vmem:[%s8584_s5 + $0x12] ss:$0 sm:$0xff] }
0x410f   : > { %4512 = vrot.lane.b32.xlu0 %v8221_v56, %s8649_s21 }
0x4113   : > { %4673 = vrot.lane.b32.xlu0 %v8221_v56, %s8641_s25 }
0x4186   : > { %v4614_v10 = vpop.xlane.xlu0 %4613 }
0x4187   : > { %v4615_v61 = vsub.f32 %v4611_v16, %v4614_v10 }
0x4189   : > { %v4616_v51 = vmul.f32 1.442695, %v4615_v61 }
0x418a   : > { %v4513_v42 = vpop.permute.xlu0 %4512 }
0x418b   : > { %7193 = vpow2.f32 %v4616_v51  ;;  %v4518_v11 = vsel %vm497_vm3, %v4513_v42, 0 }
0x418c   : > { %6826 = vmatpush3.bf16.msra.mxu1 %v4518_v11 }
0x418d   : > { %6837 = vmatprep.subr.bf16.mxu1 %v7318_v0 }
0x418e   : > { %v4674_v56 = vpop.permute.xlu0 %4673 }
0x418f   : > { %6828 = vmatmul.mubr.msk.bf16.vlgmr.msra.gmra.mrb[156].mxu1 %vm433_vm2, %v4511_v62  ;;  %v4679_v4 = vsel %vm497_vm3, %v4674_v56, 0 }
0x4190   : > { %6839 = vmatprep.mubr.msk.bf16.mxu1 %vm7319_vm0, %v7318_v0  ;;  %6844 = vmatpush3.bf16.msra.mxu0 %v4679_v4 }
0x4191   : > { %6857 = vmatprep.subr.bf16.mxu0 %v7318_v0 }
0x4195   : > { %v7194_v63 = vpop.eup %7193 }
0x4196   : > { %v4618_v2 = vsel %vm433_vm2, %v7194_v63, 0.0 }
0x4197   : > { %4619 = vadd.xlane.f32.xlu1 %v4618_v2 }
0x41a8   : > { %4624 = vrot.lane.b32.xlu1 %v8185_v3, %s8640_s24 }
0x4224   : > { %v4620_v5 = vpop.xlane.xlu1 %4619 }
0x4225   : > { %7195 = vrcp.f32 %v4620_v5 }
0x4228   : > { %v4625_v6 = vpop.permute.xlu1 %4624 }
0x4229   : > { %v4630_v7 = vsel %vm497_vm3, %v4625_v6, 0 }
0x422a   : > { %6838 = vmatpush3.bf16.msra.mxu1 %v4630_v7 }
0x422b   : > { %6849 = vmatprep.subr.bf16.mxu1 %v7318_v0 }
0x422f   : > { %v7196_v9 = vpop.eup %7195 }
0x4230   : > { %v4622_v15 = vmul.f32 %v7196_v9, %v7194_v63 }
0x4232   : > { %v4623_v13 = vpack.c.bf16 %v4622_v15, %v4622_v15 }
0x4234   : > { %6840 = vmatmul.mubr.msk.bf16.vlgmr.msra.gmra.mrb[160].mxu1 %vm433_vm2, %v4623_v13 }
0x4235   : > { %6853 = vmatprep.mubr.msk.bf16.mxu1 %vm7319_vm0, %v7318_v0  ;;  %6850 = vmatpush3.bf16.msra.mxu1 %v7088_v49 }
0x4236   : > { %6851 = vmatprep.subr.bf16.mxu1 %v7318_v0 }
0x4239   : > { %6852 = vmatpush3.bf16.msra.mxu1 %v7089_v50 }
0x423a   : > { %6865 = vmatprep.subr.bf16.mxu1 %v7318_v0 }
0x4262   : > { %v4554_v3 = vpop.f32.mrb[156].mxu1 }
0x4263   : > { %v4560_v18 = vadd.f32 %v4554_v3, %v8252_v1  ;;  %v6829_v19 = vpop.f32.mrb[157].mxu1  ;;  %v6088_v1 = vld [vmem:[%s8584_s5 + $0x11] ss:$0 sm:$0xff] }
0x4264   : > { %v4557_v20 = vpop.f32.mrb[158].mxu1 }
0x4265   : > { %v6830_v21 = vpop.f32.mrb[159].mxu1 }
0x4307   : > { %v4666_v22 = vpop.f32.mrb[160].mxu1 }
0x4308   : > { %v4672_v24 = vpack.c.bf16 %v4666_v22, %v4666_v22  ;;  %v6841_v25 = vpop.f32.mrb[161].mxu1 }
0x4309   : > { %v4669_v26 = vpop.f32.mrb[162].mxu1 }
0x430a   : > { %v6842_v27 = vpop.f32.mrb[163].mxu1  ;;  %6846 = vmatmul.mubr.msk.bf16.vlgmr.msra.gmra.mrb[120].mxu0 %vm433_vm2, %v4672_v24 }
0x430b   : > { %6858 = vmatpush3.bf16.msra.mxu0 %v7086_v23  ;;  %6861 = vmatprep.mubr.msk.bf16.mxu0 %vm7319_vm0, %v7318_v0 }
0x430c   : > { %6859 = vmatprep.subr.bf16.mxu0 %v7318_v0 }
0x430f   : > { %6860 = vmatpush3.bf16.msra.mxu0 %v7087_v28 }
0x4310   : > { %6871 = vmatprep.subr.bf16.mxu0 %v7318_v0 }
0x4312   : > { %6862 = vmatmul.mubr.msk.bf16.vlgmr.msra.gmra.mrb[124].mxu0 %vm385_vm1, %v7948_v32 }
0x4313   : > { %6873 = vmatprep.mubr.msk.bf16.mxu0 %vm7319_vm0, %v7318_v0 }
0x43dd   : > { %v4715_v8 = vpop.f32.mrb[120].mxu0 }
0x43de   : > { %v4721_v14 = vadd.f32 %v4715_v8, %v4560_v18  ;;  %v6847_v12 = vpop.f32.mrb[121].mxu0  ;;  %v6037_v8 = vld [vmem:[%s8583_s4 + $0xc8] sm:$0xf] }
0x43df   : > { %v4718_v29 = vpop.f32.mrb[122].mxu0 }
0x43e0   : > { %v4726_v30 = vadd.f32 %v6088_v1, %v4721_v14  ;;  %v6848_v33 = vpop.f32.mrb[123].mxu0  ;;  %v8378_v14 = vcombine.low %v6037_v8, %v6037_v8 }
0x43e2   : > { %v4727_v34 = vadd.f32 %v4726_v30, %v8175_v17 }
0x43e4   : > { %v4728_v35 = vsel %vm385_vm1, %v4727_v34, 0.0 }
0x43e5   : > { %4729 = vadd.xlane.f32.xlu1 %v4728_v35  ;;  %v4861_v36 = vpop.f32.mrb[124].mxu0 }
0x43e6   : > { %v6863_v32 = vpop.f32.mrb[125].mxu0  ;;  %v4862_v48 = vadd.f32 %v6095_v47, %v4861_v36 }
0x43e7   : > { %v4864_v37 = vpop.f32.mrb[126].mxu0 }
0x43e8   : > { %v6864_v39 = vpop.f32.mrb[127].mxu0  ;;  %v8321_v17 = vpack.c.bf16 %v4862_v48, %v4862_v48 }
0x43ea   : > { %v4873_v38 = vsel %vm433_vm2, %v8321_v17, 0 }
0x4472   : > { %v4730_v40 = vpop.xlane.xlu1 %4729 }
0x4473   : > { %v4731_v41 = vmul.f32 0.03125, %v4730_v40 }
0x4475   : > { %v4732_v43 = vsub.f32 %v4727_v34, %v4731_v41 }
0x4477   : > { %v4733_v44 = vmul.f32 %v4732_v43, %v4732_v43 }
0x4479   : > { %v4734_v46 = vsel %vm385_vm1, %v4733_v44, 0.0 }
0x447a   : > { %4735 = vadd.xlane.f32.xlu0 %v4734_v46  ;;  %v5144_v46 = vsel %vm497_vm3, %v6037_v8, 0 }
0x4490   : > { %4980 = vrot.lane.b32.xlu0 %v8321_v17, %s8646_s13 }
0x4507   : > { %v4736_v52 = vpop.xlane.xlu0 %4735 }
0x4508   : > { %v4737_v53 = vmul.f32 0.03125, %v4736_v52 }
0x450a   : > { %v4738_v45 = vadd.f32 1e-05, %v4737_v53 }
0x450b   : > { %v4981_v42 = vpop.permute.xlu0 %4980 }
0x450c   : > { %7197 = vrsqrt.f32 %v4738_v45  ;;  %v4986_v2 = vsel %vm433_vm2, %v4981_v42, 0 }
0x4516   : > { %v7198_v54 = vpop.eup %7197 }
0x4517   : > { %v4740_v31 = vmul.f32 %v7198_v54, %v4732_v43 }
0x4519   : > { %v4745_v16 = vmul.f32 %v6089_v55, %v4740_v31 }
0x451b   : > { %v8339_v57 = vadd.f32 %v6090_v60, %v4745_v16 }
0x451d   : > { %v4751_v58 = vpack.c.bf16 %v8339_v57, %v8339_v57 }
0x451f   : > { %6854 = vmatmul.mubr.msk.bf16.vlgmr.msra.gmra.mrb[164].mxu1 %vm385_vm1, %v4751_v58 }
0x4520   : > { %6866 = vmatpush3.bf16.xpose.msra.mxu1 %v4873_v38  ;;  %6867 = vmatprep.mubr.msk.bf16.mxu1 %vm7319_vm0, %v7318_v0 }
0x4521   : > { %6877 = vmatprep.subr.bf16.mxu1 %v7318_v0 }
0x45f2   : > { %v4805_v10 = vpop.f32.mrb[164].mxu1 }
0x45f3   : > { %v4806_v61 = vadd.f32 %v6091_v59, %v4805_v10  ;;  %v6855_v51 = vpop.f32.mrb[165].mxu1 }
0x45f4   : > { %v4808_v11 = vpop.f32.mrb[166].mxu1 }
0x45f5   : > { %v8352_v62 = vpack.c.bf16 %v4806_v61, %v4806_v61  ;;  %v6856_v63 = vpop.f32.mrb[167].mxu1 }
0x45f7   : > { %4978 = vrot.lane.b32.xlu1 %v8352_v62, %s8646_s13  ;;  %6868 = vmatmul.mubr.msk.bf16.vlgmr.msra.gmra.mrb[168].mxu1 %vm433_vm2, %v8352_v62  ;;  %s322_s13 = sand.u32 1, %s7305_s28  }
0x45f8   : > { %6878 = vmatpush3.bf16.xpose.msra.mxu1 %v4986_v2  ;;  %6879 = vmatprep.mubr.msk.bf16.mxu1 %vm7319_vm0, %v7318_v0  ;;  %s5884_s11 = sshll.u32 %s322_s13, 3  ;;  %s5782_s3 = scalar_lea.sflag [#allocation4], %s322_s13 }
0x45f9   : > { %6889 = vmatprep.subr.bf16.mxu1 %v7318_v0 }
0x4669   : > { %v4979_v56 = vpop.permute.xlu1 %4978 }
0x466a   : > { %6880 = vmatmul.mubr.msk.bf16.vlgmr.msra.gmra.mrb[172].mxu1 %vm433_vm2, %v4979_v56 }
0x466b   : > { %6891 = vmatprep.mubr.msk.bf16.mxu1 %vm7319_vm0, %v7318_v0 }
0x46ca   : > { %v4909_v4 = vpop.f32.mrb[168].mxu1 }
0x46cb   : > { %v6869_v5 = vpop.f32.mrb[169].mxu1  ;;  %v4915_v6 = vsel %vm433_vm2, %v4909_v4, -inf }
0x46cc   : > { %4916 = vmax.xlane.f32.xlu1 %v4915_v6  ;;  %v4912_v7 = vpop.f32.mrb[170].mxu1 }
0x46cd   : > { %v6870_v9 = vpop.f32.mrb[171].mxu1 }
0x473d   : > { %v5022_v15 = vpop.f32.mrb[172].mxu1 }
0x473e   : > { %v6881_v13 = vpop.f32.mrb[173].mxu1  ;;  %v5028_v3 = vsel %vm433_vm2, %v5022_v15, -inf }
0x473f   : > { %5029 = vmax.xlane.f32.xlu0 %v5028_v3  ;;  %v5025_v18 = vpop.f32.mrb[174].mxu1 }
0x4740   : > { %v6882_v19 = vpop.f32.mrb[175].mxu1 }
0x4759   : > { %v4917_v20 = vpop.xlane.xlu1 %4916 }
0x475a   : > { %v4918_v21 = vsub.f32 %v4909_v4, %v4917_v20 }
0x475c   : > { %v4919_v22 = vmul.f32 1.442695, %v4918_v21 }
0x475e   : > { %7199 = vpow2.f32 %v4919_v22 }
0x4768   : > { %v7200_v23 = vpop.eup %7199 }
0x4769   : > { %v4921_v24 = vsel %vm433_vm2, %v7200_v23, 0.0 }
0x476a   : > { %4922 = vadd.xlane.f32.xlu0 %v4921_v24 }
0x4780   : > { %4928 = vrot.lane.b32.xlu0 %v8321_v17, %s8644_s19 }
0x4784   : > { %5188 = vrot.lane.b32.xlu0 %v8321_v17, %s8636_s20 }
0x47cc   : > { %v5030_v25 = vpop.xlane.xlu0 %5029 }
0x47cd   : > { %v5031_v26 = vsub.f32 %v5022_v15, %v5030_v25 }
0x47cf   : > { %v5032_v27 = vmul.f32 1.442695, %v5031_v26 }
0x47d1   : > { %7201 = vpow2.f32 %v5032_v27 }
0x47db   : > { %v7202_v28 = vpop.eup %7201 }
0x47dc   : > { %v5034_v1 = vsel %vm433_vm2, %v7202_v28, 0.0 }
0x47dd   : > { %5035 = vadd.xlane.f32.xlu1 %v5034_v1 }
0x47ee   : > { %5040 = vrot.lane.b32.xlu1 %v8321_v17, %s8645_s12 }
0x47f2   : > { %5092 = vrot.lane.b32.xlu1 %v8378_v14, %s8644_s19 }
0x47f6   : > { %5186 = vrot.lane.b32.xlu1 %v8352_v62, %s8636_s20 }
0x47f7   : > { %v4923_v12 = vpop.xlane.xlu0 %4922 }
0x47f8   : > { %7203 = vrcp.f32 %v4923_v12 }
0x47fb   : > { %v4929_v29 = vpop.permute.xlu0 %4928 }
0x47fc   : > { %v4934_v30 = vsel %vm497_vm3, %v4929_v29, 0 }
0x47fd   : > { %6872 = vmatpush3.bf16.msra.mxu0 %v4934_v30 }
0x47fe   : > { %6883 = vmatprep.subr.bf16.mxu0 %v7318_v0 }
0x47ff   : > { %v5189_v53 = vpop.permute.xlu0 %5188 }
0x4800   : > { %v5194_v60 = vsel %vm433_vm2, %v5189_v53, 0 }
0x4802   : > { %v7204_v33 = vpop.eup %7203 }
0x4803   : > { %v4925_v34 = vmul.f32 %v7204_v33, %v7200_v23 }
0x4805   : > { %v4926_v35 = vpack.c.bf16 %v4925_v34, %v4925_v34 }
0x4807   : > { %6874 = vmatmul.mubr.msk.bf16.vlgmr.msra.gmra.mrb[128].mxu0 %vm433_vm2, %v4926_v35 }
0x4808   : > { %6885 = vmatprep.mubr.msk.bf16.mxu0 %vm7319_vm0, %v7318_v0 }
0x486a   : > { %v5036_v36 = vpop.xlane.xlu1 %5035 }
0x486b   : > { %7205 = vrcp.f32 %v5036_v36 }
0x486e   : > { %v5041_v32 = vpop.permute.xlu1 %5040 }
0x486f   : > { %v5046_v37 = vsel %vm497_vm3, %v5041_v32, 0 }
0x4870   : > { %6884 = vmatpush3.bf16.msra.mxu0 %v5046_v37 }
0x4871   : > { %6895 = vmatprep.subr.bf16.mxu0 %v7318_v0 }
0x4872   : > { %v5093_v39 = vpop.permute.xlu1 %5092 }
0x4873   : > { %v5098_v40 = vsel %vm497_vm3, %v5093_v39, 0 }
0x4874   : > { %6890 = vmatpush3.bf16.msra.mxu1 %v5098_v40 }
0x4875   : > { %v7206_v41 = vpop.eup %7205  ;;  %6901 = vmatprep.subr.bf16.mxu1 %v7318_v0 }
0x4876   : > { %v5038_v43 = vmul.f32 %v7206_v41, %v7202_v28  ;;  %v5187_v58 = vpop.permute.xlu1 %5186 }
0x4878   : > { %v5039_v44 = vpack.c.bf16 %v5038_v43, %v5038_v43 }
0x487a   : > { %6886 = vmatmul.mubr.msk.bf16.vlgmr.msra.gmra.mrb[132].mxu0 %vm433_vm2, %v5039_v44 }
0x487b   : > { %6896 = vmatpush3.bf16.msra.mxu0 %v5144_v46  ;;  %6897 = vmatprep.mubr.msk.bf16.mxu0 %vm7319_vm0, %v7318_v0 }
0x487c   : > { %6907 = vmatprep.subr.bf16.mxu0 %v7318_v0 }
0x48da   : > { %v4970_v47 = vpop.f32.mrb[128].mxu0 }
0x48db   : > { %v4976_v48 = vpack.c.bf16 %v4970_v47, %v4970_v47  ;;  %v6875_v49 = vpop.f32.mrb[129].mxu0 }
0x48dc   : > { %v4973_v50 = vpop.f32.mrb[130].mxu0 }
0x48dd   : > { %v6876_v52 = vpop.f32.mrb[131].mxu0  ;;  %6898 = vmatmul.mubr.msk.bf16.vlgmr.msra.gmra.mrb[136].mxu0 %vm433_vm2, %v4976_v48 }
0x48de   : > { %6909 = vmatprep.mubr.msk.bf16.mxu0 %vm7319_vm0, %v7318_v0 }
0x494d   : > { %v5082_v45 = vpop.f32.mrb[132].mxu0 }
0x494e   : > { %v5088_v54 = vpack.c.bf16 %v5082_v45, %v5082_v45  ;;  %v6887_v55 = vpop.f32.mrb[133].mxu0 }
0x494f   : > { %v5085_v31 = vpop.f32.mrb[134].mxu0 }
0x4950   : > { %v6888_v16 = vpop.f32.mrb[135].mxu0  ;;  %6892 = vmatmul.mubr.msk.bf16.vlgmr.msra.gmra.mrb[176].mxu1 %vm433_vm2, %v5088_v54 }
0x4951   : > { %6902 = vmatpush3.bf16.xpose.msra.mxu1 %v5194_v60  ;;  %6903 = vmatprep.mubr.msk.bf16.mxu1 %vm7319_vm0, %v7318_v0 }
0x4952   : > { %6913 = vmatprep.subr.bf16.mxu1 %v7318_v0 }
0x4958   : > { %6904 = vmatmul.mubr.msk.bf16.vlgmr.msra.gmra.mrb[180].mxu1 %vm433_vm2, %v5187_v58 }
0x4959   : > { %6915 = vmatprep.mubr.msk.bf16.mxu1 %vm7319_vm0, %v7318_v0 }
0x49b0   : > { %v5180_v38 = vpop.f32.mrb[136].mxu0 }
0x49b1   : > { %v6899_v59 = vpop.f32.mrb[137].mxu0 }
0x49b2   : > { %v5183_v10 = vpop.f32.mrb[138].mxu0  ;;  %v6112_v59 = vld [vmem:[%s8584_s5 + $0x14] ss:$0 sm:$0xff] }
0x49b3   : > { %v6900_v61 = vpop.f32.mrb[139].mxu0 }
0x4a23   : > { %v5134_v51 = vpop.f32.mrb[176].mxu1 }
0x4a24   : > { %v8409_v42 = vadd.f32 %v5180_v38, %v5134_v51  ;;  %v6893_v11 = vpop.f32.mrb[177].mxu1 }
0x4a25   : > { %v5137_v63 = vpop.f32.mrb[178].mxu1 }
0x4a26   : > { %v6894_v2 = vpop.f32.mrb[179].mxu1 }
0x4a2b   : > { %v5230_v56 = vpop.f32.mrb[180].mxu1 }
0x4a2c   : > { %v6905_v4 = vpop.f32.mrb[181].mxu1  ;;  %v5236_v5 = vsel %vm433_vm2, %v5230_v56, -inf }
0x4a2d   : > { %5237 = vmax.xlane.f32.xlu0 %v5236_v5  ;;  %v5233_v6 = vpop.f32.mrb[182].mxu1 }
0x4a2e   : > { %v6906_v7 = vpop.f32.mrb[183].mxu1 }
0x4a43   : > { %5248 = vrot.lane.b32.xlu0 %v8321_v17, %s8651_s10 }
0x4a47   : > { %5346 = vrot.lane.b32.xlu0 %v8352_v62, %s8638_s17 }
0x4aba   : > { %v5238_v9 = vpop.xlane.xlu0 %5237 }
0x4abb   : > { %v5239_v15 = vsub.f32 %v5230_v56, %v5238_v9 }
0x4abd   : > { %v5240_v13 = vmul.f32 1.442695, %v5239_v15  ;;  %v7091_v15 = vld [vmem:[%s8583_s4 + $0xd0] sm:$0xff]  }
0x4abe   : > { %v5249_v3 = vpop.permute.xlu0 %5248 }
0x4abf   : > { %7207 = vpow2.f32 %v5240_v13  ;;  %v5254_v18 = vsel %vm497_vm3, %v5249_v3, 0  ;;  %v7092_v13 = vld [vmem:[%s8583_s4 + $0xd8] sm:$0xff]   ;;  %v7094_v3 = vld [vmem:[%s8583_s4 + $0xe8] sm:$0xff]  }
0x4ac0   : > { %6908 = vmatpush3.bf16.msra.mxu0 %v5254_v18  ;;  %v7095_v18 = vld [vmem:[%s8583_s4 + $0xf0] sm:$0xff]  }
0x4ac1   : > { %6919 = vmatprep.subr.bf16.mxu0 %v7318_v0 }
0x4ac2   : > { %v5347_v26 = vpop.permute.xlu0 %5346 }
0x4ac9   : > { %v7208_v19 = vpop.eup %7207 }
0x4aca   : > { %v5242_v20 = vsel %vm433_vm2, %v7208_v19, 0.0 }
0x4acb   : > { %5243 = vadd.xlane.f32.xlu1 %v5242_v20  ;;  %v7097_v20 = vld [vmem:[%s8583_s4 + $0x100] sm:$0xff]  }
0x4adc   : > { %5348 = vrot.lane.b32.xlu1 %v8321_v17, %s8638_s17 }
0x4b58   : > { %v5244_v21 = vpop.xlane.xlu1 %5243 }
0x4b59   : > { %7209 = vrcp.f32 %v5244_v21  ;;  %v7098_v21 = vld [vmem:[%s8583_s4 + $0x108] sm:$0xff]  }
0x4b5c   : > { %v5349_v23 = vpop.permute.xlu1 %5348 }
0x4b5d   : > { %v5354_v25 = vsel %vm433_vm2, %v5349_v23, 0 }
0x4b63   : > { %v7210_v62 = vpop.eup %7209 }
0x4b64   : > { %v5246_v22 = vmul.f32 %v7210_v62, %v7208_v19  ;;  %v7096_v19 = vld [vmem:[%s8583_s4 + $0xf8] sm:$0xff]  }
0x4b66   : > { %v5247_v24 = vpack.c.bf16 %v5246_v22, %v5246_v22 }
0x4b68   : > { %6910 = vmatmul.mubr.msk.bf16.vlgmr.msra.gmra.mrb[140].mxu0 %vm433_vm2, %v5247_v24 }
0x4b69   : > { %6920 = vmatpush3.bf16.xpose.msra.mxu0 %v5354_v25  ;;  %6921 = vmatprep.mubr.msk.bf16.mxu0 %vm7319_vm0, %v7318_v0  ;;  %v6113_v25 = vld [vmem:[%s8584_s5 + $0x19] ss:$0 sm:$0xff] }
0x4b6a   : > { %6931 = vmatprep.subr.bf16.mxu0 %v7318_v0 }
0x4b70   : > { %6922 = vmatmul.mubr.msk.bf16.vlgmr.msra.gmra.mrb[144].mxu0 %vm433_vm2, %v5347_v26 }
0x4b71   : > { %6933 = vmatprep.mubr.msk.bf16.mxu0 %vm7319_vm0, %v7318_v0 }
0x4c3b   : > { %v5290_v27 = vpop.f32.mrb[140].mxu0 }
0x4c3c   : > { %v6911_v28 = vpop.f32.mrb[141].mxu0  ;;  %v5296_v44 = vpack.c.bf16 %v5290_v27, %v5290_v27  ;;  %v6114_v27 = vld [vmem:[%s8584_s5 + $0x1a] ss:$0 sm:$0xff] }
0x4c3d   : > { %v5293_v1 = vpop.f32.mrb[142].mxu0 }
0x4c3e   : > { %v6912_v8 = vpop.f32.mrb[143].mxu0 }
0x4c43   : > { %v5390_v12 = vpop.f32.mrb[144].mxu0 }
0x4c44   : > { %v6923_v29 = vpop.f32.mrb[145].mxu0  ;;  %v5396_v30 = vsel %vm433_vm2, %v5390_v12, -inf }
0x4c45   : > { %5397 = vmax.xlane.f32.xlu1 %v5396_v30  ;;  %v5393_v33 = vpop.f32.mrb[146].mxu0  ;;  %v7100_v29 = vld [vmem:[%s8583_s4 + $0x118] sm:$0xff]   ;;  %v6115_v30 = vld [vmem:[%s8584_s5 + $0x15] ss:$0 sm:$0xff] }
0x4c46   : > { %v6924_v34 = vpop.f32.mrb[147].mxu0 }
0x4c56   : > { %5408 = vrot.lane.b32.xlu1 %v8321_v17, %s8639_s26  ;;  %s6135_s26 = sshll.u32 %s7399_s9, 7 }
0x4c57   : > { %s8537_s10 = scalar_lea.hbm %s8587_s8, %s6135_s26 }
0x4c5a   : > { %5457 = vrot.lane.b32.xlu1 %v8378_v14, %s8641_s25  ;;  %s324_s25 = scalar_lea.vmem [#allocation5], %s5884_s11 }
0x4c5b   : > { %s5795_s19 = sshll.u32 %s324_s25, 4  ;;  %s8539_s19 = int_to_ptr.vmem [resolvable:$true] %s5795_s19 }
0x4c5c   : > { %s7247_s9 = scalar_lea.vmem %s8539_s19, 128  ;;  %p7254_p2 = scmp.lt.s32.totalorder %s8539_s19, %s7252_s0 }
0x4c5d   : > { %p7248_p6 = scmp.ne.s32.totalorder %s8539_s19, %s7247_s9  ;;  %p7255_p3 = scmp.lt.s32.totalorder %s7253_s23, %s7247_s9 }
0x4c5f   : > { %p7249_p10 = pnand %p7248_p6, %p8652_p9  ;;  %p7256_p4 = por %p7255_p3, %p7254_p2 }
0x4c61   : > { %p7250_p12 = pneg %p7249_p10 }
0x4c63   : > { %p7257_p7 = pnand %p7256_p4, %p7250_p12 }
0x4cd2   : > { %v5398_v35 = vpop.xlane.xlu1 %5397 }
0x4cd3   : > { %v5399_v36 = vsub.f32 %v5390_v12, %v5398_v35  ;;  %v7099_v12 = vld [vmem:[%s8583_s4 + $0x110] sm:$0xff]  }
0x4cd5   : > { %v5400_v32 = vmul.f32 1.442695, %v5399_v36 }
0x4cd6   : > { %v5409_v17 = vpop.permute.xlu1 %5408 }
0x4cd7   : > { %7211 = vpow2.f32 %v5400_v32  ;;  %v5414_v46 = vsel %vm497_vm3, %v5409_v17, 0 }
0x4cda   : > { %v5458_v49 = vpop.permute.xlu1 %5457 }
0x4cdb   : > { %v5463_v50 = vsel %vm497_vm3, %v5458_v49, 0 }
0x4cdc   : > { %6932 = vmatpush3.bf16.msra.mxu0 %v5463_v50 }
0x4cdd   : > { %6945 = vmatprep.subr.bf16.mxu0 %v7318_v0 }
0x4ce1   : > { %v7212_v37 = vpop.eup %7211 }
0x4ce2   : > { %v5402_v39 = vsel %vm433_vm2, %v7212_v37, 0.0 }
0x4ce3   : > { %5403 = vadd.xlane.f32.xlu0 %v5402_v39 }
0x4cf9   : > { %5297 = vrot.lane.b32.xlu0 %v8378_v14, %s8649_s21 }
0x4d70   : > { %v5404_v40 = vpop.xlane.xlu0 %5403 }
0x4d71   : > { %7213 = vrcp.f32 %v5404_v40  ;;  %v6119_v40 = vld [vmem:[%s8584_s5 + $0x16] ss:$0 sm:$0xff] }
0x4d74   : > { %v5298_v41 = vpop.permute.xlu0 %5297 }
0x4d75   : > { %v5303_v43 = vsel %vm497_vm3, %v5298_v41, 0 }
0x4d76   : > { %6914 = vmatpush3.bf16.msra.mxu1 %v5303_v43 }
0x4d77   : > { %6925 = vmatprep.subr.bf16.mxu1 %v7318_v0 }
0x4d79   : > { %6916 = vmatmul.mubr.msk.bf16.vlgmr.msra.gmra.mrb[184].mxu1 %vm433_vm2, %v5296_v44 }
0x4d7a   : > { %6926 = vmatpush3.bf16.msra.mxu1 %v5414_v46  ;;  %6927 = vmatprep.mubr.msk.bf16.mxu1 %vm7319_vm0, %v7318_v0 }
0x4d7b   : > { %v7214_v47 = vpop.eup %7213  ;;  %6937 = vmatprep.subr.bf16.mxu1 %v7318_v0 }
0x4d7c   : > { %v5406_v14 = vmul.f32 %v7214_v47, %v7212_v37 }
0x4d7e   : > { %v5407_v48 = vpack.c.bf16 %v5406_v14, %v5406_v14 }
0x4d81   : > { %6928 = vmatmul.mubr.msk.bf16.vlgmr.msra.gmra.mrb[188].mxu1 %vm433_vm2, %v5407_v48 }
0x4d82   : > { %6941 = vmatprep.mubr.msk.bf16.mxu1 %vm7319_vm0, %v7318_v0  ;;  %6938 = vmatpush3.bf16.msra.mxu1 %v7091_v15 }
0x4d83   : > { %6939 = vmatprep.subr.bf16.mxu1 %v7318_v0 }
0x4d86   : > { %6940 = vmatpush3.bf16.msra.mxu1 %v7092_v13 }
0x4d87   : > { %6965 = vmatprep.subr.bf16.mxu1 %v7318_v0 }
0x4e4c   : > { %v5339_v52 = vpop.f32.mrb[184].mxu1 }
0x4e4d   : > { %v5345_v53 = vadd.f32 %v5339_v52, %v8409_v42  ;;  %v6917_v45 = vpop.f32.mrb[185].mxu1 }
0x4e4e   : > { %v5342_v54 = vpop.f32.mrb[186].mxu1  ;;  %v7101_v45 = vld [vmem:[%s8585_s6] sm:$0xff]  }
0x4e4f   : > { %v6918_v55 = vpop.f32.mrb[187].mxu1  ;;  %v7102_v54 = vld [vmem:[%s8585_s6 + $0x8] sm:$0xff]  }
0x4e54   : > { %v5450_v31 = vpop.f32.mrb[188].mxu1 }
0x4e55   : > { %v5456_v60 = vpack.c.bf16 %v5450_v31, %v5450_v31  ;;  %v6929_v16 = vpop.f32.mrb[189].mxu1 }
0x4e56   : > { %v5453_v58 = vpop.f32.mrb[190].mxu1 }
0x4e57   : > { %v6930_v38 = vpop.f32.mrb[191].mxu1  ;;  %6934 = vmatmul.mubr.msk.bf16.vlgmr.msra.gmra.mrb[148].mxu0 %vm433_vm2, %v5456_v60  ;;  %v6128_v58 = vld [vmem:[%s8584_s5 + $0x1b] ss:$0 sm:$0xff] }
0x4e58   : > { %6961 = vmatprep.mubr.msk.bf16.mxu0 %vm7319_vm0, %v7318_v0 }
0x4f2a   : > { %v5499_v10 = vpop.f32.mrb[148].mxu0 }
0x4f2b   : > { %v5505_v61 = vadd.f32 %v5499_v10, %v5345_v53  ;;  %v6935_v51 = vpop.f32.mrb[149].mxu0 }
0x4f2c   : > { %v5502_v42 = vpop.f32.mrb[150].mxu0 }
0x4f2d   : > { %v5510_v11 = vadd.f32 %v6112_v59, %v5505_v61  ;;  %v6936_v63 = vpop.f32.mrb[151].mxu0  ;;  %v6129_v59 = vld [vmem:[%s8584_s5 + $0x1c] ss:$0 sm:$0xff] }
0x4f2f   : > { %v5511_v2 = vadd.f32 %v5510_v11, %v8339_v57  ;;  %v7093_v57 = vld [vmem:[%s8583_s4 + $0xe0] sm:$0xff]  }
0x4f30   : > { %6946 = vmatpush3.bf16.msra.mxu0 %v7093_v57 }
0x4f31   : > { %v5512_v56 = vsel %vm385_vm1, %v5511_v2, 0.0  ;;  %6947 = vmatprep.subr.bf16.mxu0 %v7318_v0 }
0x4f32   : > { %5513 = vadd.xlane.f32.xlu0 %v5512_v56 }
0x4f34   : > { %6948 = vmatpush3.bf16.msra.mxu0 %v7094_v3 }
0x4f35   : > { %6949 = vmatprep.subr.bf16.mxu0 %v7318_v0 }
0x4f38   : > { %6950 = vmatpush3.bf16.msra.mxu0 %v7095_v18 }
0x4f39   : > { %6951 = vmatprep.subr.bf16.mxu0 %v7318_v0 }
0x4f3c   : > { %6952 = vmatpush3.bf16.msra.mxu0 %v7096_v19 }
0x4f3d   : > { %6953 = vmatprep.subr.bf16.mxu0 %v7318_v0 }
0x4f40   : > { %6954 = vmatpush3.bf16.msra.mxu0 %v7097_v20 }
0x4f41   : > { %6955 = vmatprep.subr.bf16.mxu0 %v7318_v0 }
0x4f44   : > { %6956 = vmatpush3.bf16.msra.mxu0 %v7098_v21 }
0x4f45   : > { %6957 = vmatprep.subr.bf16.mxu0 %v7318_v0 }
0x4f48   : > { %6958 = vmatpush3.bf16.msra.mxu0 %v7099_v12 }
0x4f49   : > { %6959 = vmatprep.subr.bf16.mxu0 %v7318_v0 }
0x4f4c   : > { %6960 = vmatpush3.bf16.msra.mxu0 %v7100_v29 }
0x4fbf   : > { %v5514_v4 = vpop.xlane.xlu0 %5513 }
0x4fc0   : > { %v5515_v5 = vmul.f32 0.03125, %v5514_v4 }
0x4fc2   : > { %v5516_v6 = vsub.f32 %v5511_v2, %v5515_v5 }
0x4fc4   : > { %v5517_v7 = vmul.f32 %v5516_v6, %v5516_v6 }
0x4fc6   : > { %v5518_v9 = vsel %vm385_vm1, %v5517_v7, 0.0 }
0x4fc7   : > { %5519 = vadd.xlane.f32.xlu1 %v5518_v9 }
0x5054   : > { %v5520_v62 = vpop.xlane.xlu1 %5519 }
0x5055   : > { %v5521_v22 = vmul.f32 0.03125, %v5520_v62 }
0x5057   : > { %v5522_v23 = vadd.f32 1e-05, %v5521_v22 }
0x5059   : > { %7215 = vrsqrt.f32 %v5522_v23 }
0x5063   : > { %v7216_v24 = vpop.eup %7215 }
0x5064   : > { %v5524_v26 = vmul.f32 %v7216_v24, %v5516_v6 }
0x5066   : > { %v5529_v28 = vmul.f32 %v6113_v25, %v5524_v26 }
0x5068   : > { %v5534_v1 = vadd.f32 %v6114_v27, %v5529_v28 }
0x506a   : > { %v5535_v8 = vpack.c.bf16 %v5534_v1, %v5534_v1 }
0x506c   : > { %6942 = vmatmul.mubr.msk.bf16.vlgmr.msra.gmra.mrb[192].mxu1 %vm385_vm1, %v5535_v8 }
0x506d   : > { %6969 = vmatprep.mubr.msk.bf16.mxu1 %vm7319_vm0, %v7318_v0  ;;  %6966 = vmatpush3.bf16.msra.mxu1 %v7101_v45 }
0x506e   : > { %6967 = vmatprep.subr.bf16.mxu1 %v7318_v0  ;;  %v6130_v0 = vld [vmem:[%s8586_s7] ss:$0 sm:$0xff] }
0x5071   : > { %6968 = vmatpush3.bf16.msra.mxu1 %v7102_v54 }
0x513f   : > { %v5589_v33 = vpop.f32.mrb[192].mxu1 }
0x5140   : > { %v5590_v34 = vadd.f32 %v6115_v30, %v5589_v33  ;;  %v6943_v35 = vpop.f32.mrb[193].mxu1 }
0x5141   : > { %v5592_v36 = vpop.f32.mrb[194].mxu1 }
0x5142   : > { %v5595_v32 = vmax.f32 %v5590_v34, 0.0  ;;  %v6944_v37 = vpop.f32.mrb[195].mxu1 }
0x5144   : > { %v5596_v39 = vpack.c.bf16 %v5595_v32, %v5595_v32 }
0x5146   : > { %6962 = vmatmul.mubr.bf16.vlgmr.msra.gmra.mrb[152].mxu0 %v5596_v39 }
0x5219   : > { %v5683_v41 = vpop.f32.mrb[152].mxu0 }
0x521a   : > { %v5684_v43 = vadd.f32 %v6119_v40, %v5683_v41  ;;  %v6963_v17 = vpop.f32.mrb[153].mxu0 }
0x521b   : > { %v5686_v44 = vpop.f32.mrb[154].mxu0 }
0x521c   : > { %v5689_v46 = vadd.f32 %v5684_v43, %v5534_v1  ;;  %v6964_v47 = vpop.f32.mrb[155].mxu0 }
0x521e   : > { %v5690_v14 = vsel %vm385_vm1, %v5689_v46, 0.0 }
0x521f   : > { %5691 = vadd.xlane.f32.xlu0 %v5690_v14 }
0x52ac   : > { %v5692_v48 = vpop.xlane.xlu0 %5691 }
0x52ad   : > { %v5693_v49 = vmul.f32 0.03125, %v5692_v48 }
0x52af   : > { %v5694_v50 = vsub.f32 %v5689_v46, %v5693_v49 }
0x52b1   : > { %v5695_v52 = vmul.f32 %v5694_v50, %v5694_v50 }
0x52b3   : > { %v5696_v53 = vsel %vm385_vm1, %v5695_v52, 0.0 }
0x52b4   : > { %5697 = vadd.xlane.f32.xlu0 %v5696_v53 }
0x5341   : > { %v5698_v55 = vpop.xlane.xlu0 %5697 }
0x5342   : > { %v5699_v31 = vmul.f32 0.03125, %v5698_v55 }
0x5344   : > { %v5700_v60 = vadd.f32 1e-05, %v5699_v31 }
0x5346   : > { %7217 = vrsqrt.f32 %v5700_v60 }
0x5350   : > { %v7218_v16 = vpop.eup %7217 }
0x5351   : > { %v5702_v38 = vmul.f32 %v7218_v16, %v5694_v50 }
0x5353   : > { %v5707_v10 = vmul.f32 %v6128_v58, %v5702_v38 }
0x5355   : > { %v5712_v61 = vadd.f32 %v6129_v59, %v5707_v10 }
0x5357   : > { %v5713_v51 = vpack.c.bf16 %v5712_v61, %v5712_v61 }
0x5359   : > { %6970 = vmatmul.mubr.msk.bf16.vlgmr.msra.gmra.mrb[196].mxu1 %vm385_vm1, %v5713_v51 }
0x542c   : > { %v5774_v42 = vpop.f32.mrb[196].mxu1 }
0x542d   : > { %v5775_v11 = vadd.f32 %v6130_v0, %v5774_v42  ;;  %v6971_v63 = vpop.f32.mrb[197].mxu1 }
0x542e   : > { %v5777_v2 = vpop.f32.mrb[198].mxu1 }
0x542f   : > { %5780 = vst [vmem:[%s324_s25] sm:$0xff] %v5775_v11  ;;  %v6972_v56 = vpop.f32.mrb[199].mxu1 }
0x5430   : > { %7260 = shalt.err (!%p7257_p7)
}
0x5431   : > { %s7261_s24 = scalar_lea.hbm %s8537_s10, 128  ;;  %s7265_s29 = scalar_lea.hbm %s8587_s8, 256 }
0x5432   : > { %p7262_p8 = scmp.ne.s32.totalorder %s8537_s10, %s7261_s24  ;;  %p7266_p1 = scmp.lt.u32.totalorder %s8537_s10, %s8587_s8 }
0x5433   : > { %p7267_p0 = scmp.lt.u32.totalorder %s7265_s29, %s7261_s24  ;;  %p7269_p6 = scmp.lt.u32.totalorder %s7261_s24, %s8537_s10 }
0x5434   : > { %p7263_p11 = pnand %p7262_p8, %p8652_p9 }
0x5435   : > { %p7268_p5 = por %p7267_p0, %p7266_p1 }
0x5436   : > { %p7264_p13 = pneg %p7263_p11 }
0x5437   : > { %p7270_p10 = por %p7269_p6, %p7268_p5 }
0x5439   : > { %p7271_p12 = pnand %p7270_p10, %p7264_p13 }
0x543b   : > { %7274 = shalt.err (!%p7271_p12)
}
0x543c   : > { %6977 = dma.vmem_to_hbm [thread:$0]  (%p8652_p9), %s8539_s19, 128, %s8537_s10, %s5782_s3  }
0x543d PF: > { %p6989_p2 = scmp.ge.s32.totalorder %s7313_s30, 2  ;;  %s5807_s13 = sand.u32 1, %s7301_s27  }
0x543e   : > { %p8653_p3 = scmp.ne.s32.totalorder %s8627_s16, 0  ;;  %s5808_s11 = scalar_lea.sflag [#allocation4], %s5807_s13 }
0x5440   : > { %p6984_p4 = pnand %p6989_p2, %p8653_p3 }
0x5442   : > { %7296 = dma.done.wait (!%p6984_p4), %s5808_s11, 128  }
0x5443   : > { %7298 = vsyncadd (!%p6984_p4), %s5808_s11, 4294967168  ;;  %s8654_s30 = sld [smem:[#allocation9_spill]]  ;;  %s8655_s20 = sld [smem:[#allocation8_spill]] }
0x5444   : > { %s8656_s29 = sld [smem:[#allocation10_spill]]  ;;  %s8657_s27 = smov %s7305_s28 }
0x5449   : > { %p19_p7 = scmp.ge.s32.totalorder %s8654_s30, 4   ;;  %s8658_s28 = smov %s8655_s20 }
0x544b   :  { %21 = sbr.rel (!%p19_p7) target bundleno = 9 (0x9), region = 99 }
0x5452   :  { %5813 = vsyncpa [#allocation3], 1 }
0x5453   :  { %5815 = vsyncpa [#allocation3 + $0x1], 1 }
0x5454   :  { %5816 = vsyncpa [#allocation4], 1 }
0x5455   :  { %5818 = vsyncpa [#allocation4 + $0x1], 1 }

</bundles_post_ra>
